<compile_context>
chip_gen: v7x
topology: tpu7x:2x2x1
jax: 0.10.0
libtpu: 0.0.40
codegen_flags: <defaults>
</compile_context>

<pallas_src>
import functools

import jax
import jax.numpy as jnp
from jax.experimental import pallas as pl
from jax.experimental.pallas import tpu as pltpu


# Tap order k = (dy+1)*3 + (dx+1) == kh*3 + kw, shared by kernel + host folding.
_TAPS = tuple((dy, dx) for dy in (-1, 0, 1) for dx in (-1, 0, 1))


# ----------------------------------------------------------------------------
# Fused kernel: one grid step = one LGD iteration of one batch-block.
# ----------------------------------------------------------------------------
def _lgd2_fused_kernel(x0_ref, c_ref, G_ref, m_ref,
                       w1_ref, w2_ref, w3_ref, w4_ref,
                       b1_ref, b2_ref, b3_ref, b4_ref,
                       step_ref,
                       out_ref,
                       x_state, adj_old_state, grad_old_state,
                       *, W, L):
    # NOTE: the x/adj_old/grad_old VMEM carry is only valid because the
    # iteration axis t is the innermost grid axis and marked "arbitrary"
    # (sequential), while the batch-block axis is outer / "parallel".
    # Do not reorder the grid axes or swap their semantics.
    t = pl.program_id(1)

    @pl.when(t == 0)
    def _():
        x_state[...] = x0_ref[0]                       # (1, L)

    x = x_state[...]                                   # pre-update iterate

    # adjoint_eval = (operator(x) - y) @ A^T == x @ (A A^T) - y @ A^T.
    # G (block-diag of A A^T over the folded images) and c = y @ A^T are
    # host-precomputed, so this is a single K=L MXU matmul + a VPU subtract.
    adj = jnp.dot(x, G_ref[...], preferred_element_type=jnp.float32) - c_ref[0]

    # TODO(synk): torch.autograd.grad(reg(x), x) has no Pallas equivalent;
    # reg(x) = 0.5*||x||^2 here, so grad_reg == x analytically.
    grad = x

    @pl.when(t == 0)
    def _():
        adj_old_state[...] = adj
        grad_old_state[...] = grad

    adj_old = adj_old_state[...]
    grad_old = grad_old_state[...]

    # torch.cat([x, adj, x_old, adj_old, grad_new, grad_old], dim=1):
    # x_old == x and grad_new == x every iteration, so channels 0/2/4 are
    # identical; their conv-1 kernels were summed host-side and only the four
    # distinct channels are carried here.
    u = jnp.concatenate([x, adj, adj_old, grad_old], axis=0)      # (4, L)

    # Host-precomputed zero-pad boundary masks, one (1, L) row per tap.
    tap_masks = [None if (dy == 0 and dx == 0) else m_ref[k]
                 for k, (dy, dx) in enumerate(_TAPS)]

    def conv3x3(act, w_ref, b_ref, relu):
        # act: (Cin, L) f32.  Build the (9*Cin, L) im2col slab (tap-major) in
        # bf16 and contract it with ONE MXU matmul against the host-folded
        # (Cout, 9*Cin) bf16 weights, accumulating in f32.
        rows = []
        for k, (dy, dx) in enumerate(_TAPS):
            s = dy * W + dx                            # flat neighbour offset
            if s == 0:
                rows.append(act.astype(jnp.bfloat16))
            else:
                # shifted[:, p] = act[:, p + s]; out-of-image (incl. cross-image
                # wrap of the folded lane axis) positions are masked to zero.
                shifted = pltpu.roll(act, shift=(-s) % L, axis=1) * tap_masks[k]
                rows.append(shifted.astype(jnp.bfloat16))
        slab = jnp.concatenate(rows, axis=0)                       # (9*Cin, L)
        acc = jnp.dot(w_ref[...], slab, preferred_element_type=jnp.float32)
        acc = acc + b_ref[...]
        if relu:
            acc = jnp.maximum(acc, 0.0)
        return acc

    h = conv3x3(u, w1_ref, b1_ref, True)
    h = conv3x3(h, w2_ref, b2_ref, True)
    h = conv3x3(h, w3_ref, b3_ref, True)
    u0 = conv3x3(h, w4_ref, b4_ref, False)                         # (1, L)

    # ---- gradient-descent update (fused epilogue) ----------------------------
    # TODO(synk): the in-forward `print(self.step_length)` is intentionally omitted.
    step = step_ref[0, 0]
    x_new = x - step * (adj + grad + u0)

    x_state[...] = x_new
    adj_old_state[...] = adj
    grad_old_state[...] = grad           # grad_old <- this iteration's pre-update x
    out_ref[...] = x_new.reshape(1, 1, 1, L)


# ----------------------------------------------------------------------------
# Host wrapper
# ----------------------------------------------------------------------------
def _num_batch_blocks(n_batch):
    """Batch-axis grid blocks.

    Single-TensorCore chips (v5e / v6e) gain nothing from a 'parallel' batch
    axis (it is just a serial loop), so the whole batch is folded into the
    lane axis (1 block, wider matmul RHS, half the grid steps).  Multi-TC
    chips (v7x, megacore v4/v5p) keep up to one block per TensorCore.
    """
    try:
        kind = jax.devices()[0].device_kind.lower()
    except Exception:
        kind = ""
    single_tc = ("lite" in kind) or ("v5e" in kind) or ("v6" in kind)
    if not single_tc:
        for nb in (2, 1):
            if n_batch % nb == 0:
                return nb
    return 1


def lgd2_forward(x_nchw, y, n_iter, params, num_batch_blocks=None):
    if num_batch_blocks is None:
        num_batch_blocks = _num_batch_blocks(int(x_nchw.shape[0]))
    return _lgd2_forward_jit(x_nchw, y, params, n_iter, num_batch_blocks)


@functools.partial(jax.jit, static_argnums=(3, 4))
def _lgd2_forward_jit(x_nchw, y, params, n_iter, num_blocks):
    N, C, H, W = x_nchw.shape
    assert C == 1, "this synthetic instantiation uses single-channel images"
    assert N % num_blocks == 0
    HW = H * W
    NB = N // num_blocks            # images folded into the lane axis per block
    L = NB * HW                     # lane width of every activation row
    hp = jax.lax.Precision.HIGHEST

    # ---- constant prep, all hoisted out of the iteration loop ----------------
    A = params["A"].astype(jnp.float32)                    # (HW, Ms)
    G = jnp.dot(A, A.T, precision=hp)                      # normal operator A A^T
    # Block-diagonal copy per folded image so adj = x @ G_blk - c is one matmul.
    # CAUTION: scales as (NB*HW)^2*4 bytes — only keep resident while it fits
    # VMEM comfortably (tile A over a k grid axis for realistic image sizes).
    G_blk = jnp.kron(jnp.eye(NB, dtype=jnp.float32), G)    # (L, L)
    c = jnp.dot(y.astype(jnp.float32), A.T, precision=hp)  # y @ A^T, (N, HW)
    c = c.reshape(num_blocks, 1, L)
    x0 = x_nchw.astype(jnp.float32).reshape(num_blocks, 1, L)
    step = params["step_length"].reshape(1, 1).astype(jnp.float32)

    # 3x3 zero-pad boundary masks (hoisted out of the kernel), tiled over the
    # NB images folded into the lane axis.  Shape (9, 1, L), tap-major.
    pos = jnp.arange(HW, dtype=jnp.int32)
    hh, ww = pos // W, pos % W
    mask_rows = []
    for dy, dx in _TAPS:
        valid = (hh + dy >= 0) & (hh + dy < H) & (ww + dx >= 0) & (ww + dx < W)
        mask_rows.append(valid.astype(jnp.float32))
    masks = jnp.tile(jnp.stack(mask_rows, 0).reshape(9, 1, HW), (1, 1, NB))

    # Conv weights: sum the conv-1 kernels of the duplicated channels
    # (x / x_old / grad_new are identical), then fold OIHW -> (Cout, 9*Cin)
    # im2col matrices (tap-major, matching the kernel slab) in bf16.
    (w1, b1), (w2, b2), (w3, b3), (w4, b4) = params["conv"]
    w1 = w1.astype(jnp.float32)
    w1 = jnp.stack([w1[:, 0] + w1[:, 2] + w1[:, 4], w1[:, 1], w1[:, 3], w1[:, 5]],
                   axis=1)                                             # (32,4,3,3)

    def fold(w):
        w = w.astype(jnp.float32)
        cout, cin = int(w.shape[0]), int(w.shape[1])
        return (jnp.transpose(w, (0, 2, 3, 1))
                .reshape(cout, 9 * cin).astype(jnp.bfloat16))

    w_folds = [fold(w) for w in (w1, w2, w3, w4)]
    biases = [b.reshape(-1, 1).astype(jnp.float32) for b in (b1, b2, b3, b4)]

    # VMEM-residency guard for the constant-index-map inputs.
    resident_bytes = ((G_blk.size + masks.size) * 4
                      + sum(w.size * 2 for w in w_folds)
                      + sum(b.size * 4 for b in biases))
    assert resident_bytes < 16 * 1024 * 1024, (
        "resident constants too large for VMEM; tile A over a k grid axis")

    const2 = lambda b, t: (0, 0)
    const3 = lambda b, t: (0, 0, 0)
    in_specs = [
        pl.BlockSpec((1, 1, L), lambda b, t: (b, 0, 0)),    # x0  (per block)
        pl.BlockSpec((1, 1, L), lambda b, t: (b, 0, 0)),    # c = y @ A^T
        pl.BlockSpec((L, L), const2),                       # G   (VMEM-resident)
        pl.BlockSpec((9, 1, L), const3),                    # boundary masks
    ]
    in_specs += [pl.BlockSpec(w.shape, const2) for w in w_folds]
    in_specs += [pl.BlockSpec(b.shape, const2) for b in biases]
    in_specs += [pl.BlockSpec(memory_space=pltpu.MemorySpace.SMEM)]  # step scalar

    flops_per_step = 2 * L * L + sum(2 * int(w.shape[0]) * int(w.shape[1]) * L
                                     for w in w_folds)
    cost = pl.CostEstimate(
        flops=num_blocks * n_iter * flops_per_step,
        transcendentals=0,
        bytes_accessed=int((x0.size + c.size) * 4 + resident_bytes
                           + n_iter * N * HW * 4))

    xs = pl.pallas_call(
        functools.partial(_lgd2_fused_kernel, W=W, L=L),
        out_shape=jax.ShapeDtypeStruct((n_iter, num_blocks, 1, L), jnp.float32),
        grid=(num_blocks, n_iter),
        in_specs=in_specs,
        out_specs=pl.BlockSpec((1, 1, 1, L), lambda b, t: (t, b, 0, 0)),
        scratch_shapes=[pltpu.VMEM((1, L), jnp.float32),    # x carry
                        pltpu.VMEM((1, L), jnp.float32),    # adj_old carry
                        pltpu.VMEM((1, L), jnp.float32)],   # grad_old carry
        compiler_params=pltpu.CompilerParams(
            dimension_semantics=("parallel", "arbitrary")),
        cost_estimate=cost,
    )(x0, c, G_blk, masks, *w_folds, *biases, step)

    xs = xs.reshape(n_iter, N, 1, H, W)            # single reshape, then split
    x_list = [xs[i] for i in range(n_iter)]
    return x_list[-1], params["step_length"], x_list


# ----------------------------------------------------------------------------
# Parameters (deterministic in-script init)
# ----------------------------------------------------------------------------
def init_params(key, HW, M_sino, in_channels=6, out_channels=1):
    keys = jax.random.split(key, 8)

    def conv_init(k, cin, cout):
        kw, kb = jax.random.split(k)
        bound = 1.0 / float(jnp.sqrt(cin * 9.0))
        w = jax.random.uniform(kw, (cout, cin, 3, 3), jnp.float32, -bound, bound)
        b = jax.random.uniform(kb, (cout,), jnp.float32, -bound, bound)
        return w, b

    conv = [
        conv_init(keys[0], in_channels, 32),
        conv_init(keys[1], 32, 32),
        conv_init(keys[2], 32, 32),
        conv_init(keys[3], 32, out_channels),
    ]
    A = 0.1 * jax.random.normal(keys[4], (HW, M_sino), jnp.float32)
    # PyTorch __init__ uses zeros(1,1,1,1); a nonzero constant is used so the
    # update path is actually exercised (shape kept identical).
    step_length = jnp.full((1, 1, 1, 1), 0.25, jnp.float32)
    return dict(conv=conv, A=A, step_length=step_length)


# ----------------------------------------------------------------------------
# Pure-JAX (XLA) reference of the PyTorch LGD2.forward, used for validation.
# ----------------------------------------------------------------------------
def lgd2_reference(x_nchw, y, n_iter, params):
    hp = jax.lax.Precision.HIGHEST
    N, C, H, W = x_nchw.shape
    A = params["A"].astype(jnp.float32)
    step = params["step_length"].astype(jnp.float32)

    def operator(img):
        return jnp.dot(img.reshape(N, H * W), A, precision=hp)

    def adjoint(r):
        return jnp.dot(r, A.T, precision=hp).reshape(N, 1, H, W)

    def conv(u, w, b, relu):
        o = jax.lax.conv_general_dilated(
            u, w.astype(jnp.float32), (1, 1), ((1, 1), (1, 1)),
            dimension_numbers=("NCHW", "OIHW", "NCHW"), precision=hp)
        o = o + b.reshape(1, -1, 1, 1)
        return jnp.maximum(o, 0.0) if relu else o

    x = x_nchw.astype(jnp.float32)
    x_list = []
    for i in range(n_iter):
        adjoint_eval = adjoint(operator(x) - y.astype(jnp.float32))
        grad_new = x                                   # d/dx 0.5*||x||^2
        if i == 0:
            x_old, adjoint_eval_old, grad_old = x, adjoint_eval, grad_new
        u = jnp.concatenate([x, adjoint_eval, x_old, adjoint_eval_old,
                             grad_new, grad_old], axis=1)
        (w1, b1), (w2, b2), (w3, b3), (w4, b4) = params["conv"]
        u = conv(u, w1, b1, True)
        u = conv(u, w2, b2, True)
        u = conv(u, w3, b3, True)
        u = conv(u, w4, b4, False)
        x = x - step * (adjoint_eval + grad_new + u[:, 0:1, :, :])
        x_old, adjoint_eval_old, grad_old = x, adjoint_eval, grad_new
        x_list.append(x)
    return x, x_list


# ----------------------------------------------------------------------------
if __name__ == "__main__":
    N, C, H, W = 2, 1, 16, 16
    M_SINO = 24
    N_ITER = 3

    key = jax.random.PRNGKey(0)
    k_params, k_x, k_y = jax.random.split(key, 3)

    params = init_params(k_params, H * W, M_SINO, in_channels=6, out_channels=1)
    x = jax.random.normal(k_x, (N, C, H, W), jnp.float32)
    y = jax.random.normal(k_y, (N, M_SINO), jnp.float32)

    x_out, step_len, x_list = lgd2_forward(x, y, N_ITER, params)
    jax.block_until_ready(x_out)
    jax.block_until_ready(x_list[-1])

    assert x_out.shape == (N, C, H, W)
    assert len(x_list) == N_ITER

    # Validate the fused Pallas kernel against the pure-JAX reference.
    x_ref, x_list_ref = lgd2_reference(x, y, N_ITER, params)
    err_first = float(jnp.max(jnp.abs(x_list[0] - x_list_ref[0])))
    err_final = float(jnp.max(jnp.abs(x_out - x_ref)))
    assert err_first < 3e-2 and err_final < 3e-2, (err_first, err_final)

    print("KERNEL_OK")
</pallas_src>

<mosaic_0001>
module attributes {stable_mosaic.version = 11 : i64} {
  func.func @_lgd2_fused_kernel(%arg0: i32, %arg1: i32, %arg2: memref<1x1x256xf32, #tpu.memory_space<vmem>>, %arg3: memref<1x1x256xf32, #tpu.memory_space<vmem>>, %arg4: memref<256x256xf32, #tpu.memory_space<vmem>>, %arg5: memref<9x1x256xf32, #tpu.memory_space<vmem>>, %arg6: memref<32x36xbf16, #tpu.memory_space<vmem>>, %arg7: memref<32x288xbf16, #tpu.memory_space<vmem>>, %arg8: memref<32x288xbf16, #tpu.memory_space<vmem>>, %arg9: memref<1x288xbf16, #tpu.memory_space<vmem>>, %arg10: memref<32x1xf32, #tpu.memory_space<vmem>>, %arg11: memref<32x1xf32, #tpu.memory_space<vmem>>, %arg12: memref<32x1xf32, #tpu.memory_space<vmem>>, %arg13: memref<1x1xf32, #tpu.memory_space<vmem>>, %arg14: memref<1x1xf32, #tpu.memory_space<smem>>, %arg15: memref<1x1x1x256xf32, #tpu.memory_space<vmem>>, %arg16: memref<1x256xf32, #tpu.memory_space<vmem>>, %arg17: memref<1x256xf32, #tpu.memory_space<vmem>>, %arg18: memref<1x256xf32, #tpu.memory_space<vmem>>) attributes {dimension_semantics = [#tpu.dimension_semantics<parallel>, #tpu.dimension_semantics<arbitrary>], iteration_bounds = array<i64: 2, 3>, scalar_prefetch = 0 : i64, scratch_operands = 3 : i64, tpu.core_type = #tpu.core_type<tc>, window_params = [{transform_indices = @transform_0, window_bounds = array<i64: 1, 1, 256>}, {transform_indices = @transform_1, window_bounds = array<i64: 1, 1, 256>}, {pipeline_mode = #tpu.pipeline_mode<synchronous>, transform_indices = @transform_2, window_bounds = array<i64: 256, 256>}, {pipeline_mode = #tpu.pipeline_mode<synchronous>, transform_indices = @transform_3, window_bounds = array<i64: 9, 1, 256>}, {pipeline_mode = #tpu.pipeline_mode<synchronous>, transform_indices = @transform_4, window_bounds = array<i64: 32, 36>}, {pipeline_mode = #tpu.pipeline_mode<synchronous>, transform_indices = @transform_5, window_bounds = array<i64: 32, 288>}, {pipeline_mode = #tpu.pipeline_mode<synchronous>, transform_indices = @transform_6, window_bounds = array<i64: 32, 288>}, {pipeline_mode = #tpu.pipeline_mode<synchronous>, transform_indices = @transform_7, window_bounds = array<i64: 1, 288>}, {pipeline_mode = #tpu.pipeline_mode<synchronous>, transform_indices = @transform_8, window_bounds = array<i64: 32, 1>}, {pipeline_mode = #tpu.pipeline_mode<synchronous>, transform_indices = @transform_9, window_bounds = array<i64: 32, 1>}, {pipeline_mode = #tpu.pipeline_mode<synchronous>, transform_indices = @transform_10, window_bounds = array<i64: 32, 1>}, {pipeline_mode = #tpu.pipeline_mode<synchronous>, transform_indices = @transform_11, window_bounds = array<i64: 1, 1>}, {transform_indices = @transform_12, window_bounds = array<i64: 1, 1>}, {transform_indices = @transform_13, window_bounds = array<i64: 1, 1, 1, 256>}]} {
    %c0_i32 = arith.constant 0 : i32
    %0 = arith.cmpi eq, %arg1, %c0_i32 : i32
    %1 = arith.extui %0 : i1 to i32
    %c0_i32_0 = arith.constant 0 : i32
    %2 = arith.cmpi ne, %1, %c0_i32_0 : i32
    scf.if %2 {
      %c0_89 = arith.constant 0 : index
      %c0_90 = arith.constant 0 : index
      %c0_91 = arith.constant 0 : index
      %204 = vector.load %arg2[%c0_89, %c0_90, %c0_91] : memref<1x1x256xf32, #tpu.memory_space<vmem>>, vector<1x1x256xf32>
      %205 = vector.shape_cast %204 : vector<1x1x256xf32> to vector<1x256xf32>
      %c0_92 = arith.constant 0 : index
      %c0_93 = arith.constant 0 : index
      %206 = vector.load %arg16[%c0_92, %c0_93] : memref<1x256xf32, #tpu.memory_space<vmem>>, vector<1x256xf32>
      tpu.vector_store %arg16[%c0_92, %c0_93], %205 {strides = array<i32>} : memref<1x256xf32, #tpu.memory_space<vmem>>, vector<1x256xf32>,
    } else {
    }
    %c0 = arith.constant 0 : index
    %c0_1 = arith.constant 0 : index
    %3 = vector.load %arg16[%c0, %c0_1] : memref<1x256xf32, #tpu.memory_space<vmem>>, vector<1x256xf32>
    %c0_2 = arith.constant 0 : index
    %c0_3 = arith.constant 0 : index
    %4 = vector.load %arg4[%c0_2, %c0_3] : memref<256x256xf32, #tpu.memory_space<vmem>>, vector<256x256xf32>
    %cst = arith.constant dense<0.000000e+00> : vector<1x256xf32>
    %5 = tpu.matmul %3, %4, %cst {dimension_numbers = #tpu.dot_dimension_numbers<[1], [0], [0], [1], [0, 0, 1, 1], [], []>} : vector<1x256xf32>, vector<256x256xf32>, vector<1x256xf32> -> vector<1x256xf32>
    %c0_4 = arith.constant 0 : index
    %c0_5 = arith.constant 0 : index
    %c0_6 = arith.constant 0 : index
    %6 = vector.load %arg3[%c0_4, %c0_5, %c0_6] : memref<1x1x256xf32, #tpu.memory_space<vmem>>, vector<1x1x256xf32>
    %7 = vector.shape_cast %6 : vector<1x1x256xf32> to vector<1x256xf32>
    %8 = arith.subf %5, %7 : vector<1x256xf32>
    %c0_i32_7 = arith.constant 0 : i32
    %9 = arith.cmpi eq, %arg1, %c0_i32_7 : i32
    %10 = arith.extui %9 : i1 to i32
    %c0_i32_8 = arith.constant 0 : i32
    %11 = arith.cmpi ne, %10, %c0_i32_8 : i32
    scf.if %11 {
      %c0_89 = arith.constant 0 : index
      %c0_90 = arith.constant 0 : index
      %204 = vector.load %arg17[%c0_89, %c0_90] : memref<1x256xf32, #tpu.memory_space<vmem>>, vector<1x256xf32>
      tpu.vector_store %arg17[%c0_89, %c0_90], %8 {strides = array<i32>} : memref<1x256xf32, #tpu.memory_space<vmem>>, vector<1x256xf32>,
      %c0_91 = arith.constant 0 : index
      %c0_92 = arith.constant 0 : index
      %205 = vector.load %arg18[%c0_91, %c0_92] : memref<1x256xf32, #tpu.memory_space<vmem>>, vector<1x256xf32>
      tpu.vector_store %arg18[%c0_91, %c0_92], %3 {strides = array<i32>} : memref<1x256xf32, #tpu.memory_space<vmem>>, vector<1x256xf32>,
    } else {
    }
    %c0_9 = arith.constant 0 : index
    %c0_10 = arith.constant 0 : index
    %12 = vector.load %arg17[%c0_9, %c0_10] : memref<1x256xf32, #tpu.memory_space<vmem>>, vector<1x256xf32>
    %c0_11 = arith.constant 0 : index
    %c0_12 = arith.constant 0 : index
    %13 = vector.load %arg18[%c0_11, %c0_12] : memref<1x256xf32, #tpu.memory_space<vmem>>, vector<1x256xf32>
    %14 = tpu.concatenate %3, %8, %12, %13 in 0 : vector<1x256xf32>, vector<1x256xf32>, vector<1x256xf32>, vector<1x256xf32> -> vector<4x256xf32>
    %c0_13 = arith.constant 0 : index
    %c0_14 = arith.constant 0 : index
    %c0_15 = arith.constant 0 : index
    %15 = vector.load %arg5[%c0_13, %c0_14, %c0_15] : memref<9x1x256xf32, #tpu.memory_space<vmem>>, vector<1x1x256xf32>
    %16 = vector.shape_cast %15 : vector<1x1x256xf32> to vector<1x256xf32>
    %c1 = arith.constant 1 : index
    %c0_16 = arith.constant 0 : index
    %c0_17 = arith.constant 0 : index
    %17 = vector.load %arg5[%c1, %c0_16, %c0_17] : memref<9x1x256xf32, #tpu.memory_space<vmem>>, vector<1x1x256xf32>
    %18 = vector.shape_cast %17 : vector<1x1x256xf32> to vector<1x256xf32>
    %c2 = arith.constant 2 : index
    %c0_18 = arith.constant 0 : index
    %c0_19 = arith.constant 0 : index
    %19 = vector.load %arg5[%c2, %c0_18, %c0_19] : memref<9x1x256xf32, #tpu.memory_space<vmem>>, vector<1x1x256xf32>
    %20 = vector.shape_cast %19 : vector<1x1x256xf32> to vector<1x256xf32>
    %c3 = arith.constant 3 : index
    %c0_20 = arith.constant 0 : index
    %c0_21 = arith.constant 0 : index
    %21 = vector.load %arg5[%c3, %c0_20, %c0_21] : memref<9x1x256xf32, #tpu.memory_space<vmem>>, vector<1x1x256xf32>
    %22 = vector.shape_cast %21 : vector<1x1x256xf32> to vector<1x256xf32>
    %c5 = arith.constant 5 : index
    %c0_22 = arith.constant 0 : index
    %c0_23 = arith.constant 0 : index
    %23 = vector.load %arg5[%c5, %c0_22, %c0_23] : memref<9x1x256xf32, #tpu.memory_space<vmem>>, vector<1x1x256xf32>
    %24 = vector.shape_cast %23 : vector<1x1x256xf32> to vector<1x256xf32>
    %c6 = arith.constant 6 : index
    %c0_24 = arith.constant 0 : index
    %c0_25 = arith.constant 0 : index
    %25 = vector.load %arg5[%c6, %c0_24, %c0_25] : memref<9x1x256xf32, #tpu.memory_space<vmem>>, vector<1x1x256xf32>
    %26 = vector.shape_cast %25 : vector<1x1x256xf32> to vector<1x256xf32>
    %c7 = arith.constant 7 : index
    %c0_26 = arith.constant 0 : index
    %c0_27 = arith.constant 0 : index
    %27 = vector.load %arg5[%c7, %c0_26, %c0_27] : memref<9x1x256xf32, #tpu.memory_space<vmem>>, vector<1x1x256xf32>
    %28 = vector.shape_cast %27 : vector<1x1x256xf32> to vector<1x256xf32>
    %c8 = arith.constant 8 : index
    %c0_28 = arith.constant 0 : index
    %c0_29 = arith.constant 0 : index
    %29 = vector.load %arg5[%c8, %c0_28, %c0_29] : memref<9x1x256xf32, #tpu.memory_space<vmem>>, vector<1x1x256xf32>
    %30 = vector.shape_cast %29 : vector<1x1x256xf32> to vector<1x256xf32>
    %c17_i32 = arith.constant 17 : i32
    %31 = tpu.dynamic_rotate %14 by %c17_i32 dim 1 : vector<4x256xf32>, i32 -> vector<4x256xf32>
    %32 = vector.broadcast %16 : vector<1x256xf32> to vector<4x256xf32>
    %33 = arith.mulf %31, %32 : vector<4x256xf32>
    %34 = arith.truncf %33 : vector<4x256xf32> to vector<4x256xbf16>
    %c16_i32 = arith.constant 16 : i32
    %35 = tpu.dynamic_rotate %14 by %c16_i32 dim 1 : vector<4x256xf32>, i32 -> vector<4x256xf32>
    %36 = vector.broadcast %18 : vector<1x256xf32> to vector<4x256xf32>
    %37 = arith.mulf %35, %36 : vector<4x256xf32>
    %38 = arith.truncf %37 : vector<4x256xf32> to vector<4x256xbf16>
    %c15_i32 = arith.constant 15 : i32
    %39 = tpu.dynamic_rotate %14 by %c15_i32 dim 1 : vector<4x256xf32>, i32 -> vector<4x256xf32>
    %40 = vector.broadcast %20 : vector<1x256xf32> to vector<4x256xf32>
    %41 = arith.mulf %39, %40 : vector<4x256xf32>
    %42 = arith.truncf %41 : vector<4x256xf32> to vector<4x256xbf16>
    %c1_i32 = arith.constant 1 : i32
    %43 = tpu.dynamic_rotate %14 by %c1_i32 dim 1 : vector<4x256xf32>, i32 -> vector<4x256xf32>
    %44 = vector.broadcast %22 : vector<1x256xf32> to vector<4x256xf32>
    %45 = arith.mulf %43, %44 : vector<4x256xf32>
    %46 = arith.truncf %45 : vector<4x256xf32> to vector<4x256xbf16>
    %47 = arith.truncf %14 : vector<4x256xf32> to vector<4x256xbf16>
    %c255_i32 = arith.constant 255 : i32
    %48 = tpu.dynamic_rotate %14 by %c255_i32 dim 1 : vector<4x256xf32>, i32 -> vector<4x256xf32>
    %49 = vector.broadcast %24 : vector<1x256xf32> to vector<4x256xf32>
    %50 = arith.mulf %48, %49 : vector<4x256xf32>
    %51 = arith.truncf %50 : vector<4x256xf32> to vector<4x256xbf16>
    %c241_i32 = arith.constant 241 : i32
    %52 = tpu.dynamic_rotate %14 by %c241_i32 dim 1 : vector<4x256xf32>, i32 -> vector<4x256xf32>
    %53 = vector.broadcast %26 : vector<1x256xf32> to vector<4x256xf32>
    %54 = arith.mulf %52, %53 : vector<4x256xf32>
    %55 = arith.truncf %54 : vector<4x256xf32> to vector<4x256xbf16>
    %c240_i32 = arith.constant 240 : i32
    %56 = tpu.dynamic_rotate %14 by %c240_i32 dim 1 : vector<4x256xf32>, i32 -> vector<4x256xf32>
    %57 = vector.broadcast %28 : vector<1x256xf32> to vector<4x256xf32>
    %58 = arith.mulf %56, %57 : vector<4x256xf32>
    %59 = arith.truncf %58 : vector<4x256xf32> to vector<4x256xbf16>
    %c239_i32 = arith.constant 239 : i32
    %60 = tpu.dynamic_rotate %14 by %c239_i32 dim 1 : vector<4x256xf32>, i32 -> vector<4x256xf32>
    %61 = vector.broadcast %30 : vector<1x256xf32> to vector<4x256xf32>
    %62 = arith.mulf %60, %61 : vector<4x256xf32>
    %63 = arith.truncf %62 : vector<4x256xf32> to vector<4x256xbf16>
    %64 = tpu.concatenate %34, %38, %42, %46, %47, %51, %55, %59, %63 in 0 : vector<4x256xbf16>, vector<4x256xbf16>, vector<4x256xbf16>, vector<4x256xbf16>, vector<4x256xbf16>, vector<4x256xbf16>, vector<4x256xbf16>, vector<4x256xbf16>, vector<4x256xbf16> -> vector<36x256xbf16>
    %c0_30 = arith.constant 0 : index
    %c0_31 = arith.constant 0 : index
    %65 = vector.load %arg6[%c0_30, %c0_31] : memref<32x36xbf16, #tpu.memory_space<vmem>>, vector<32x36xbf16>
    %cst_32 = arith.constant dense<0.000000e+00> : vector<32x256xf32>
    %66 = tpu.matmul %65, %64, %cst_32 {dimension_numbers = #tpu.dot_dimension_numbers<[1], [0], [0], [1], [0, 0, 1, 1], [], []>} : vector<32x36xbf16>, vector<36x256xbf16>, vector<32x256xf32> -> vector<32x256xf32>
    %c0_33 = arith.constant 0 : index
    %c0_34 = arith.constant 0 : index
    %67 = vector.load %arg10[%c0_33, %c0_34] : memref<32x1xf32, #tpu.memory_space<vmem>>, vector<32x1xf32>
    %68 = vector.broadcast %67 : vector<32x1xf32> to vector<32x256xf32>
    %69 = arith.addf %66, %68 : vector<32x256xf32>
    %cst_35 = arith.constant 0.000000e+00 : f32
    %70 = vector.broadcast %cst_35 : f32 to vector<32x256xf32>
    %71 = arith.maximumf %69, %70 : vector<32x256xf32>
    %c17_i32_36 = arith.constant 17 : i32
    %72 = tpu.dynamic_rotate %71 by %c17_i32_36 dim 1 : vector<32x256xf32>, i32 -> vector<32x256xf32>
    %73 = vector.broadcast %16 : vector<1x256xf32> to vector<32x256xf32>
    %74 = arith.mulf %72, %73 : vector<32x256xf32>
    %75 = arith.truncf %74 : vector<32x256xf32> to vector<32x256xbf16>
    %c16_i32_37 = arith.constant 16 : i32
    %76 = tpu.dynamic_rotate %71 by %c16_i32_37 dim 1 : vector<32x256xf32>, i32 -> vector<32x256xf32>
    %77 = vector.broadcast %18 : vector<1x256xf32> to vector<32x256xf32>
    %78 = arith.mulf %76, %77 : vector<32x256xf32>
    %79 = arith.truncf %78 : vector<32x256xf32> to vector<32x256xbf16>
    %c15_i32_38 = arith.constant 15 : i32
    %80 = tpu.dynamic_rotate %71 by %c15_i32_38 dim 1 : vector<32x256xf32>, i32 -> vector<32x256xf32>
    %81 = vector.broadcast %20 : vector<1x256xf32> to vector<32x256xf32>
    %82 = arith.mulf %80, %81 : vector<32x256xf32>
    %83 = arith.truncf %82 : vector<32x256xf32> to vector<32x256xbf16>
    %c1_i32_39 = arith.constant 1 : i32
    %84 = tpu.dynamic_rotate %71 by %c1_i32_39 dim 1 : vector<32x256xf32>, i32 -> vector<32x256xf32>
    %85 = vector.broadcast %22 : vector<1x256xf32> to vector<32x256xf32>
    %86 = arith.mulf %84, %85 : vector<32x256xf32>
    %87 = arith.truncf %86 : vector<32x256xf32> to vector<32x256xbf16>
    %88 = arith.truncf %71 : vector<32x256xf32> to vector<32x256xbf16>
    %c255_i32_40 = arith.constant 255 : i32
    %89 = tpu.dynamic_rotate %71 by %c255_i32_40 dim 1 : vector<32x256xf32>, i32 -> vector<32x256xf32>
    %90 = vector.broadcast %24 : vector<1x256xf32> to vector<32x256xf32>
    %91 = arith.mulf %89, %90 : vector<32x256xf32>
    %92 = arith.truncf %91 : vector<32x256xf32> to vector<32x256xbf16>
    %c241_i32_41 = arith.constant 241 : i32
    %93 = tpu.dynamic_rotate %71 by %c241_i32_41 dim 1 : vector<32x256xf32>, i32 -> vector<32x256xf32>
    %94 = vector.broadcast %26 : vector<1x256xf32> to vector<32x256xf32>
    %95 = arith.mulf %93, %94 : vector<32x256xf32>
    %96 = arith.truncf %95 : vector<32x256xf32> to vector<32x256xbf16>
    %c240_i32_42 = arith.constant 240 : i32
    %97 = tpu.dynamic_rotate %71 by %c240_i32_42 dim 1 : vector<32x256xf32>, i32 -> vector<32x256xf32>
    %98 = vector.broadcast %28 : vector<1x256xf32> to vector<32x256xf32>
    %99 = arith.mulf %97, %98 : vector<32x256xf32>
    %100 = arith.truncf %99 : vector<32x256xf32> to vector<32x256xbf16>
    %c239_i32_43 = arith.constant 239 : i32
    %101 = tpu.dynamic_rotate %71 by %c239_i32_43 dim 1 : vector<32x256xf32>, i32 -> vector<32x256xf32>
    %102 = vector.broadcast %30 : vector<1x256xf32> to vector<32x256xf32>
    %103 = arith.mulf %101, %102 : vector<32x256xf32>
    %104 = arith.truncf %103 : vector<32x256xf32> to vector<32x256xbf16>
    %105 = tpu.concatenate %75, %79, %83, %87, %88, %92, %96, %100, %104 in 0 : vector<32x256xbf16>, vector<32x256xbf16>, vector<32x256xbf16>, vector<32x256xbf16>, vector<32x256xbf16>, vector<32x256xbf16>, vector<32x256xbf16>, vector<32x256xbf16>, vector<32x256xbf16> -> vector<288x256xbf16>
    %c0_44 = arith.constant 0 : index
    %c0_45 = arith.constant 0 : index
    %106 = vector.load %arg7[%c0_44, %c0_45] : memref<32x288xbf16, #tpu.memory_space<vmem>>, vector<32x288xbf16>
    %cst_46 = arith.constant dense<0.000000e+00> : vector<32x256xf32>
    %107 = tpu.matmul %106, %105, %cst_46 {dimension_numbers = #tpu.dot_dimension_numbers<[1], [0], [0], [1], [0, 0, 1, 1], [], []>} : vector<32x288xbf16>, vector<288x256xbf16>, vector<32x256xf32> -> vector<32x256xf32>
    %c0_47 = arith.constant 0 : index
    %c0_48 = arith.constant 0 : index
    %108 = vector.load %arg11[%c0_47, %c0_48] : memref<32x1xf32, #tpu.memory_space<vmem>>, vector<32x1xf32>
    %109 = vector.broadcast %108 : vector<32x1xf32> to vector<32x256xf32>
    %110 = arith.addf %107, %109 : vector<32x256xf32>
    %cst_49 = arith.constant 0.000000e+00 : f32
    %111 = vector.broadcast %cst_49 : f32 to vector<32x256xf32>
    %112 = arith.maximumf %110, %111 : vector<32x256xf32>
    %c17_i32_50 = arith.constant 17 : i32
    %113 = tpu.dynamic_rotate %112 by %c17_i32_50 dim 1 : vector<32x256xf32>, i32 -> vector<32x256xf32>
    %114 = vector.broadcast %16 : vector<1x256xf32> to vector<32x256xf32>
    %115 = arith.mulf %113, %114 : vector<32x256xf32>
    %116 = arith.truncf %115 : vector<32x256xf32> to vector<32x256xbf16>
    %c16_i32_51 = arith.constant 16 : i32
    %117 = tpu.dynamic_rotate %112 by %c16_i32_51 dim 1 : vector<32x256xf32>, i32 -> vector<32x256xf32>
    %118 = vector.broadcast %18 : vector<1x256xf32> to vector<32x256xf32>
    %119 = arith.mulf %117, %118 : vector<32x256xf32>
    %120 = arith.truncf %119 : vector<32x256xf32> to vector<32x256xbf16>
    %c15_i32_52 = arith.constant 15 : i32
    %121 = tpu.dynamic_rotate %112 by %c15_i32_52 dim 1 : vector<32x256xf32>, i32 -> vector<32x256xf32>
    %122 = vector.broadcast %20 : vector<1x256xf32> to vector<32x256xf32>
    %123 = arith.mulf %121, %122 : vector<32x256xf32>
    %124 = arith.truncf %123 : vector<32x256xf32> to vector<32x256xbf16>
    %c1_i32_53 = arith.constant 1 : i32
    %125 = tpu.dynamic_rotate %112 by %c1_i32_53 dim 1 : vector<32x256xf32>, i32 -> vector<32x256xf32>
    %126 = vector.broadcast %22 : vector<1x256xf32> to vector<32x256xf32>
    %127 = arith.mulf %125, %126 : vector<32x256xf32>
    %128 = arith.truncf %127 : vector<32x256xf32> to vector<32x256xbf16>
    %129 = arith.truncf %112 : vector<32x256xf32> to vector<32x256xbf16>
    %c255_i32_54 = arith.constant 255 : i32
    %130 = tpu.dynamic_rotate %112 by %c255_i32_54 dim 1 : vector<32x256xf32>, i32 -> vector<32x256xf32>
    %131 = vector.broadcast %24 : vector<1x256xf32> to vector<32x256xf32>
    %132 = arith.mulf %130, %131 : vector<32x256xf32>
    %133 = arith.truncf %132 : vector<32x256xf32> to vector<32x256xbf16>
    %c241_i32_55 = arith.constant 241 : i32
    %134 = tpu.dynamic_rotate %112 by %c241_i32_55 dim 1 : vector<32x256xf32>, i32 -> vector<32x256xf32>
    %135 = vector.broadcast %26 : vector<1x256xf32> to vector<32x256xf32>
    %136 = arith.mulf %134, %135 : vector<32x256xf32>
    %137 = arith.truncf %136 : vector<32x256xf32> to vector<32x256xbf16>
    %c240_i32_56 = arith.constant 240 : i32
    %138 = tpu.dynamic_rotate %112 by %c240_i32_56 dim 1 : vector<32x256xf32>, i32 -> vector<32x256xf32>
    %139 = vector.broadcast %28 : vector<1x256xf32> to vector<32x256xf32>
    %140 = arith.mulf %138, %139 : vector<32x256xf32>
    %141 = arith.truncf %140 : vector<32x256xf32> to vector<32x256xbf16>
    %c239_i32_57 = arith.constant 239 : i32
    %142 = tpu.dynamic_rotate %112 by %c239_i32_57 dim 1 : vector<32x256xf32>, i32 -> vector<32x256xf32>
    %143 = vector.broadcast %30 : vector<1x256xf32> to vector<32x256xf32>
    %144 = arith.mulf %142, %143 : vector<32x256xf32>
    %145 = arith.truncf %144 : vector<32x256xf32> to vector<32x256xbf16>
    %146 = tpu.concatenate %116, %120, %124, %128, %129, %133, %137, %141, %145 in 0 : vector<32x256xbf16>, vector<32x256xbf16>, vector<32x256xbf16>, vector<32x256xbf16>, vector<32x256xbf16>, vector<32x256xbf16>, vector<32x256xbf16>, vector<32x256xbf16>, vector<32x256xbf16> -> vector<288x256xbf16>
    %c0_58 = arith.constant 0 : index
    %c0_59 = arith.constant 0 : index
    %147 = vector.load %arg8[%c0_58, %c0_59] : memref<32x288xbf16, #tpu.memory_space<vmem>>, vector<32x288xbf16>
    %cst_60 = arith.constant dense<0.000000e+00> : vector<32x256xf32>
    %148 = tpu.matmul %147, %146, %cst_60 {dimension_numbers = #tpu.dot_dimension_numbers<[1], [0], [0], [1], [0, 0, 1, 1], [], []>} : vector<32x288xbf16>, vector<288x256xbf16>, vector<32x256xf32> -> vector<32x256xf32>
    %c0_61 = arith.constant 0 : index
    %c0_62 = arith.constant 0 : index
    %149 = vector.load %arg12[%c0_61, %c0_62] : memref<32x1xf32, #tpu.memory_space<vmem>>, vector<32x1xf32>
    %150 = vector.broadcast %149 : vector<32x1xf32> to vector<32x256xf32>
    %151 = arith.addf %148, %150 : vector<32x256xf32>
    %cst_63 = arith.constant 0.000000e+00 : f32
    %152 = vector.broadcast %cst_63 : f32 to vector<32x256xf32>
    %153 = arith.maximumf %151, %152 : vector<32x256xf32>
    %c17_i32_64 = arith.constant 17 : i32
    %154 = tpu.dynamic_rotate %153 by %c17_i32_64 dim 1 : vector<32x256xf32>, i32 -> vector<32x256xf32>
    %155 = vector.broadcast %16 : vector<1x256xf32> to vector<32x256xf32>
    %156 = arith.mulf %154, %155 : vector<32x256xf32>
    %157 = arith.truncf %156 : vector<32x256xf32> to vector<32x256xbf16>
    %c16_i32_65 = arith.constant 16 : i32
    %158 = tpu.dynamic_rotate %153 by %c16_i32_65 dim 1 : vector<32x256xf32>, i32 -> vector<32x256xf32>
    %159 = vector.broadcast %18 : vector<1x256xf32> to vector<32x256xf32>
    %160 = arith.mulf %158, %159 : vector<32x256xf32>
    %161 = arith.truncf %160 : vector<32x256xf32> to vector<32x256xbf16>
    %c15_i32_66 = arith.constant 15 : i32
    %162 = tpu.dynamic_rotate %153 by %c15_i32_66 dim 1 : vector<32x256xf32>, i32 -> vector<32x256xf32>
    %163 = vector.broadcast %20 : vector<1x256xf32> to vector<32x256xf32>
    %164 = arith.mulf %162, %163 : vector<32x256xf32>
    %165 = arith.truncf %164 : vector<32x256xf32> to vector<32x256xbf16>
    %c1_i32_67 = arith.constant 1 : i32
    %166 = tpu.dynamic_rotate %153 by %c1_i32_67 dim 1 : vector<32x256xf32>, i32 -> vector<32x256xf32>
    %167 = vector.broadcast %22 : vector<1x256xf32> to vector<32x256xf32>
    %168 = arith.mulf %166, %167 : vector<32x256xf32>
    %169 = arith.truncf %168 : vector<32x256xf32> to vector<32x256xbf16>
    %170 = arith.truncf %153 : vector<32x256xf32> to vector<32x256xbf16>
    %c255_i32_68 = arith.constant 255 : i32
    %171 = tpu.dynamic_rotate %153 by %c255_i32_68 dim 1 : vector<32x256xf32>, i32 -> vector<32x256xf32>
    %172 = vector.broadcast %24 : vector<1x256xf32> to vector<32x256xf32>
    %173 = arith.mulf %171, %172 : vector<32x256xf32>
    %174 = arith.truncf %173 : vector<32x256xf32> to vector<32x256xbf16>
    %c241_i32_69 = arith.constant 241 : i32
    %175 = tpu.dynamic_rotate %153 by %c241_i32_69 dim 1 : vector<32x256xf32>, i32 -> vector<32x256xf32>
    %176 = vector.broadcast %26 : vector<1x256xf32> to vector<32x256xf32>
    %177 = arith.mulf %175, %176 : vector<32x256xf32>
    %178 = arith.truncf %177 : vector<32x256xf32> to vector<32x256xbf16>
    %c240_i32_70 = arith.constant 240 : i32
    %179 = tpu.dynamic_rotate %153 by %c240_i32_70 dim 1 : vector<32x256xf32>, i32 -> vector<32x256xf32>
    %180 = vector.broadcast %28 : vector<1x256xf32> to vector<32x256xf32>
    %181 = arith.mulf %179, %180 : vector<32x256xf32>
    %182 = arith.truncf %181 : vector<32x256xf32> to vector<32x256xbf16>
    %c239_i32_71 = arith.constant 239 : i32
    %183 = tpu.dynamic_rotate %153 by %c239_i32_71 dim 1 : vector<32x256xf32>, i32 -> vector<32x256xf32>
    %184 = vector.broadcast %30 : vector<1x256xf32> to vector<32x256xf32>
    %185 = arith.mulf %183, %184 : vector<32x256xf32>
    %186 = arith.truncf %185 : vector<32x256xf32> to vector<32x256xbf16>
    %187 = tpu.concatenate %157, %161, %165, %169, %170, %174, %178, %182, %186 in 0 : vector<32x256xbf16>, vector<32x256xbf16>, vector<32x256xbf16>, vector<32x256xbf16>, vector<32x256xbf16>, vector<32x256xbf16>, vector<32x256xbf16>, vector<32x256xbf16>, vector<32x256xbf16> -> vector<288x256xbf16>
    %c0_72 = arith.constant 0 : index
    %c0_73 = arith.constant 0 : index
    %188 = vector.load %arg9[%c0_72, %c0_73] : memref<1x288xbf16, #tpu.memory_space<vmem>>, vector<1x288xbf16>
    %cst_74 = arith.constant dense<0.000000e+00> : vector<1x256xf32>
    %189 = tpu.matmul %188, %187, %cst_74 {dimension_numbers = #tpu.dot_dimension_numbers<[1], [0], [0], [1], [0, 0, 1, 1], [], []>} : vector<1x288xbf16>, vector<288x256xbf16>, vector<1x256xf32> -> vector<1x256xf32>
    %c0_75 = arith.constant 0 : index
    %c0_76 = arith.constant 0 : index
    %190 = vector.load %arg13[%c0_75, %c0_76] : memref<1x1xf32, #tpu.memory_space<vmem>>, vector<1x1xf32>
    %191 = vector.broadcast %190 : vector<1x1xf32> to vector<1x256xf32>
    %192 = arith.addf %189, %191 : vector<1x256xf32>
    %c0_77 = arith.constant 0 : index
    %c0_78 = arith.constant 0 : index
    %193 = memref.load %arg14[%c0_77, %c0_78] : memref<1x1xf32, #tpu.memory_space<smem>>
    %194 = arith.addf %8, %3 : vector<1x256xf32>
    %195 = arith.addf %194, %192 : vector<1x256xf32>
    %196 = vector.broadcast %193 : f32 to vector<1x256xf32>
    %197 = arith.mulf %196, %195 : vector<1x256xf32>
    %198 = arith.subf %3, %197 : vector<1x256xf32>
    %c0_79 = arith.constant 0 : index
    %c0_80 = arith.constant 0 : index
    %199 = vector.load %arg16[%c0_79, %c0_80] : memref<1x256xf32, #tpu.memory_space<vmem>>, vector<1x256xf32>
    tpu.vector_store %arg16[%c0_79, %c0_80], %198 {strides = array<i32>} : memref<1x256xf32, #tpu.memory_space<vmem>>, vector<1x256xf32>,
    %c0_81 = arith.constant 0 : index
    %c0_82 = arith.constant 0 : index
    %200 = vector.load %arg17[%c0_81, %c0_82] : memref<1x256xf32, #tpu.memory_space<vmem>>, vector<1x256xf32>
    tpu.vector_store %arg17[%c0_81, %c0_82], %8 {strides = array<i32>} : memref<1x256xf32, #tpu.memory_space<vmem>>, vector<1x256xf32>,
    %c0_83 = arith.constant 0 : index
    %c0_84 = arith.constant 0 : index
    %201 = vector.load %arg18[%c0_83, %c0_84] : memref<1x256xf32, #tpu.memory_space<vmem>>, vector<1x256xf32>
    tpu.vector_store %arg18[%c0_83, %c0_84], %3 {strides = array<i32>} : memref<1x256xf32, #tpu.memory_space<vmem>>, vector<1x256xf32>,
    %202 = vector.shape_cast %198 : vector<1x256xf32> to vector<1x1x1x256xf32>
    %c0_85 = arith.constant 0 : index
    %c0_86 = arith.constant 0 : index
    %c0_87 = arith.constant 0 : index
    %c0_88 = arith.constant 0 : index
    %203 = vector.load %arg15[%c0_85, %c0_86, %c0_87, %c0_88] : memref<1x1x1x256xf32, #tpu.memory_space<vmem>>, vector<1x1x1x256xf32>
    tpu.vector_store %arg15[%c0_85, %c0_86, %c0_87, %c0_88], %202 {strides = array<i32>} : memref<1x1x1x256xf32, #tpu.memory_space<vmem>>, vector<1x1x1x256xf32>,
    return
  }
  func.func @transform_0(%arg0: i32, %arg1: i32) -> (i32, i32, i32) {
    %c0_i32 = arith.constant 0 : i32
    %c0_i32_0 = arith.constant 0 : i32
    %c0_i32_1 = arith.constant 0 : i32
    return %arg0, %c0_i32, %c0_i32_0 : i32, i32, i32
  }
  func.func @transform_1(%arg0: i32, %arg1: i32) -> (i32, i32, i32) {
    %c0_i32 = arith.constant 0 : i32
    %c0_i32_0 = arith.constant 0 : i32
    %c0_i32_1 = arith.constant 0 : i32
    return %arg0, %c0_i32, %c0_i32_0 : i32, i32, i32
  }
  func.func @transform_2(%arg0: i32, %arg1: i32) -> (i32, i32) {
    %c0_i32 = arith.constant 0 : i32
    %c0_i32_0 = arith.constant 0 : i32
    %c0_i32_1 = arith.constant 0 : i32
    return %c0_i32, %c0_i32_0 : i32, i32
  }
  func.func @transform_3(%arg0: i32, %arg1: i32) -> (i32, i32, i32) {
    %c0_i32 = arith.constant 0 : i32
    %c0_i32_0 = arith.constant 0 : i32
    %c0_i32_1 = arith.constant 0 : i32
    %c0_i32_2 = arith.constant 0 : i32
    return %c0_i32, %c0_i32_0, %c0_i32_1 : i32, i32, i32
  }
  func.func @transform_4(%arg0: i32, %arg1: i32) -> (i32, i32) {
    %c0_i32 = arith.constant 0 : i32
    %c0_i32_0 = arith.constant 0 : i32
    %c0_i32_1 = arith.constant 0 : i32
    return %c0_i32, %c0_i32_0 : i32, i32
  }
  func.func @transform_5(%arg0: i32, %arg1: i32) -> (i32, i32) {
    %c0_i32 = arith.constant 0 : i32
    %c0_i32_0 = arith.constant 0 : i32
    %c0_i32_1 = arith.constant 0 : i32
    return %c0_i32, %c0_i32_0 : i32, i32
  }
  func.func @transform_6(%arg0: i32, %arg1: i32) -> (i32, i32) {
    %c0_i32 = arith.constant 0 : i32
    %c0_i32_0 = arith.constant 0 : i32
    %c0_i32_1 = arith.constant 0 : i32
    return %c0_i32, %c0_i32_0 : i32, i32
  }
  func.func @transform_7(%arg0: i32, %arg1: i32) -> (i32, i32) {
    %c0_i32 = arith.constant 0 : i32
    %c0_i32_0 = arith.constant 0 : i32
    %c0_i32_1 = arith.constant 0 : i32
    return %c0_i32, %c0_i32_0 : i32, i32
  }
  func.func @transform_8(%arg0: i32, %arg1: i32) -> (i32, i32) {
    %c0_i32 = arith.constant 0 : i32
    %c0_i32_0 = arith.constant 0 : i32
    %c0_i32_1 = arith.constant 0 : i32
    return %c0_i32, %c0_i32_0 : i32, i32
  }
  func.func @transform_9(%arg0: i32, %arg1: i32) -> (i32, i32) {
    %c0_i32 = arith.constant 0 : i32
    %c0_i32_0 = arith.constant 0 : i32
    %c0_i32_1 = arith.constant 0 : i32
    return %c0_i32, %c0_i32_0 : i32, i32
  }
  func.func @transform_10(%arg0: i32, %arg1: i32) -> (i32, i32) {
    %c0_i32 = arith.constant 0 : i32
    %c0_i32_0 = arith.constant 0 : i32
    %c0_i32_1 = arith.constant 0 : i32
    return %c0_i32, %c0_i32_0 : i32, i32
  }
  func.func @transform_11(%arg0: i32, %arg1: i32) -> (i32, i32) {
    %c0_i32 = arith.constant 0 : i32
    %c0_i32_0 = arith.constant 0 : i32
    %c0_i32_1 = arith.constant 0 : i32
    return %c0_i32, %c0_i32_0 : i32, i32
  }
  func.func @transform_12(%arg0: i32, %arg1: i32) -> (i32, i32) {
    %c0_i32 = arith.constant 0 : i32
    %c0_i32_0 = arith.constant 0 : i32
    %c0_i32_1 = arith.constant 0 : i32
    return %c0_i32, %c0_i32_0 : i32, i32
  }
  func.func @transform_13(%arg0: i32, %arg1: i32) -> (i32, i32, i32, i32) {
    %c0_i32 = arith.constant 0 : i32
    %c0_i32_0 = arith.constant 0 : i32
    %c0_i32_1 = arith.constant 0 : i32
    return %arg1, %arg0, %c0_i32, %c0_i32_0 : i32, i32, i32, i32
  }
}

</mosaic_0001>

<bundles_post_ra>
// kernel: squeeze.9
= control target key start
LH: loop header
LB: loop body
LE: loop exit
PB: predicated region body
PF: predicated region fallthrough
CT: control target
= control target key end

     0   :  { %s149_s0 = inlined_call_operand.vmem [shape: f32[2,256], index: 0, kind: input, shape index: {}]   ;;  %s150_s1 = inlined_call_operand.hbm [shape: f32[2,1,16,16], index: 1, kind: output, shape index: {}]  }
   0x1   :  { %v71_v0 = vld [vmem:[%s149_s0 + $0x2] sm:$0x3]  ;;  %v9_v1 = vld [vmem:[%s149_s0] sm:$0x3] }
   0x2   :  { %8 = vst [vmem:[#allocation2 + $0x8] sm:$0x3] %v71_v0  ;;  %10 = vst [vmem:[#allocation2] sm:$0x3] %v9_v1 }
   0x3   :  { %2 = vsyncpa [#allocation1], 0  ;;  %vm12_vm0 = vcmask 130048   ;;  %s104_s0 = smov 112   ;;  %s105_s10 = smov 80  }
   0x4   :  { %s106_s11 = smov 96   ;;  %s107_s12 = smov 64  }
   0x5   :  { %s108_s13 = smov 48   ;;  %s109_s14 = smov 32  }
   0x6   :  { %s110_s15 = smov 16   ;;  %s111_s16 = smov [#allocation0]  }
   0x7   :  { %s65_s17 = sshll.u32 %s111_s16, 4  ;;  %s66_s17 = int_to_ptr.vmem [resolvable:$true] %s65_s17 }
   0x8   :  { %s80_s18 = scalar_lea.vmem %s66_s17, 512  ;;  %p85_p1 = scmp.lt.s32.totalorder %s66_s17, %s66_s17 }
   0x9   :  { %v19_v2 = vld.sshfl [vmem:[#allocation2] sm:$0xff pattern:$0x99999180]   ;;  %p81_p0 = scmp.ne.s32.totalorder %s66_s17, %s80_s18  ;;  %p86_p2 = scmp.lt.s32.totalorder %s80_s18, %s80_s18 }
   0xa   :  { %v11_v3 = vld [vmem:[#allocation2] sm:$0x3]   ;;  %20 = vrot.lane.b32.xlu0 %v19_v2, %s104_s0  ;;  %32 = vrot.lane.b32.xlu1 %v19_v2, %s105_s10  ;;  %v15_v4 = vld [vmem:[#allocation2 + $0x8] sm:$0x3]  }
   0xb   :  { %13 = vst.msk [vmem:[#allocation0] ss:$16 sm:$0x3] %vm12_vm0, %v11_v3   ;;  %18 = vst.msk [vmem:[#allocation0 + $0x8] ss:$16 sm:$0x3] %vm12_vm0, %v15_v4   ;;  %p87_p3 = por %p86_p2, %p85_p1 }
   0xd   :  { %p88_p4 = pnand %p87_p3, %p81_p0 }
   0xe   :  { %26 = vrot.lane.b32.xlu0 %v19_v2, %s106_s11  ;;  %38 = vrot.lane.b32.xlu1 %v19_v2, %s107_s12 }
  0x12   :  { %44 = vrot.lane.b32.xlu0 %v19_v2, %s108_s13  ;;  %50 = vrot.lane.b32.xlu1 %v19_v2, %s109_s14 }
  0x16   :  { %56 = vrot.lane.b32.xlu0 %v19_v2, %s110_s15 }
  0x7c   :  { %v21_v5 = vpop.permute.xlu0 %20   ;;  %v33_v6 = vpop.permute.xlu1 %32  }
  0x7d   :  { %24 = vst.msk [vmem:[#allocation0 + $0x1] ss:$8 sm:$0xf] %vm12_vm0, %v21_v5   ;;  %36 = vst.msk [vmem:[#allocation0 + $0x3] ss:$8 sm:$0xf] %vm12_vm0, %v33_v6  }
  0x80   :  { %v27_v7 = vpop.permute.xlu0 %26   ;;  %v39_v8 = vpop.permute.xlu1 %38  }
  0x81   :  { %30 = vst.msk [vmem:[#allocation0 + $0x2] ss:$8 sm:$0xf] %vm12_vm0, %v27_v7   ;;  %42 = vst.msk [vmem:[#allocation0 + $0x4] ss:$8 sm:$0xf] %vm12_vm0, %v39_v8  }
  0x84   :  { %v45_v9 = vpop.permute.xlu0 %44   ;;  %v51_v10 = vpop.permute.xlu1 %50  }
  0x85   :  { %48 = vst.msk [vmem:[#allocation0 + $0x5] ss:$8 sm:$0xf] %vm12_vm0, %v45_v9   ;;  %54 = vst.msk [vmem:[#allocation0 + $0x6] ss:$8 sm:$0xf] %vm12_vm0, %v51_v10  }
  0x88   :  { %v57_v11 = vpop.permute.xlu0 %56  }
  0x89   :  { %60 = vst.msk [vmem:[#allocation0 + $0x7] ss:$8 sm:$0xf] %vm12_vm0, %v57_v11  }
  0x8a   :  { %91 = shalt.err (!%p88_p4)
}
  0x8b   :  { %s92_s21 = scalar_lea.hbm %s150_s1, 512 }
  0x8c   :  { %p93_p5 = scmp.ne.s32.totalorder %s150_s1, %s92_s21  ;;  %p96_p6 = scmp.lt.u32.totalorder %s92_s21, %s150_s1 }
  0x8e   :  { %p98_p7 = pnand %p96_p6, %p93_p5 }
  0x90   :  { %101 = shalt.err (!%p98_p7)
}
  0x91   :  { %68 = dma.vmem_to_hbm [thread:$0]  %s66_s17, 512, %s150_s1, [#allocation1]  }
  0x92   :  { %102 = dma.done.wait [#allocation1], 512  }
  0x93   :  { %103 = vsyncadd [#allocation1], 4294966784 }
  0x94   :  { %70 = vsyncpa [#allocation1], 1 }

// kernel: _lgd2_forward_jit.1
= control target key start
LH: loop header
LB: loop body
LE: loop exit
PB: predicated region body
PF: predicated region fallthrough
CT: control target
= control target key end

     0   :  { %s2924_s29 = smov 0   ;;  %s2926_s30 = smov 0   ;;  %s4840_s0 = inlined_call_operand.vmem [shape: f32[2,1,256], index: 0, kind: input, shape index: {}]   ;;  %s4841_s1 = inlined_call_operand.vmem [shape: f32[2,1,256], index: 1, kind: input, shape index: {}]   ;;  %s4842_s2 = inlined_call_operand.vmem [shape: f32[256,256], index: 2, kind: input, shape index: {}]   ;;  %s4843_s3 = inlined_call_operand.vmem [shape: f32[9,1,256], index: 3, kind: input, shape index: {}]   ;;  %s4844_s4 = inlined_call_operand.vmem [shape: bf16[32,36], index: 4, kind: input, shape index: {}]   ;;  %s4845_s5 = inlined_call_operand.vmem [shape: bf16[32,288], index: 5, kind: input, shape index: {}]   ;;  %s4846_s6 = inlined_call_operand.vmem [shape: bf16[32,288], index: 6, kind: input, shape index: {}]   ;;  %s4847_s7 = inlined_call_operand.vmem [shape: bf16[1,288], index: 7, kind: input, shape index: {}]   ;;  %s4848_s8 = inlined_call_operand.vmem [shape: f32[32,1], index: 8, kind: input, shape index: {}]   ;;  %s4849_s9 = inlined_call_operand.vmem [shape: f32[32,1], index: 9, kind: input, shape index: {}]   ;;  %s4850_s10 = inlined_call_operand.vmem [shape: f32[32,1], index: 10, kind: input, shape index: {}]   ;;  %s4851_s11 = inlined_call_operand.<no memory space> [shape: f32[1,1], index: 11, kind: input, shape index: {}]   ;;  %s4852_s12 = inlined_call_operand.<no memory space> [shape: f32[1,1], index: 12, kind: input, shape index: {}]   ;;  %s4853_s13 = inlined_call_operand.vmem [shape: f32[3,2,1,256], index: 13, kind: output, shape index: {}]  }
   0x1   :  { %v18_v0 = vstv %s4851_s11  ;;  %20 = sst [smem:[#allocation6]] %s4852_s12  ;;  %s2928_s14 = smov 0  }
   0x2   :  { %19 = vst [vmem:[#allocation5] sm:$0x1] %v18_v0  ;;  %s2930_s15 = smov 0   ;;  %s2932_s16 = smov 0  }
   0x3 LB: > { %s35_s11 = sadd.s32 1, %s2827_s14  ;;  %s38_s12 = sadd.s32 1, %s2831_s15  ;;  %s2835_s16 = sphi %s2932_s16, %s26_s16   ;;  %s2831_s15 = sphi %s2930_s15, %s4920_s15   ;;  %s2827_s14 = sphi %s2928_s14, %s4919_s14   ;;  %s2823_s30 = sphi %s2926_s30, %s4918_s30   ;;  %s2819_s29 = sphi %s2924_s29, %s4917_s29  }
   0x4   : > { %p36_p0 = scmp.ge.s32.totalorder %s35_s11, 3  ;;  %p2591_p1 = scmp.ge.s32.totalorder %s2835_s16, 1 }
   0x5   : > { %p412_p2 = scmp.lt.s32.totalorder %s2835_s16, 7 }
   0x6   : > { %s4922_s11 = smov (%p36_p0, %s35_s11), 0  ;;  %s4924_s12 = smov (!%p36_p0, %s38_s12), %s2831_s15 }
   0x7   : > { %p413_p3 = pnand %p2591_p1, %p412_p2  ;;  %p40_p4 = scmp.ge.s32.totalorder %s4924_s12, 2 }
   0x9   : > { %s4926_s12 = smov (%p40_p4, %s4924_s12), 0  ;;  %416 = sbr.rel (%p413_p3) target bundleno = 2108 (0x83c), region = 72 }
  0x10   : > { %p462_p5 = scmp.lt.s32.totalorder %s2823_s30, 1  ;;  %p470_p6 = scmp.lt.s32.totalorder %s2819_s29, 2 }
  0x11   : > { %p2596_p7 = scmp.ne.s32.totalorder %s2819_s29, 0 }
  0x12   : > { %s4928_s30 = smov (!%p462_p5, %s2823_s30), 1  ;;  %v484_v2 = vlaneseq (!%p2596_p7) }
  0x13   : > { %s471_s17 = scalar_select %p470_p6, %s2819_s29, 2 }
  0x14   : > { %s2958_s18 = sshll.u32 %s4928_s30, 1  ;;  %482 = sbr.rel (%p2596_p7) target bundleno = 27 (0x1b), region = 76  ;;  %vm486_vm0 = vcmp.lt.s32.totalorder (!%p2596_p7), %v484_v2, 256 }
  0x15   : > { %s465_s21 = scalar_lea.vmem %s4840_s0, %s2958_s18  ;;  %s2595_s25 = sshll.u32 %s471_s17, 2 }
  0x16   : > { %s2969_s26 = sadd.s32 %s2595_s25, %s2958_s18  ;;  %v483_v1 = vld [vmem:[%s465_s21] sm:$0x3] (!%p2596_p7) }
  0x17   : > { %488 = vst.msk [vmem:[#allocation2] sm:$0x3] (!%p2596_p7), %vm486_vm0, %v483_v1 }
  0x1b PF: > { %v491_v3 = vld [vmem:[%s4842_s2 + $0x8] sm:$0xff]  ;;  %v493_v4 = vld [vmem:[%s4842_s2 + $0x18] sm:$0xff]  ;;  %v490_v5 = vld [vmem:[%s4842_s2] sm:$0xff]  ;;  %v4862_v28 = vlaneseq  ;;  %s4885_s24 = scalar_lea.vmem %s4841_s1, %s2958_s18 }
  0x1c   : > { %v2630_v6 = vpack.c.bf16 %v493_v4, %v491_v3  ;;  %v492_v7 = vld [vmem:[%s4842_s2 + $0x10] sm:$0xff]  ;;  %v495_v8 = vld [vmem:[%s4842_s2 + $0x28] sm:$0xff]  ;;  %v497_v9 = vld [vmem:[%s4842_s2 + $0x38] sm:$0xff] }
  0x1d   : > { %v2632_v10 = vpack.c.bf16 %v492_v7, %v490_v5  ;;  %v2634_v11 = vpack.c.bf16 %v497_v9, %v495_v8  ;;  %v494_v12 = vld [vmem:[%s4842_s2 + $0x20] sm:$0xff]  ;;  %v496_v13 = vld [vmem:[%s4842_s2 + $0x30] sm:$0xff]  ;;  %v499_v14 = vld [vmem:[%s4842_s2 + $0x48] sm:$0xff]  ;;  %v3045_v35 = vshrl.u32 %v4862_v28, 7  ;;  %vm673_vm1 = vcmp.lt.s32.totalorder (!%p2596_p7), %v4862_v28, 256 }
  0x1e   : > { %2631 = vmatprep.subr.bf16.mxu0 %v2630_v6  ;;  %v501_v15 = vld [vmem:[%s4842_s2 + $0x58] sm:$0xff]  ;;  %v2636_v16 = vpack.c.bf16 %v496_v13, %v494_v12  ;;  %v498_v18 = vld [vmem:[%s4842_s2 + $0x40] sm:$0xff]  ;;  %v500_v19 = vld [vmem:[%s4842_s2 + $0x50] sm:$0xff] }
  0x1f   : > { %2633 = vmatpush1.bf16.msra.mxu0 %v2632_v10  ;;  %v2638_v17 = vpack.c.bf16 %v501_v15, %v499_v14  ;;  %v503_v20 = vld [vmem:[%s4842_s2 + $0x68] sm:$0xff]  ;;  %v505_v21 = vld [vmem:[%s4842_s2 + $0x78] sm:$0xff]  ;;  %v2640_v22 = vpack.c.bf16 %v500_v19, %v498_v18  ;;  %v502_v24 = vld [vmem:[%s4842_s2 + $0x60] sm:$0xff]  ;;  %v3060_v42 = vsub.s32 1, %v3045_v35 }
  0x20   : > { %2635 = vmatprep.subr.bf16.mxu0 %v2634_v11  ;;  %v2642_v23 = vpack.c.bf16 %v505_v21, %v503_v20  ;;  %v504_v25 = vld [vmem:[%s4842_s2 + $0x70] sm:$0xff]  ;;  %v507_v26 = vld [vmem:[%s4842_s2 + $0x88] sm:$0xff]  ;;  %v509_v27 = vld [vmem:[%s4842_s2 + $0x98] sm:$0xff] }
  0x21   : > { %v2644_v29 = vpack.c.bf16 %v504_v25, %v502_v24  ;;  %v2646_v30 = vpack.c.bf16 %v509_v27, %v507_v26  ;;  %v506_v31 = vld [vmem:[%s4842_s2 + $0x80] sm:$0xff]  ;;  %v508_v32 = vld [vmem:[%s4842_s2 + $0x90] sm:$0xff]  ;;  %v511_v33 = vld [vmem:[%s4842_s2 + $0xa8] sm:$0xff] }
  0x22   : > { %v513_v34 = vld [vmem:[%s4842_s2 + $0xb8] sm:$0xff]  ;;  %v2648_v36 = vpack.c.bf16 %v508_v32, %v506_v31  ;;  %v510_v38 = vld [vmem:[%s4842_s2 + $0xa0] sm:$0xff]  ;;  %v512_v39 = vld [vmem:[%s4842_s2 + $0xb0] sm:$0xff] }
  0x23   : > { %2637 = vmatpush1.bf16.msra.mxu0 %v2636_v16  ;;  %v2650_v37 = vpack.c.bf16 %v513_v34, %v511_v33  ;;  %v515_v40 = vld [vmem:[%s4842_s2 + $0xc8] sm:$0xff]  ;;  %v517_v41 = vld [vmem:[%s4842_s2 + $0xd8] sm:$0xff]  ;;  %v2652_v43 = vpack.c.bf16 %v512_v39, %v510_v38  ;;  %v514_v45 = vld [vmem:[%s4842_s2 + $0xc0] sm:$0xff] }
  0x24   : > { %2639 = vmatprep.subr.bf16.mxu0 %v2638_v17  ;;  %v2654_v44 = vpack.c.bf16 %v517_v41, %v515_v40  ;;  %v516_v46 = vld [vmem:[%s4842_s2 + $0xd0] sm:$0xff]  ;;  %v3068_v47 = vld [vmem:[#allocation2] sm:$0x3]  ;;  %v519_v48 = vld [vmem:[%s4842_s2 + $0xe8] sm:$0xff]  ;;  %v3184_v41 = vsub.s32 0, %v3045_v35 }
  0x25   : > { %4881 = vst [vmem:[#allocation7_spill] sm:$0xff] %v3068_v47  ;;  %v521_v49 = vld [vmem:[%s4842_s2 + $0xf8] sm:$0xff]  ;;  %v3078_v50 = vrot.slane %v3068_v47, %v3060_v42  ;;  %v2656_v51 = vpack.c.bf16 %v516_v46, %v514_v45  ;;  %v518_v53 = vld [vmem:[%s4842_s2 + $0xe0] sm:$0xff]  ;;  %v520_v54 = vld [vmem:[%s4842_s2 + $0xf0] sm:$0xff] }
  0x26   : > { %v2658_v52 = vpack.c.bf16 %v521_v49, %v519_v48  ;;  %v523_v55 = vld [vmem:[%s4842_s2 + $0x108] sm:$0xff]  ;;  %v525_v56 = vld [vmem:[%s4842_s2 + $0x118] sm:$0xff]  ;;  %v2660_v57 = vpack.c.bf16 %v520_v54, %v518_v53  ;;  %v522_v59 = vld [vmem:[%s4842_s2 + $0x100] sm:$0xff]  ;;  %4883 = vst [vmem:[#allocation9_spill] sm:$0xff] %v3184_v41  ;;  %v2837_v54 = vmov (!%p2596_p7), 1966171168  }
  0x27   : > { %2641 = vmatpush1.bf16.msra.mxu0 %v2640_v22  ;;  %4882 = vst [vmem:[#allocation8_spill] sm:$0xff] %v3078_v50  ;;  %629 = vmatprep.mubr.f32.mxu0 %v3078_v50  ;;  %v2662_v58 = vpack.c.bf16 %v525_v56, %v523_v55  ;;  %v524_v60 = vld [vmem:[%s4842_s2 + $0x110] sm:$0xff]  ;;  %v527_v61 = vld [vmem:[%s4842_s2 + $0x128] sm:$0xff]  ;;  %v529_v62 = vld [vmem:[%s4842_s2 + $0x138] sm:$0xff]  ;;  %v657_v55 = vunpack.c.l.s4 (!%p2596_p7), %v2837_v54 }
  0x28   : > { %2643 = vmatprep.subr.bf16.mxu0 %v2642_v23  ;;  %v2664_v63 = vpack.c.bf16 %v524_v60, %v522_v59  ;;  %v2666_v0 = vpack.c.bf16 %v529_v62, %v527_v61  ;;  %v526_v1 = vld [vmem:[%s4842_s2 + $0x120] sm:$0xff]  ;;  %v528_v2 = vld [vmem:[%s4842_s2 + $0x130] sm:$0xff]  ;;  %v531_v3 = vld [vmem:[%s4842_s2 + $0x148] sm:$0xff]  ;;  %676 = vst.msk [vmem:[#allocation4] sm:$0x3] (!%p2596_p7), %vm673_vm1, %v3068_v47 }
  0x29   : > { %v533_v4 = vld [vmem:[%s4842_s2 + $0x158] sm:$0xff]  ;;  %v2668_v5 = vpack.c.bf16 %v528_v2, %v526_v1  ;;  %v530_v7 = vld [vmem:[%s4842_s2 + $0x140] sm:$0xff]  ;;  %v532_v8 = vld [vmem:[%s4842_s2 + $0x150] sm:$0xff] }
  0x2a   : > { %v2670_v6 = vpack.c.bf16 %v533_v4, %v531_v3  ;;  %v535_v9 = vld [vmem:[%s4842_s2 + $0x168] sm:$0xff]  ;;  %v537_v10 = vld [vmem:[%s4842_s2 + $0x178] sm:$0xff]  ;;  %v2672_v11 = vpack.c.bf16 %v532_v8, %v530_v7  ;;  %v534_v13 = vld [vmem:[%s4842_s2 + $0x160] sm:$0xff] }
  0x2b   : > { %2645 = vmatpush1.bf16.msra.mxu0 %v2644_v29  ;;  %v2674_v12 = vpack.c.bf16 %v537_v10, %v535_v9  ;;  %v536_v14 = vld [vmem:[%s4842_s2 + $0x170] sm:$0xff]  ;;  %v539_v15 = vld [vmem:[%s4842_s2 + $0x188] sm:$0xff]  ;;  %v541_v16 = vld [vmem:[%s4842_s2 + $0x198] sm:$0xff] }
  0x2c   : > { %2647 = vmatprep.subr.bf16.mxu0 %v2646_v30  ;;  %v2676_v17 = vpack.c.bf16 %v536_v14, %v534_v13  ;;  %v2678_v18 = vpack.c.bf16 %v541_v16, %v539_v15  ;;  %v538_v19 = vld [vmem:[%s4842_s2 + $0x180] sm:$0xff]  ;;  %v540_v20 = vld [vmem:[%s4842_s2 + $0x190] sm:$0xff]  ;;  %v543_v21 = vld [vmem:[%s4842_s2 + $0x1a8] sm:$0xff] }
  0x2d   : > { %v545_v22 = vld [vmem:[%s4842_s2 + $0x1b8] sm:$0xff]  ;;  %v2680_v23 = vpack.c.bf16 %v540_v20, %v538_v19  ;;  %v542_v25 = vld [vmem:[%s4842_s2 + $0x1a0] sm:$0xff]  ;;  %v544_v26 = vld [vmem:[%s4842_s2 + $0x1b0] sm:$0xff] }
  0x2e   : > { %v2682_v24 = vpack.c.bf16 %v545_v22, %v543_v21  ;;  %v547_v27 = vld [vmem:[%s4842_s2 + $0x1c8] sm:$0xff]  ;;  %v549_v29 = vld [vmem:[%s4842_s2 + $0x1d8] sm:$0xff]  ;;  %v2684_v30 = vpack.c.bf16 %v544_v26, %v542_v25  ;;  %v546_v32 = vld [vmem:[%s4842_s2 + $0x1c0] sm:$0xff] }
  0x2f   : > { %2649 = vmatpush1.bf16.msra.mxu0 %v2648_v36  ;;  %v2686_v31 = vpack.c.bf16 %v549_v29, %v547_v27  ;;  %v548_v33 = vld [vmem:[%s4842_s2 + $0x1d0] sm:$0xff]  ;;  %v551_v34 = vld [vmem:[%s4842_s2 + $0x1e8] sm:$0xff]  ;;  %v553_v36 = vld [vmem:[%s4842_s2 + $0x1f8] sm:$0xff] }
  0x30   : > { %2651 = vmatprep.subr.bf16.mxu0 %v2650_v37  ;;  %v2688_v37 = vpack.c.bf16 %v548_v33, %v546_v32  ;;  %v2690_v38 = vpack.c.bf16 %v553_v36, %v551_v34  ;;  %v550_v39 = vld [vmem:[%s4842_s2 + $0x1e0] sm:$0xff]  ;;  %v552_v40 = vld [vmem:[%s4842_s2 + $0x1f0] sm:$0xff] }
  0x31   : > { %v636_v45 = vld [vmem:[%s4885_s24] sm:$0x3] }
  0x32   : > { %v641_v46 = vrot.slane %v636_v45, %v3184_v41  ;;  %v645_v48 = vrot.slane %v636_v45, %v3060_v42 }
  0x33   : > { %2653 = vmatpush1.bf16.msra.mxu0 %v2652_v43  ;;  %v2692_v43 = vpack.c.bf16 %v552_v40, %v550_v39 }
  0x34   : > { %2655 = vmatprep.subr.bf16.mxu0 %v2654_v44  ;;  %v3188_v44 = vrot.slane %v3068_v47, %v3184_v41 }
  0x36   : > { %4884 = vst [vmem:[#allocation10_spill] sm:$0xff] %v3188_v44 }
  0x37   : > { %2657 = vmatpush1.bf16.msra.mxu0 %v2656_v51 }
  0x38   : > { %2659 = vmatprep.subr.bf16.mxu0 %v2658_v52 }
  0x3b   : > { %2661 = vmatpush1.bf16.msra.mxu0 %v2660_v57  ;;  %v658_v57 = vunpack.c.0.s8 (!%p2596_p7), %v657_v55 }
  0x3c   : > { %2663 = vmatprep.subr.bf16.mxu0 %v2662_v58 }
  0x3d   : > { %v661_v58 = vsub.s32 (!%p2596_p7), %v658_v57, %v3045_v35 }
  0x3f   : > { %2665 = vmatpush1.bf16.msra.mxu0 %v2664_v63 }
  0x40   : > { %2667 = vmatprep.subr.bf16.mxu0 %v2666_v0 }
  0x43   : > { %2669 = vmatpush1.bf16.msra.mxu0 %v2668_v5 }
  0x44   : > { %2671 = vmatprep.subr.bf16.mxu0 %v2670_v6 }
  0x47   : > { %2673 = vmatpush1.bf16.msra.mxu0 %v2672_v11 }
  0x48   : > { %2675 = vmatprep.subr.bf16.mxu0 %v2674_v12 }
  0x4b   : > { %2677 = vmatpush1.bf16.msra.mxu0 %v2676_v17 }
  0x4c   : > { %2679 = vmatprep.subr.bf16.mxu0 %v2678_v18 }
  0x4f   : > { %2681 = vmatpush1.bf16.msra.mxu0 %v2680_v23 }
  0x50   : > { %2683 = vmatprep.subr.bf16.mxu0 %v2682_v24 }
  0x53   : > { %2685 = vmatpush1.bf16.msra.mxu0 %v2684_v30 }
  0x54   : > { %2687 = vmatprep.subr.bf16.mxu0 %v2686_v31 }
  0x57   : > { %2689 = vmatpush1.bf16.msra.mxu0 %v2688_v37 }
  0x58   : > { %2691 = vmatprep.subr.bf16.mxu0 %v2690_v38 }
  0x5b   : > { %2693 = vmatpush1.bf16.msra.mxu0 %v2692_v43 }
  0x5e   : > { %630 = vmatmul.mubr.f32.vlgmr.msra.gmra.mrb[0].mxu0 %v3188_v44 }
 0x12f   : > { %652 = sbr.rel (%p2596_p7) target bundleno = 316 (0x13c), region = 80 }
 0x131   : > { %v631_v49 = vpop.f32.mrb[0].mxu0 }
 0x132   : > { %v3198_v51 = vsub.f32 %v631_v49, %v641_v46  ;;  %v633_v52 = vpop.f32.mrb[1].mxu0 }
 0x133   : > { %v3200_v53 = vsub.f32 %v633_v52, %v645_v48 }
 0x134   : > { %4886 = vst [vmem:[#allocation11_spill] sm:$0xff] %v3198_v51 }
 0x135   : > { %4887 = vst [vmem:[#allocation12_spill] sm:$0xff] %v3200_v53  ;;  %v655_v56 = vcombine.low (!%p2596_p7), %v3198_v51, %v3200_v53 }
 0x137   : > { %v662_v59 = vrot.slane %v655_v56, %v661_v58 }
 0x139   : > { %v669_v60 = vrot.slane %v662_v59, %v661_v58 }
 0x13b   : > { %675 = vst.msk [vmem:[#allocation3] sm:$0x3] %vm673_vm1, %v669_v60 }
 0x13c PF: > { %v678_v62 = vld [vmem:[#allocation4] sm:$0x3]  ;;  %v681_v63 = vrot.slane %v3198_v51, 7  ;;  %vm707_vm2 = vcmask 1040384   ;;  %vm710_vm3 = vcmask 1041408   ;;  %vm713_vm4 = vcmask 1042432  }
 0x13d   : > { %v700_v1 = vrot.slane %v678_v62, %v3184_v41  ;;  %v682_v3 = vrot.slane %v3200_v53, 7  ;;  %v704_v5 = vrot.slane %v678_v62, %v3060_v42  ;;  %s4870_s29 = smov 15   ;;  %s2839_s18 = smov 16   ;;  %v4863_v11 = vmov 0   ;;  %v974_v12 = vld [vmem:[%s4848_s8 + $0x8] sm:$0xff]  ;;  %v973_v13 = vld [vmem:[%s4848_s8] sm:$0xff] }
 0x13e   : > { %v708_v2 = vsel %vm707_vm2, %v3188_v44, %v681_v63  ;;  %s2840_s21 = smov 17   ;;  %s4860_s19 = smov 1   ;;  %1052 = vmatprep.mubr.bf16.mxu1 %v4863_v11  ;;  %2778 = vset.pattern.permute.xlu1 %v4863_v11  ;;  %v975_v14 = vld [vmem:[%s4848_s8 + $0x10] sm:$0xff]  ;;  %v976_v15 = vld [vmem:[%s4848_s8 + $0x18] sm:$0xff]  ;;  %v3271_v16 = vand.u32 127, %v4862_v28  ;;  %vm941_vm10 = vcmask 1043456  }
 0x13f   : > { %v709_v8 = vsel %vm707_vm2, %v3078_v50, %v682_v3  ;;  %s4858_s20 = smov 127   ;;  %s4856_s17 = smov 113   ;;  %2777 = vset.pattern.permute.xlu0 %v4863_v11  ;;  %v2598_v17 = vld [vmem:[%s4843_s3 + $0x2] sm:$0x3]  ;;  %v2599_v20 = vld [vmem:[%s4843_s3 + $0x4] sm:$0x3] }
 0x140   : > { %s4854_s22 = smov 112   ;;  %s2846_s23 = smov 111   ;;  %vm781_vm5 = vcmp.lt.s32.totalorder %v3271_v16, 15  ;;  %vm759_vm6 = vcmp.lt.s32.totalorder %v3271_v16, 16  ;;  %v3282_v21 = vrot.slane %v2598_v17, %v3184_v41  ;;  %v3285_v22 = vrot.slane %v2598_v17, %v3060_v42  ;;  %v716_v27 = vld [vmem:[%s4843_s3] sm:$0x3] }
 0x141   : > { %v3288_v23 = vrot.slane %v2599_v20, %v3184_v41  ;;  %v3291_v24 = vrot.slane %v2599_v20, %v3060_v42  ;;  %vm737_vm7 = vcmp.lt.s32.totalorder %v3271_v16, 17  ;;  %v3308_v36 = vrot.slane %v716_v27, %v3184_v41  ;;  %v2600_v38 = vld [vmem:[%s4843_s3 + $0x6] sm:$0x3]  ;;  %v2601_v49 = vld [vmem:[%s4843_s3 + $0xa] sm:$0x3]  ;;  %s4893_s27 = smov 1  }
 0x142   : > { %v677_v61 = vld [vmem:[#allocation3] sm:$0x3]  ;;  %v3311_v37 = vrot.slane %v716_v27, %v3060_v42  ;;  %vm803_vm8 = vcmp.lt.s32.totalorder %v3271_v16, 1  ;;  %v3327_v55 = vrot.slane %v2600_v38, %v3184_v41  ;;  %v3330_v56 = vrot.slane %v2600_v38, %v3060_v42  ;;  %s4894_s28 = smov 15  }
 0x143   : > { %v689_v0 = vrot.slane %v677_v61, %v3184_v41  ;;  %v693_v4 = vrot.slane %v677_v61, %v3060_v42  ;;  %vm827_vm9 = vcmp.lt.s32.totalorder %v3271_v16, 127  ;;  %v3336_v63 = vrot.slane %v2601_v49, %v3184_v41 }
 0x144   : > { %vm849_vm11 = vcmp.lt.s32.totalorder %v3271_v16, 113  ;;  %vm946_vm12 = vcmask 1045504   ;;  %vm871_vm13 = vcmp.lt.s32.totalorder %v3271_v16, 112  ;;  %vm893_vm14 = vcmp.lt.s32.totalorder %v3271_v16, 111  ;;  %v4907_v16 = vld [vmem:[#allocation12_spill] sm:$0xff] }
 0x145   : > { %v711_v6 = vsel %vm710_vm3, %v708_v2, %v689_v0  ;;  %v712_v9 = vsel %vm710_vm3, %v709_v8, %v693_v4  ;;  %v3339_v0 = vrot.slane %v2601_v49, %v3060_v42  ;;  %vm1007_vm15 = vcmask 293888  }
 0x146   : > { %v3217_v7 = vsel %vm713_vm4, %v711_v6, %v700_v1  ;;  %v3225_v10 = vsel %vm713_vm4, %v712_v9, %v704_v5  ;;  %v2602_v1 = vld [vmem:[%s4843_s3 + $0xc] sm:$0x3]  ;;  %vm1435_vm0 = vcmask 261120  }
 0x147   : > { %777 = vrot.lane.b32.xlu1 %v3217_v7, %s4870_s29  ;;  %755 = vrot.lane.b32.xlu0 %v3217_v7, %s2839_s18 }
 0x14b   : > { %779 = vrot.lane.b32.xlu1 %v3225_v10, %s4870_s29  ;;  %757 = vrot.lane.b32.xlu0 %v3225_v10, %s2839_s18 }
 0x14f   : > { %733 = vrot.lane.b32.xlu1 %v3225_v10, %s2840_s21  ;;  %731 = vrot.lane.b32.xlu0 %v3217_v7, %s2840_s21 }
 0x153   : > { %801 = vrot.lane.b32.xlu1 %v3225_v10, %s4860_s19  ;;  %799 = vrot.lane.b32.xlu0 %v3217_v7, %s4860_s19 }
 0x157   : > { %825 = vrot.lane.b32.xlu1 %v3225_v10, %s4858_s20  ;;  %823 = vrot.lane.b32.xlu0 %v3217_v7, %s4858_s20  ;;  %s4889_s20 = smov 127  }
 0x15b   : > { %847 = vrot.lane.b32.xlu1 %v3225_v10, %s4856_s17  ;;  %845 = vrot.lane.b32.xlu0 %v3217_v7, %s4856_s17  ;;  %s4890_s17 = smov 113  }
 0x15f   : > { %869 = vrot.lane.b32.xlu1 %v3225_v10, %s4854_s22  ;;  %867 = vrot.lane.b32.xlu0 %v3217_v7, %s4854_s22  ;;  %s4891_s22 = smov 112  }
 0x163   : > { %891 = vrot.lane.b32.xlu1 %v3225_v10, %s2846_s23  ;;  %889 = vrot.lane.b32.xlu0 %v3217_v7, %s2846_s23 }
 0x167   : > { %984 = vperm.xlu1 %2778, %v974_v12   ;;  %979 = vperm.xlu0 %2777, %v973_v13   ;;  %v3352_v13 = vrot.slane %v2602_v1, %v3184_v41 }
 0x16b   : > { %989 = vperm.xlu1 %2778, %v975_v14   ;;  %994 = vperm.xlu0 %2777, %v976_v15   ;;  %v3355_v14 = vrot.slane %v2602_v1, %v3060_v42  ;;  %v822_v1 = vpack.c.bf16 %v3225_v10, %v3225_v10 }
 0x1b9   : > { %v778_v18 = vpop.permute.xlu1 %777  ;;  %v756_v19 = vpop.permute.xlu0 %755 }
 0x1bd   : > { %v780_v25 = vpop.permute.xlu1 %779  ;;  %v758_v26 = vpop.permute.xlu0 %757 }
 0x1be   : > { %v782_v29 = vsel %vm781_vm5, %v778_v18, %v780_v25  ;;  %v783_v30 = vsel %vm781_vm5, %v780_v25, %v778_v18  ;;  %v760_v31 = vsel %vm759_vm6, %v756_v19, %v758_v26  ;;  %v761_v32 = vsel %vm759_vm6, %v758_v26, %v756_v19 }
 0x1bf   : > { %v773_v33 = vmul.f32 %v3282_v21, %v761_v32  ;;  %v774_v34 = vmul.f32 %v3285_v22, %v760_v31  ;;  %v795_v39 = vmul.f32 %v3288_v23, %v783_v30  ;;  %v796_v40 = vmul.f32 %v3291_v24, %v782_v29 }
 0x1c1   : > { %v734_v43 = vpop.permute.xlu1 %733  ;;  %v732_v45 = vpop.permute.xlu0 %731  ;;  %v775_v52 = vpack.c.bf16 %v773_v33, %v773_v33  ;;  %v776_v54 = vpack.c.bf16 %v774_v34, %v774_v34  ;;  %v797_v59 = vpack.c.bf16 %v795_v39, %v795_v39  ;;  %v798_v60 = vpack.c.bf16 %v796_v40, %v796_v40  ;;  %v2603_v40 = vld [vmem:[%s4843_s3 + $0xe] sm:$0x3] }
 0x1c2   : > { %v738_v46 = vsel %vm737_vm7, %v732_v45, %v734_v43  ;;  %v739_v48 = vsel %vm737_vm7, %v734_v43, %v732_v45 }
 0x1c3   : > { %v751_v57 = vmul.f32 %v3308_v36, %v739_v48  ;;  %v752_v58 = vmul.f32 %v3311_v37, %v738_v46  ;;  %v913_v6 = vrot.slane %v775_v52, 6  ;;  %v914_v8 = vrot.slane %v776_v54, 6 }
 0x1c4   : > { %v917_v26 = vrot.slane %v797_v59, 4  ;;  %v918_v27 = vrot.slane %v798_v60, 4  ;;  %v3380_v60 = vrot.slane %v2603_v40, %v3184_v41 }
 0x1c5   : > { %v802_v61 = vpop.permute.xlu1 %801  ;;  %v800_v62 = vpop.permute.xlu0 %799  ;;  %v753_v2 = vpack.c.bf16 %v751_v57, %v751_v57  ;;  %v754_v3 = vpack.c.bf16 %v752_v58, %v752_v58 }
 0x1c6   : > { %v804_v4 = vsel %vm803_vm8, %v800_v62, %v802_v61  ;;  %v805_v5 = vsel %vm803_vm8, %v802_v61, %v800_v62  ;;  %4888 = vst [vmem:[#allocation13_spill] sm:$0xff] %v3380_v60  ;;  %v3383_v61 = vrot.slane %v2603_v40, %v3060_v42  ;;  %v2604_v62 = vld [vmem:[%s4843_s3 + $0x10] sm:$0x3] }
 0x1c7   : > { %v817_v9 = vmul.f32 %v3327_v55, %v805_v5  ;;  %v818_v12 = vmul.f32 %v3330_v56, %v804_v4  ;;  %v940_v20 = vsel %vm710_vm3, %v754_v3, %v914_v8  ;;  %v937_v25 = vsel %vm710_vm3, %v753_v2, %v913_v6 }
 0x1c8   : > { %v945_v38 = vsel %vm941_vm10, %v940_v20, %v918_v27  ;;  %v943_v39 = vsel %vm941_vm10, %v937_v25, %v917_v26  ;;  %v821_v6 = vpack.c.bf16 %v3217_v7, %v3217_v7 }
 0x1c9   : > { %v819_v15 = vpack.c.bf16 %v817_v9, %v817_v9  ;;  %v826_v17 = vpop.permute.xlu1 %825  ;;  %v824_v18 = vpop.permute.xlu0 %823  ;;  %v820_v19 = vpack.c.bf16 %v818_v12, %v818_v12 }
 0x1ca   : > { %v828_v29 = vsel %vm827_vm9, %v824_v18, %v826_v17  ;;  %v829_v30 = vsel %vm827_vm9, %v826_v17, %v824_v18  ;;  %v3400_v18 = vrot.slane %v2604_v62, %v3060_v42 }
 0x1cb   : > { %v841_v31 = vmul.f32 %v3336_v63, %v828_v29  ;;  %v842_v32 = vmul.f32 %v3339_v0, %v829_v30  ;;  %v922_v33 = vrot.slane %v820_v19, 2  ;;  %v921_v34 = vrot.slane %v819_v15, 2 }
 0x1cc   : > { %v3403_v19 = vrot.slane %v2604_v62, %v3184_v41 }
 0x1cd   : > { %v848_v43 = vpop.permute.xlu1 %847  ;;  %v846_v45 = vpop.permute.xlu0 %845  ;;  %v951_v46 = vsel %vm946_vm12, %v945_v38, %v922_v33  ;;  %v948_v48 = vsel %vm946_vm12, %v943_v39, %v921_v34  ;;  %v843_v49 = vpack.c.bf16 %v841_v31, %v841_v31  ;;  %v844_v52 = vpack.c.bf16 %v842_v32, %v842_v32 }
 0x1ce   : > { %v850_v54 = vsel %vm849_vm11, %v846_v45, %v848_v43  ;;  %v851_v57 = vsel %vm849_vm11, %v848_v43, %v846_v45  ;;  %1020 = vmatprep.subr.bf16.mxu1 %v951_v46 }
 0x1cf   : > { %v863_v58 = vmul.f32 %v3352_v13, %v850_v54  ;;  %v864_v59 = vmul.f32 %v3355_v14, %v851_v57  ;;  %1021 = vmatpush1.bf16.msra.mxu1 %v948_v48  ;;  %v925_v8 = vrot.slane %v843_v49, 6  ;;  %v926_v9 = vrot.slane %v844_v52, 6  ;;  %v2779_v54 = vld [vmem:[%s4844_s4] sm:$0xff]   ;;  %v2780_v57 = vld [vmem:[%s4844_s4 + $0x8] sm:$0xff]  }
 0x1d1   : > { %v865_v2 = vpack.c.bf16 %v863_v58, %v863_v58  ;;  %v866_v3 = vpack.c.bf16 %v864_v59, %v864_v59  ;;  %v870_v4 = vpop.permute.xlu1 %869  ;;  %v868_v5 = vpop.permute.xlu0 %867  ;;  %v958_v32 = vsel %vm710_vm3, %v822_v1, %v926_v9  ;;  %v955_v42 = vsel %vm710_vm3, %v821_v6, %v925_v8 }
 0x1d2   : > { %v872_v12 = vsel %vm871_vm13, %v868_v5, %v870_v4  ;;  %v873_v15 = vsel %vm871_vm13, %v870_v4, %v868_v5 }
 0x1d3   : > { %v885_v17 = vmul.f32 %v3380_v60, %v872_v12  ;;  %v886_v10 = vmul.f32 %v3383_v61, %v873_v15  ;;  %v929_v20 = vrot.slane %v865_v2, 4  ;;  %v930_v7 = vrot.slane %v866_v3, 4 }
 0x1d5   : > { %v887_v25 = vpack.c.bf16 %v885_v17, %v885_v17  ;;  %v888_v26 = vpack.c.bf16 %v886_v10, %v886_v10  ;;  %v892_v27 = vpop.permute.xlu1 %891  ;;  %v890_v29 = vpop.permute.xlu0 %889  ;;  %v962_v40 = vsel %vm941_vm10, %v958_v32, %v930_v7  ;;  %v960_v43 = vsel %vm941_vm10, %v955_v42, %v929_v20 }
 0x1d6   : > { %v894_v30 = vsel %vm893_vm14, %v890_v29, %v892_v27  ;;  %v895_v31 = vsel %vm893_vm14, %v892_v27, %v890_v29 }
 0x1d7   : > { %v933_v33 = vrot.slane %v887_v25, 2  ;;  %v934_v34 = vrot.slane %v888_v26, 2  ;;  %v908_v38 = vmul.f32 %v3400_v18, %v895_v31  ;;  %v907_v39 = vmul.f32 %v3403_v19, %v894_v30 }
 0x1d9   : > { %v910_v45 = vpack.c.bf16 %v908_v38, %v908_v38  ;;  %v967_v46 = vsel %vm946_vm12, %v962_v40, %v934_v34  ;;  %v964_v48 = vsel %vm946_vm12, %v960_v43, %v933_v33  ;;  %v909_v49 = vpack.c.bf16 %v907_v39, %v907_v39  ;;  %v2783_v39 = vld [vmem:[%s4845_s5 + $0x4] ss:$12 sps:$4 sm:$0xff]  }
 0x1da   : > { %1022 = vmatprep.subr.bf16.mxu1 %v967_v46 }
 0x1db   : > { %1023 = vmatpush1.bf16.msra.mxu1 %v964_v48  ;;  %v1015_v52 = vsel %vm710_vm3, %v909_v49, 0 }
 0x1dc   : > { %2607 = vmatprep.subr.msk.bf16.mxu1 %vm710_vm3, %v910_v45 }
 0x1df   : > { %1025 = vmatpush1.bf16.msra.mxu1 %v1015_v52  ;;  %v1381_v52 = vld [vmem:[%s4849_s9] sm:$0xff] }
 0x1e2   : > { %2608 = vmatmul.mubr.msk.bf16.vlgmr.msra.gmra.mrb[0].mxu1 %vm1007_vm15, %v2779_v54 }
 0x1e3   : > { %1062 = vmatprep.mubr.bf16.mxu1 %v4863_v11 }
 0x1e6   : > { %v980_v58 = vpop.permute.xlu0 %979  ;;  %v985_v2 = vpop.permute.xlu1 %984 }
 0x1ea   : > { %2609 = vmatmul.mubr.msk.bf16.gmra.mrb[4].mxu1 %vm1007_vm15, %v2780_v57  ;;  %v990_v26 = vpop.permute.xlu1 %989  ;;  %v995_v29 = vpop.permute.xlu0 %994  ;;  %v1382_v57 = vld [vmem:[%s4849_s9 + $0x8] sm:$0xff] }
 0x1eb   : > { %1474 = vmatprep.mubr.bf16.mxu1 %v2783_v39 }
 0x2b5   : > { %v1054_v59 = vpop.f32.mrb[0].mxu1 }
 0x2b6   : > { %v1055_v62 = vadd.f32 %v1054_v59, %v980_v58  ;;  %v1056_v1 = vpop.f32.mrb[1].mxu1  ;;  %v1383_v59 = vld [vmem:[%s4849_s9 + $0x10] sm:$0xff] }
 0x2b7   : > { %v1058_v3 = vpop.f32.mrb[2].mxu1  ;;  %v1057_v10 = vadd.f32 %v1056_v1, %v980_v58  ;;  %v1384_v1 = vld [vmem:[%s4849_s9 + $0x18] sm:$0xff] }
 0x2b8   : > { %v3426_v4 = vmax.f32 %v1055_v62, 0.0  ;;  %v1059_v5 = vadd.f32 %v1058_v3, %v985_v2  ;;  %v1060_v6 = vpop.f32.mrb[3].mxu1 }
 0x2b9   : > { %v1061_v20 = vadd.f32 %v1060_v6, %v985_v2  ;;  %v3448_v7 = vmax.f32 %v1057_v10, 0.0 }
 0x2ba   : > { %v3428_v8 = vmax.f32 %v1059_v5, 0.0  ;;  %1081 = vrot.lane.b32.xlu1 %v3426_v4, %s2840_s21 }
 0x2bb   : > { %v3452_v25 = vmax.f32 %v1061_v20, 0.0 }
 0x2bc   : > { %1083 = vrot.lane.b32.xlu0 %v3428_v8, %s2840_s21 }
 0x2bd   : > { %v1064_v9 = vpop.f32.mrb[4].mxu1 }
 0x2be   : > { %v1066_v12 = vpop.f32.mrb[5].mxu1  ;;  %1117 = vrot.lane.b32.xlu1 %v3426_v4, %s2839_s18  ;;  %v1065_v27 = vadd.f32 %v1064_v9, %v990_v26 }
 0x2bf   : > { %v1068_v15 = vpop.f32.mrb[6].mxu1  ;;  %v1067_v42 = vadd.f32 %v1066_v12, %v990_v26 }
 0x2c0   : > { %v1070_v17 = vpop.f32.mrb[7].mxu1  ;;  %1119 = vrot.lane.b32.xlu0 %v3428_v8, %s2839_s18  ;;  %v1069_v30 = vadd.f32 %v1068_v15, %v995_v29  ;;  %v3468_v31 = vmax.f32 %v1065_v27, 0.0 }
 0x2c1   : > { %v1071_v33 = vadd.f32 %v1070_v17, %v995_v29  ;;  %v3488_v34 = vmax.f32 %v1067_v42, 0.0 }
 0x2c2   : > { %1153 = vrot.lane.b32.xlu1 %v3426_v4, %s4870_s29  ;;  %v3472_v32 = vmax.f32 %v1069_v30, 0.0 }
 0x2c3   : > { %v3492_v38 = vmax.f32 %v1071_v33, 0.0 }
 0x2c4   : > { %1155 = vrot.lane.b32.xlu0 %v3428_v8, %s4870_s29 }
 0x2c6   : > { %1189 = vrot.lane.b32.xlu1 %v3426_v4, %s4860_s19 }
 0x2c8   : > { %1191 = vrot.lane.b32.xlu0 %v3428_v8, %s4860_s19 }
 0x2ca   : > { %1229 = vrot.lane.b32.xlu1 %v3426_v4, %s4889_s20 }
 0x2cc   : > { %1231 = vrot.lane.b32.xlu0 %v3428_v8, %s4889_s20 }
 0x2ce   : > { %1089 = vrot.lane.b32.xlu1 %v3448_v7, %s2840_s21 }
 0x2d0   : > { %1091 = vrot.lane.b32.xlu0 %v3452_v25, %s2840_s21 }
 0x2d2   : > { %1125 = vrot.lane.b32.xlu1 %v3448_v7, %s2839_s18 }
 0x2d4   : > { %1127 = vrot.lane.b32.xlu0 %v3452_v25, %s2839_s18 }
 0x2d6   : > { %1161 = vrot.lane.b32.xlu1 %v3448_v7, %s4870_s29 }
 0x2d8   : > { %1163 = vrot.lane.b32.xlu0 %v3452_v25, %s4870_s29 }
 0x2da   : > { %1197 = vrot.lane.b32.xlu1 %v3448_v7, %s4860_s19 }
 0x2dc   : > { %1199 = vrot.lane.b32.xlu0 %v3452_v25, %s4860_s19 }
 0x2de   : > { %1085 = vrot.lane.b32.xlu1 %v3468_v31, %s2840_s21 }
 0x2e0   : > { %1087 = vrot.lane.b32.xlu0 %v3472_v32, %s2840_s21 }
 0x2e2   : > { %1121 = vrot.lane.b32.xlu1 %v3468_v31, %s2839_s18 }
 0x2e4   : > { %1123 = vrot.lane.b32.xlu0 %v3472_v32, %s2839_s18 }
 0x2e6   : > { %1157 = vrot.lane.b32.xlu1 %v3468_v31, %s4870_s29 }
 0x2e8   : > { %1159 = vrot.lane.b32.xlu0 %v3472_v32, %s4870_s29 }
 0x2ea   : > { %1193 = vrot.lane.b32.xlu1 %v3468_v31, %s4860_s19 }
 0x2ec   : > { %1195 = vrot.lane.b32.xlu0 %v3472_v32, %s4860_s19 }
 0x2ee   : > { %1093 = vrot.lane.b32.xlu1 %v3488_v34, %s2840_s21 }
 0x2f0   : > { %1095 = vrot.lane.b32.xlu0 %v3492_v38, %s2840_s21 }
 0x2f2   : > { %1237 = vrot.lane.b32.xlu1 %v3448_v7, %s4889_s20 }
 0x2f4   : > { %1239 = vrot.lane.b32.xlu0 %v3452_v25, %s4889_s20 }
 0x2f6   : > { %1129 = vrot.lane.b32.xlu1 %v3488_v34, %s2839_s18 }
 0x2f8   : > { %1131 = vrot.lane.b32.xlu0 %v3492_v38, %s2839_s18 }
 0x2fa   : > { %1165 = vrot.lane.b32.xlu1 %v3488_v34, %s4870_s29 }
 0x2fc   : > { %1235 = vrot.lane.b32.xlu0 %v3472_v32, %s4889_s20 }
 0x2fe   : > { %1201 = vrot.lane.b32.xlu1 %v3488_v34, %s4860_s19 }
 0x300   : > { %1167 = vrot.lane.b32.xlu0 %v3492_v38, %s4870_s29 }
 0x302   : > { %1233 = vrot.lane.b32.xlu1 %v3468_v31, %s4889_s20 }
 0x304   : > { %1267 = vrot.lane.b32.xlu0 %v3428_v8, %s4890_s17 }
 0x306   : > { %1241 = vrot.lane.b32.xlu1 %v3488_v34, %s4889_s20 }
 0x308   : > { %1203 = vrot.lane.b32.xlu0 %v3492_v38, %s4860_s19 }
 0x30a   : > { %1265 = vrot.lane.b32.xlu1 %v3426_v4, %s4890_s17 }
 0x30c   : > { %1275 = vrot.lane.b32.xlu0 %v3452_v25, %s4890_s17 }
 0x30e   : > { %1273 = vrot.lane.b32.xlu1 %v3448_v7, %s4890_s17 }
 0x310   : > { %1271 = vrot.lane.b32.xlu0 %v3472_v32, %s4890_s17 }
 0x312   : > { %1269 = vrot.lane.b32.xlu1 %v3468_v31, %s4890_s17 }
 0x314   : > { %1303 = vrot.lane.b32.xlu0 %v3428_v8, %s4891_s22 }
 0x316   : > { %1277 = vrot.lane.b32.xlu1 %v3488_v34, %s4890_s17 }
 0x318   : > { %1243 = vrot.lane.b32.xlu0 %v3492_v38, %s4889_s20 }
 0x31a   : > { %1301 = vrot.lane.b32.xlu1 %v3426_v4, %s4891_s22 }
 0x31c   : > { %1311 = vrot.lane.b32.xlu0 %v3452_v25, %s4891_s22 }
 0x31e   : > { %1309 = vrot.lane.b32.xlu1 %v3448_v7, %s4891_s22 }
 0x320   : > { %1279 = vrot.lane.b32.xlu0 %v3492_v38, %s4890_s17 }
 0x322   : > { %1305 = vrot.lane.b32.xlu1 %v3468_v31, %s4891_s22 }
 0x324   : > { %1307 = vrot.lane.b32.xlu0 %v3472_v32, %s4891_s22 }
 0x326   : > { %1313 = vrot.lane.b32.xlu1 %v3488_v34, %s4891_s22 }
 0x328   : > { %1315 = vrot.lane.b32.xlu0 %v3492_v38, %s4891_s22 }
 0x32a   : > { %1337 = vrot.lane.b32.xlu1 %v3426_v4, %s2846_s23 }
 0x32c   : > { %1339 = vrot.lane.b32.xlu0 %v3428_v8, %s2846_s23  ;;  %v1082_v40 = vpop.permute.xlu1 %1081 }
 0x32e   : > { %v1084_v43 = vpop.permute.xlu0 %1083  ;;  %1345 = vrot.lane.b32.xlu1 %v3448_v7, %s2846_s23 }
 0x330   : > { %1347 = vrot.lane.b32.xlu0 %v3452_v25, %s2846_s23  ;;  %v3565_v45 = vpop.permute.xlu1 %1117 }
 0x332   : > { %v1120_v46 = vpop.permute.xlu0 %1119  ;;  %1341 = vrot.lane.b32.xlu1 %v3468_v31, %s2846_s23 }
 0x334   : > { %1343 = vrot.lane.b32.xlu0 %v3472_v32, %s2846_s23  ;;  %v3571_v48 = vpop.permute.xlu1 %1153 }
 0x336   : > { %v3573_v49 = vpop.permute.xlu0 %1155  ;;  %1349 = vrot.lane.b32.xlu1 %v3488_v34, %s2846_s23 }
 0x338   : > { %1351 = vrot.lane.b32.xlu0 %v3492_v38, %s2846_s23  ;;  %v3582_v54 = vpop.permute.xlu1 %1189 }
 0x33a   : > { %v3587_v58 = vpop.permute.xlu0 %1191  ;;  %1387 = vperm.xlu1 %2778, %v1381_v52  }
 0x33c   : > { %1392 = vperm.xlu0 %2777, %v1382_v57   ;;  %v3592_v62 = vpop.permute.xlu1 %1229 }
 0x33e   : > { %v3597_v2 = vpop.permute.xlu0 %1231  ;;  %1397 = vperm.xlu1 %2778, %v1383_v59  }
 0x340   : > { %1402 = vperm.xlu0 %2777, %v1384_v1   ;;  %v1090_v3 = vpop.permute.xlu1 %1089 }
 0x341   : > { %v1097_v5 = vsel %vm737_vm7, %v1082_v40, %v1090_v3  ;;  %v1101_v6 = vsel %vm737_vm7, %v1090_v3, %v1082_v40 }
 0x342   : > { %v1092_v9 = vpop.permute.xlu0 %1091  ;;  %v1105_v17 = vmul.f32 %v1101_v6, %v3308_v36  ;;  %v1106_v10 = vmul.f32 %v1097_v5, %v3311_v37 }
 0x343   : > { %v1098_v12 = vsel %vm737_vm7, %v1084_v43, %v1092_v9  ;;  %v1102_v15 = vsel %vm737_vm7, %v1092_v9, %v1084_v43 }
 0x344   : > { %v1107_v20 = vmul.f32 %v1102_v15, %v3308_v36  ;;  %v1108_v26 = vmul.f32 %v1098_v12, %v3311_v37  ;;  %v1126_v27 = vpop.permute.xlu1 %1125 }
 0x346   : > { %v1113_v29 = vpack.c.bf16 %v1107_v20, %v1105_v17  ;;  %v1128_v30 = vpop.permute.xlu0 %1127  ;;  %v1114_v42 = vpack.c.bf16 %v1108_v26, %v1106_v10  ;;  %v1133_v20 = vsel %vm759_vm6, %v3565_v45, %v1126_v27 }
 0x347   : > { %v1134_v12 = vsel %vm759_vm6, %v1120_v46, %v1128_v30 }
 0x348   : > { %1442 = vmatprep.subr.bf16.mxu1 %v1114_v42  ;;  %v1162_v33 = vpop.permute.xlu1 %1161  ;;  %v1144_v42 = vmul.f32 %v1134_v12, %v3285_v22 }
 0x349   : > { %1443 = vmatpush1.bf16.msra.mxu1 %v1113_v29  ;;  %v1138_v29 = vsel %vm759_vm6, %v1128_v30, %v1120_v46  ;;  %v1137_v46 = vsel %vm759_vm6, %v1126_v27, %v3565_v45  ;;  %v1142_v30 = vmul.f32 %v1133_v20, %v3285_v22 }
 0x34a   : > { %v1164_v39 = vpop.permute.xlu0 %1163  ;;  %v1143_v12 = vmul.f32 %v1138_v29, %v3282_v21 }
 0x34b   : > { %v1174_v29 = vsel %vm781_vm5, %v1164_v39, %v3573_v49 }
 0x34c   : > { %v3611_v40 = vpop.permute.xlu1 %1197 }
 0x34e   : > { %v3613_v52 = vpop.permute.xlu0 %1199 }
 0x350   : > { %v1086_v43 = vpop.permute.xlu1 %1085 }
 0x352   : > { %v1088_v57 = vpop.permute.xlu0 %1087 }
 0x354   : > { %v1122_v59 = vpop.permute.xlu1 %1121 }
 0x356   : > { %v1124_v1 = vpop.permute.xlu0 %1123 }
 0x358   : > { %v1158_v3 = vpop.permute.xlu1 %1157 }
 0x35a   : > { %v3615_v5 = vpop.permute.xlu0 %1159 }
 0x35c   : > { %v3617_v6 = vpop.permute.xlu1 %1193 }
 0x35e   : > { %v3619_v9 = vpop.permute.xlu0 %1195 }
 0x360   : > { %v1094_v15 = vpop.permute.xlu1 %1093 }
 0x361   : > { %v1099_v17 = vsel %vm737_vm7, %v1086_v43, %v1094_v15  ;;  %v1103_v10 = vsel %vm737_vm7, %v1094_v15, %v1086_v43 }
 0x362   : > { %v1096_v26 = vpop.permute.xlu0 %1095  ;;  %v1109_v50 = vmul.f32 %v1103_v10, %v3308_v36  ;;  %v1110_v43 = vmul.f32 %v1099_v17, %v3311_v37  ;;  %v1141_v17 = vmul.f32 %v1137_v46, %v3282_v21 }
 0x363   : > { %v1100_v28 = vsel %vm737_vm7, %v1088_v57, %v1096_v26  ;;  %v1104_v11 = vsel %vm737_vm7, %v1096_v26, %v1088_v57  ;;  %v1150_v26 = vpack.c.bf16 %v1144_v42, %v1142_v30 }
 0x364   : > { %v1111_v15 = vmul.f32 %v1104_v11, %v3308_v36  ;;  %v1112_v44 = vmul.f32 %v1100_v28, %v3311_v37  ;;  %v3641_v41 = vpop.permute.xlu1 %1237  ;;  %v1170_v28 = vsel %vm781_vm5, %v3573_v49, %v1164_v39  ;;  %v1173_v49 = vsel %vm781_vm5, %v1162_v33, %v3571_v48 }
 0x365   : > { %v1180_v42 = vmul.f32 %v1170_v28, %v3291_v24 }
 0x366   : > { %v1115_v47 = vpack.c.bf16 %v1111_v15, %v1109_v50  ;;  %v3648_v57 = vpop.permute.xlu0 %1239  ;;  %v1116_v10 = vpack.c.bf16 %v1112_v44, %v1110_v43  ;;  %v1149_v50 = vpack.c.bf16 %v1143_v12, %v1141_v17  ;;  %v1169_v44 = vsel %vm781_vm5, %v3571_v48, %v1162_v33 }
 0x367   : > { %v1178_v39 = vmul.f32 %v1169_v44, %v3291_v24  ;;  %v1205_v44 = vsel %vm803_vm8, %v3582_v54, %v3611_v40 }
 0x368   : > { %1444 = vmatprep.subr.bf16.mxu1 %v1116_v10  ;;  %v1130_v11 = vpop.permute.xlu1 %1129  ;;  %v1179_v10 = vmul.f32 %v1174_v29, %v3288_v23  ;;  %v1210_v29 = vsel %vm803_vm8, %v3613_v52, %v3587_v58 }
 0x369   : > { %v1135_v45 = vsel %vm759_vm6, %v1122_v59, %v1130_v11  ;;  %v1139_v27 = vsel %vm759_vm6, %v1130_v11, %v1122_v59  ;;  %1445 = vmatpush1.bf16.msra.mxu1 %v1115_v47  ;;  %v1177_v11 = vmul.f32 %v1173_v49, %v3288_v23 }
 0x36a   : > { %v1132_v20 = vpop.permute.xlu0 %1131  ;;  %1446 = vmatprep.subr.bf16.mxu1 %v1150_v26  ;;  %v1145_v47 = vmul.f32 %v1139_v27, %v3282_v21  ;;  %v1146_v15 = vmul.f32 %v1135_v45, %v3285_v22  ;;  %v1206_v26 = vsel %vm803_vm8, %v3587_v58, %v3613_v52  ;;  %v1186_v27 = vpack.c.bf16 %v1180_v42, %v1178_v39 }
 0x36b   : > { %v1136_v43 = vsel %vm759_vm6, %v1124_v1, %v1132_v20  ;;  %v1140_v59 = vsel %vm759_vm6, %v1132_v20, %v1124_v1  ;;  %v1216_v42 = vmul.f32 %v1206_v26, %v3330_v56  ;;  %v1209_v58 = vsel %vm803_vm8, %v3611_v40, %v3582_v54 }
 0x36c   : > { %v1147_v46 = vmul.f32 %v1140_v59, %v3282_v21  ;;  %v1148_v30 = vmul.f32 %v1136_v43, %v3285_v22  ;;  %v1166_v12 = vpop.permute.xlu1 %1165  ;;  %v1214_v52 = vmul.f32 %v1205_v44, %v3330_v56  ;;  %v1215_v39 = vmul.f32 %v1210_v29, %v3327_v55 }
 0x36d   : > { %1447 = vmatpush1.bf16.msra.mxu1 %v1149_v50  ;;  %v1171_v48 = vsel %vm781_vm5, %v1158_v3, %v1166_v12  ;;  %v1175_v33 = vsel %vm781_vm5, %v1166_v12, %v1158_v3  ;;  %v1185_v50 = vpack.c.bf16 %v1179_v10, %v1177_v11 }
 0x36e   : > { %v1151_v17 = vpack.c.bf16 %v1147_v46, %v1145_v47  ;;  %v3678_v1 = vpop.permute.xlu0 %1235  ;;  %v1152_v28 = vpack.c.bf16 %v1148_v30, %v1146_v15  ;;  %v1181_v59 = vmul.f32 %v1175_v33, %v3288_v23  ;;  %v1182_v47 = vmul.f32 %v1171_v48, %v3291_v24 }
 0x370   : > { %1448 = vmatprep.subr.bf16.mxu1 %v1152_v28  ;;  %v1202_v45 = vpop.permute.xlu1 %1201  ;;  %v1213_v28 = vmul.f32 %v1209_v58, %v3327_v55  ;;  %v1228_v58 = vpack.c.bf16 %v3492_v38, %v3488_v34 }
 0x371   : > { %1449 = vmatpush1.bf16.msra.mxu1 %v1151_v17  ;;  %v1222_v17 = vpack.c.bf16 %v1216_v42, %v1214_v52  ;;  %v1207_v11 = vsel %vm803_vm8, %v3617_v6, %v1202_v45  ;;  %v1211_v54 = vsel %vm803_vm8, %v1202_v45, %v3617_v6  ;;  %v1245_v52 = vsel %vm827_vm9, %v3592_v62, %v3641_v41 }
 0x372   : > { %v1168_v20 = vpop.permute.xlu0 %1167  ;;  %1450 = vmatprep.subr.bf16.mxu1 %v1186_v27  ;;  %v1221_v26 = vpack.c.bf16 %v1215_v39, %v1213_v28  ;;  %v1217_v33 = vmul.f32 %v1211_v54, %v3327_v55  ;;  %v1253_v34 = vmul.f32 %v1245_v52, %v3336_v63 }
 0x373   : > { %v1172_v3 = vsel %vm781_vm5, %v3615_v5, %v1168_v20  ;;  %v1176_v43 = vsel %vm781_vm5, %v1168_v20, %v3615_v5 }
 0x374   : > { %v1183_v15 = vmul.f32 %v1176_v43, %v3288_v23  ;;  %v1184_v46 = vmul.f32 %v1172_v3, %v3291_v24  ;;  %v1234_v30 = vpop.permute.xlu1 %1233  ;;  %v1226_v43 = vpack.c.bf16 %v3452_v25, %v3448_v7  ;;  %v1225_v7 = vpack.c.bf16 %v3428_v8, %v3426_v4 }
 0x375   : > { %1451 = vmatpush1.bf16.msra.mxu1 %v1185_v50  ;;  %v1218_v50 = vmul.f32 %v1207_v11, %v3330_v56  ;;  %v1227_v8 = vpack.c.bf16 %v3472_v32, %v3468_v31 }
 0x376   : > { %v1187_v12 = vpack.c.bf16 %v1183_v15, %v1181_v59  ;;  %v3713_v49 = vpop.permute.xlu0 %1267  ;;  %v1188_v5 = vpack.c.bf16 %v1184_v46, %v1182_v47  ;;  %v1249_v47 = vsel %vm827_vm9, %v3641_v41, %v3592_v62  ;;  %v1246_v15 = vsel %vm827_vm9, %v3597_v2, %v3648_v57 }
 0x378   : > { %1452 = vmatprep.subr.bf16.mxu1 %v1188_v5  ;;  %v1242_v10 = vpop.permute.xlu1 %1241  ;;  %v1255_v5 = vmul.f32 %v1246_v15, %v3336_v63 }
 0x379   : > { %1453 = vmatpush1.bf16.msra.mxu1 %v1187_v12  ;;  %v1254_v12 = vmul.f32 %v1249_v47, %v3339_v0  ;;  %v1247_v4 = vsel %vm827_vm9, %v1234_v30, %v1242_v10  ;;  %v1251_v41 = vsel %vm827_vm9, %v1242_v10, %v1234_v30 }
 0x37a   : > { %v1204_v40 = vpop.permute.xlu0 %1203  ;;  %1454 = vmatprep.subr.bf16.mxu1 %v1222_v17  ;;  %v1261_v39 = vpack.c.bf16 %v1255_v5, %v1253_v34  ;;  %v1257_v17 = vmul.f32 %v1247_v4, %v3336_v63  ;;  %v1258_v11 = vmul.f32 %v1251_v41, %v3339_v0 }
 0x37b   : > { %v1208_v27 = vsel %vm803_vm8, %v3619_v9, %v1204_v40  ;;  %v1212_v48 = vsel %vm803_vm8, %v1204_v40, %v3619_v9  ;;  %v1250_v9 = vsel %vm827_vm9, %v3648_v57, %v3597_v2 }
 0x37c   : > { %v1219_v44 = vmul.f32 %v1212_v48, %v3327_v55  ;;  %v1220_v6 = vmul.f32 %v1208_v27, %v3330_v56  ;;  %v1266_v45 = vpop.permute.xlu1 %1265  ;;  %v1256_v25 = vmul.f32 %v1250_v9, %v3339_v0 }
 0x37d   : > { %1455 = vmatpush1.bf16.msra.mxu1 %v1221_v26 }
 0x37e   : > { %v1223_v20 = vpack.c.bf16 %v1219_v44, %v1217_v33  ;;  %v1276_v29 = vpop.permute.xlu0 %1275  ;;  %v1224_v42 = vpack.c.bf16 %v1220_v6, %v1218_v50  ;;  %v1262_v57 = vpack.c.bf16 %v1256_v25, %v1254_v12 }
 0x37f   : > { %v1286_v31 = vsel %vm849_vm11, %v1276_v29, %v3713_v49  ;;  %v1282_v48 = vsel %vm849_vm11, %v3713_v49, %v1276_v29 }
 0x380   : > { %1456 = vmatprep.subr.bf16.mxu1 %v1224_v42  ;;  %v1274_v3 = vpop.permute.xlu1 %1273  ;;  %v1292_v33 = vmul.f32 %v1286_v31, %v3355_v14 }
 0x381   : > { %1457 = vmatpush1.bf16.msra.mxu1 %v1223_v20  ;;  %v1285_v62 = vsel %vm849_vm11, %v1274_v3, %v1266_v45  ;;  %v1281_v32 = vsel %vm849_vm11, %v1266_v45, %v1274_v3  ;;  %v1291_v20 = vmul.f32 %v1282_v48, %v3352_v13 }
 0x382   : > { %v1272_v59 = vpop.permute.xlu0 %1271  ;;  %1458 = vmatprep.subr.bf16.mxu1 %v1226_v43  ;;  %v1290_v54 = vmul.f32 %v1285_v62, %v3355_v14  ;;  %v1289_v50 = vmul.f32 %v1281_v32, %v3352_v13 }
 0x384   : > { %v1270_v46 = vpop.permute.xlu1 %1269  ;;  %v1298_v43 = vpack.c.bf16 %v1292_v33, %v1290_v54  ;;  %v1297_v29 = vpack.c.bf16 %v1291_v20, %v1289_v50  ;;  %v2784_v20 = vld [vmem:[%s4845_s5 + $0x1c] ss:$12 sps:$4 sm:$0xff]  }
 0x385   : > { %1459 = vmatpush1.bf16.msra.mxu1 %v1225_v7 }
 0x386   : > { %v1304_v2 = vpop.permute.xlu0 %1303  ;;  %1460 = vmatprep.subr.bf16.mxu1 %v1228_v58 }
 0x388   : > { %v1278_v38 = vpop.permute.xlu1 %1277 }
 0x389   : > { %1461 = vmatpush1.bf16.msra.mxu1 %v1227_v8  ;;  %v1283_v45 = vsel %vm849_vm11, %v1270_v46, %v1278_v38  ;;  %v1287_v42 = vsel %vm849_vm11, %v1278_v38, %v1270_v46 }
 0x38a   : > { %v1244_v28 = vpop.permute.xlu0 %1243  ;;  %1462 = vmatprep.subr.bf16.mxu1 %v1262_v57  ;;  %v1293_v9 = vmul.f32 %v1283_v45, %v3352_v13  ;;  %v1294_v15 = vmul.f32 %v1287_v42, %v3355_v14 }
 0x38b   : > { %v1248_v30 = vsel %vm827_vm9, %v3678_v1, %v1244_v28  ;;  %v1252_v10 = vsel %vm827_vm9, %v1244_v28, %v3678_v1 }
 0x38c   : > { %v1259_v40 = vmul.f32 %v1248_v30, %v3336_v63  ;;  %v1260_v26 = vmul.f32 %v1252_v10, %v3339_v0  ;;  %v1302_v27 = vpop.permute.xlu1 %1301 }
 0x38d   : > { %1463 = vmatpush1.bf16.msra.mxu1 %v1261_v39 }
 0x38e   : > { %v1263_v44 = vpack.c.bf16 %v1259_v40, %v1257_v17  ;;  %v1312_v1 = vpop.permute.xlu0 %1311  ;;  %v1264_v6 = vpack.c.bf16 %v1260_v26, %v1258_v11 }
 0x38f   : > { %v1322_v7 = vsel %vm871_vm13, %v1312_v1, %v1304_v2  ;;  %v1318_v8 = vsel %vm871_vm13, %v1304_v2, %v1312_v1  ;;  %v2781_v1 = vld [vmem:[%s4845_s5] ss:$12 sps:$4 sm:$0xff]  }
 0x390   : > { %v1310_v3 = vpop.permute.xlu1 %1309  ;;  %1464 = vmatprep.subr.bf16.mxu1 %v1264_v6  ;;  %v1328_v34 = vmul.f32 %v1322_v7, %v3383_v61  ;;  %v1327_v17 = vmul.f32 %v1318_v8, %v3380_v60 }
 0x391   : > { %v1321_v49 = vsel %vm871_vm13, %v1310_v3, %v1302_v27  ;;  %1465 = vmatpush1.bf16.msra.mxu1 %v1263_v44  ;;  %v1317_v58 = vsel %vm871_vm13, %v1302_v27, %v1310_v3 }
 0x392   : > { %v1280_v47 = vpop.permute.xlu0 %1279  ;;  %1466 = vmatprep.subr.bf16.mxu1 %v1298_v43  ;;  %v1326_v52 = vmul.f32 %v1321_v49, %v3383_v61 }
 0x393   : > { %v1284_v25 = vsel %vm849_vm11, %v1272_v59, %v1280_v47  ;;  %v1288_v46 = vsel %vm849_vm11, %v1280_v47, %v1272_v59  ;;  %v1325_v59 = vmul.f32 %v1317_v58, %v3380_v60 }
 0x394   : > { %v1295_v12 = vmul.f32 %v1284_v25, %v3352_v13  ;;  %v1296_v5 = vmul.f32 %v1288_v46, %v3355_v14  ;;  %v1306_v4 = vpop.permute.xlu1 %1305  ;;  %v1334_v39 = vpack.c.bf16 %v1328_v34, %v1326_v52  ;;  %v2786_v52 = vld [vmem:[%s4845_s5 + $0x18] ss:$12 sps:$4 sm:$0xff]  }
 0x395   : > { %1467 = vmatpush1.bf16.msra.mxu1 %v1297_v29  ;;  %v1333_v32 = vpack.c.bf16 %v1327_v17, %v1325_v59 }
 0x396   : > { %v1299_v38 = vpack.c.bf16 %v1295_v12, %v1293_v9  ;;  %v1308_v57 = vpop.permute.xlu0 %1307  ;;  %v1300_v41 = vpack.c.bf16 %v1296_v5, %v1294_v15 }
 0x398   : > { %v1314_v62 = vpop.permute.xlu1 %1313  ;;  %1468 = vmatprep.subr.bf16.mxu1 %v1300_v41 }
 0x399   : > { %v1319_v28 = vsel %vm871_vm13, %v1306_v4, %v1314_v62  ;;  %v1323_v31 = vsel %vm871_vm13, %v1314_v62, %v1306_v4  ;;  %1469 = vmatpush1.bf16.msra.mxu1 %v1299_v38  ;;  %v4892_v62 = vmov 0  }
 0x39a   : > { %v1316_v2 = vpop.permute.xlu0 %1315  ;;  %1470 = vmatprep.subr.bf16.mxu1 %v1334_v39  ;;  %v1329_v11 = vmul.f32 %v1319_v28, %v3380_v60  ;;  %v1330_v54 = vmul.f32 %v1323_v31, %v3383_v61  ;;  %v2787_v28 = vld [vmem:[%s4845_s5 + $0x8] ss:$12 sps:$4 sm:$0xff]   ;;  %v2788_v31 = vld [vmem:[%s4845_s5 + $0x20] ss:$12 sps:$4 sm:$0xff]  }
 0x39b   : > { %v1320_v30 = vsel %vm871_vm13, %v1308_v57, %v1316_v2  ;;  %v1324_v10 = vsel %vm871_vm13, %v1316_v2, %v1308_v57 }
 0x39c   : > { %v1331_v40 = vmul.f32 %v1320_v30, %v3380_v60  ;;  %v1332_v26 = vmul.f32 %v1324_v10, %v3383_v61  ;;  %v1338_v27 = vpop.permute.xlu1 %1337 }
 0x39d   : > { %1471 = vmatpush1.bf16.msra.mxu1 %v1333_v32 }
 0x39e   : > { %v1335_v48 = vpack.c.bf16 %v1331_v40, %v1329_v11  ;;  %v1340_v33 = vpop.permute.xlu0 %1339  ;;  %v1336_v50 = vpack.c.bf16 %v1332_v26, %v1330_v54 }
 0x3a0   : > { %v1346_v44 = vpop.permute.xlu1 %1345  ;;  %1472 = vmatprep.subr.bf16.mxu1 %v1336_v50 }
 0x3a1   : > { %v1353_v6 = vsel %vm893_vm14, %v1338_v27, %v1346_v44  ;;  %v1357_v45 = vsel %vm893_vm14, %v1346_v44, %v1338_v27  ;;  %1473 = vmatpush1.bf16.msra.mxu1 %v1335_v48 }
 0x3a2   : > { %v1348_v42 = vpop.permute.xlu0 %1347  ;;  %v1361_v49 = vmul.f32 %v1353_v6, %v3403_v19  ;;  %v1362_v29 = vmul.f32 %v1357_v45, %v3400_v18 }
 0x3a3   : > { %v1354_v3 = vsel %vm893_vm14, %v1340_v33, %v1348_v42  ;;  %v1358_v43 = vsel %vm893_vm14, %v1348_v42, %v1340_v33 }
 0x3a4   : > { %v1363_v9 = vmul.f32 %v1354_v3, %v3403_v19  ;;  %v1364_v47 = vmul.f32 %v1358_v43, %v3400_v18  ;;  %v1342_v15 = vpop.permute.xlu1 %1341  ;;  %1475 = vmatmul.mubr.bf16.vlgmr.msra.gmra.mrb[8].mxu1 %v2781_v1 }
 0x3a5   : > { %1484 = vmatprep.mubr.bf16.mxu1 %v2784_v20 }
 0x3a6   : > { %v1369_v7 = vpack.c.bf16 %v1363_v9, %v1361_v49  ;;  %v1344_v25 = vpop.permute.xlu0 %1343  ;;  %v1370_v46 = vpack.c.bf16 %v1364_v47, %v1362_v29 }
 0x3a8   : > { %v1350_v58 = vpop.permute.xlu1 %1349  ;;  %1495 = vmatprep.subr.bf16.mxu1 %v1370_v46 }
 0x3a9   : > { %v1355_v12 = vsel %vm893_vm14, %v1342_v15, %v1350_v58  ;;  %v1359_v5 = vsel %vm893_vm14, %v1350_v58, %v1342_v15  ;;  %1496 = vmatpush1.bf16.msra.mxu1 %v1369_v7  ;;  %v2791_v58 = vld [vmem:[%s4846_s6 + $0x4] ss:$12 sps:$4 sm:$0xff]  }
 0x3aa   : > { %v1352_v4 = vpop.permute.xlu0 %1351  ;;  %v1365_v38 = vmul.f32 %v1355_v12, %v3403_v19  ;;  %v1366_v57 = vmul.f32 %v1359_v5, %v3400_v18  ;;  %1948 = vmatprep.mubr.bf16.mxu0 %v2791_v58 }
 0x3ab   : > { %v1356_v8 = vsel %vm893_vm14, %v1344_v25, %v1352_v4  ;;  %v1360_v34 = vsel %vm893_vm14, %v1352_v4, %v1344_v25 }
 0x3ac   : > { %v1367_v41 = vmul.f32 %v1356_v8, %v3403_v19  ;;  %v1368_v59 = vmul.f32 %v1360_v34, %v3400_v18  ;;  %1485 = vmatmul.mubr.bf16.gmra.mrb[12].mxu1 %v2786_v52 }
 0x3ad   : > { %1527 = vmatprep.mubr.bf16.mxu1 %v4892_v62 }
 0x3ae   : > { %v1371_v39 = vpack.c.bf16 %v1367_v41, %v1365_v38  ;;  %v1372_v17 = vpack.c.bf16 %v1368_v59, %v1366_v57  ;;  %v1856_v38 = vld [vmem:[%s4850_s10] sm:$0xff]  ;;  %v1857_v41 = vld [vmem:[%s4850_s10 + $0x8] sm:$0xff] }
 0x3b0   : > { %1497 = vmatprep.subr.bf16.mxu1 %v1372_v17 }
 0x3b1   : > { %1498 = vmatpush1.bf16.msra.mxu1 %v1371_v39  ;;  %v1858_v39 = vld [vmem:[%s4850_s10 + $0x10] sm:$0xff] }
 0x3b4   : > { %2616 = vmatmul.mubr.msk.bf16.vlgmr.msra.gmra.mrb[8].mxu1 %vm1435_vm0, %v2787_v28  ;;  %v1859_v28 = vld [vmem:[%s4850_s10 + $0x18] sm:$0xff] }
 0x3b5   : > { %1537 = vmatprep.mubr.bf16.mxu1 %v4892_v62 }
 0x3b9   : > { %v1388_v2 = vpop.permute.xlu1 %1387 }
 0x3bb   : > { %v1393_v11 = vpop.permute.xlu0 %1392 }
 0x3bc   : > { %2617 = vmatmul.mubr.msk.bf16.gmra.mrb[12].mxu1 %vm1435_vm0, %v2788_v31 }
 0x3bd   : > { %v1398_v3 = vpop.permute.xlu1 %1397 }
 0x3bf   : > { %v1403_v49 = vpop.permute.xlu0 %1402 }
 0x487   : > { %v1529_v32 = vpop.f32.mrb[8].mxu1 }
 0x488   : > { %v2694_v30 = vadd.f32 %v1529_v32, %v1388_v2  ;;  %v1531_v10 = vpop.f32.mrb[9].mxu1 }
 0x489   : > { %v1533_v54 = vpop.f32.mrb[10].mxu1  ;;  %v2695_v6 = vadd.f32 %v1531_v10, %v1388_v2 }
 0x48a   : > { %v3868_v40 = vmax.f32 %v2694_v30, 0.0  ;;  %v2696_v26 = vadd.f32 %v1533_v54, %v1393_v11  ;;  %v1535_v27 = vpop.f32.mrb[11].mxu1 }
 0x48b   : > { %v2697_v45 = vadd.f32 %v1535_v27, %v1393_v11  ;;  %v3890_v20 = vmax.f32 %v2695_v6, 0.0 }
 0x48c   : > { %v3870_v48 = vmax.f32 %v2696_v26, 0.0  ;;  %1556 = vrot.lane.b32.xlu1 %v3868_v40, %s2840_s21 }
 0x48d   : > { %v3894_v42 = vmax.f32 %v2697_v45, 0.0 }
 0x48e   : > { %1558 = vrot.lane.b32.xlu0 %v3870_v48, %s2840_s21 }
 0x48f   : > { %v1539_v33 = vpop.f32.mrb[12].mxu1 }
 0x490   : > { %v1541_v50 = vpop.f32.mrb[13].mxu1  ;;  %1592 = vrot.lane.b32.xlu1 %v3868_v40, %s2839_s18  ;;  %v2698_v43 = vadd.f32 %v1539_v33, %v1398_v3 }
 0x491   : > { %v1543_v44 = vpop.f32.mrb[14].mxu1  ;;  %v2699_v15 = vadd.f32 %v1541_v50, %v1398_v3 }
 0x492   : > { %v1545_v1 = vpop.f32.mrb[15].mxu1  ;;  %1594 = vrot.lane.b32.xlu0 %v3870_v48, %s2839_s18  ;;  %v2700_v29 = vadd.f32 %v1543_v44, %v1403_v49  ;;  %v3910_v9 = vmax.f32 %v2698_v43, 0.0 }
 0x493   : > { %v2701_v7 = vadd.f32 %v1545_v1, %v1403_v49  ;;  %v3930_v25 = vmax.f32 %v2699_v15, 0.0 }
 0x494   : > { %1628 = vrot.lane.b32.xlu1 %v3868_v40, %s4870_s29  ;;  %v3914_v47 = vmax.f32 %v2700_v29, 0.0 }
 0x495   : > { %v3934_v46 = vmax.f32 %v2701_v7, 0.0 }
 0x496   : > { %1630 = vrot.lane.b32.xlu0 %v3870_v48, %s4870_s29 }
 0x498   : > { %1664 = vrot.lane.b32.xlu1 %v3868_v40, %s4893_s27 }
 0x49a   : > { %1666 = vrot.lane.b32.xlu0 %v3870_v48, %s4893_s27 }
 0x49c   : > { %1704 = vrot.lane.b32.xlu1 %v3868_v40, %s4889_s20 }
 0x49e   : > { %1706 = vrot.lane.b32.xlu0 %v3870_v48, %s4889_s20 }
 0x4a0   : > { %1564 = vrot.lane.b32.xlu1 %v3890_v20, %s2840_s21 }
 0x4a2   : > { %1566 = vrot.lane.b32.xlu0 %v3894_v42, %s2840_s21 }
 0x4a4   : > { %1600 = vrot.lane.b32.xlu1 %v3890_v20, %s2839_s18 }
 0x4a6   : > { %1602 = vrot.lane.b32.xlu0 %v3894_v42, %s2839_s18 }
 0x4a8   : > { %1636 = vrot.lane.b32.xlu1 %v3890_v20, %s4870_s29 }
 0x4aa   : > { %1638 = vrot.lane.b32.xlu0 %v3894_v42, %s4870_s29 }
 0x4ac   : > { %1672 = vrot.lane.b32.xlu1 %v3890_v20, %s4893_s27 }
 0x4ae   : > { %1674 = vrot.lane.b32.xlu0 %v3894_v42, %s4893_s27 }
 0x4b0   : > { %1560 = vrot.lane.b32.xlu1 %v3910_v9, %s2840_s21 }
 0x4b2   : > { %1562 = vrot.lane.b32.xlu0 %v3914_v47, %s2840_s21 }
 0x4b4   : > { %1596 = vrot.lane.b32.xlu1 %v3910_v9, %s2839_s18 }
 0x4b6   : > { %1598 = vrot.lane.b32.xlu0 %v3914_v47, %s2839_s18 }
 0x4b8   : > { %1632 = vrot.lane.b32.xlu1 %v3910_v9, %s4870_s29 }
 0x4ba   : > { %1634 = vrot.lane.b32.xlu0 %v3914_v47, %s4870_s29 }
 0x4bc   : > { %1668 = vrot.lane.b32.xlu1 %v3910_v9, %s4893_s27 }
 0x4be   : > { %1670 = vrot.lane.b32.xlu0 %v3914_v47, %s4893_s27 }
 0x4c0   : > { %1568 = vrot.lane.b32.xlu1 %v3930_v25, %s2840_s21 }
 0x4c2   : > { %1570 = vrot.lane.b32.xlu0 %v3934_v46, %s2840_s21 }
 0x4c4   : > { %1712 = vrot.lane.b32.xlu1 %v3890_v20, %s4889_s20 }
 0x4c6   : > { %1714 = vrot.lane.b32.xlu0 %v3894_v42, %s4889_s20 }
 0x4c8   : > { %1604 = vrot.lane.b32.xlu1 %v3930_v25, %s2839_s18 }
 0x4ca   : > { %1606 = vrot.lane.b32.xlu0 %v3934_v46, %s2839_s18 }
 0x4cc   : > { %1640 = vrot.lane.b32.xlu1 %v3930_v25, %s4870_s29 }
 0x4ce   : > { %1710 = vrot.lane.b32.xlu0 %v3914_v47, %s4889_s20 }
 0x4d0   : > { %1676 = vrot.lane.b32.xlu1 %v3930_v25, %s4893_s27 }
 0x4d2   : > { %1642 = vrot.lane.b32.xlu0 %v3934_v46, %s4870_s29 }
 0x4d4   : > { %1708 = vrot.lane.b32.xlu1 %v3910_v9, %s4889_s20 }
 0x4d6   : > { %1742 = vrot.lane.b32.xlu0 %v3870_v48, %s4890_s17 }
 0x4d8   : > { %1716 = vrot.lane.b32.xlu1 %v3930_v25, %s4889_s20 }
 0x4da   : > { %1678 = vrot.lane.b32.xlu0 %v3934_v46, %s4893_s27 }
 0x4dc   : > { %1740 = vrot.lane.b32.xlu1 %v3868_v40, %s4890_s17 }
 0x4de   : > { %1750 = vrot.lane.b32.xlu0 %v3894_v42, %s4890_s17 }
 0x4e0   : > { %1748 = vrot.lane.b32.xlu1 %v3890_v20, %s4890_s17 }
 0x4e2   : > { %1746 = vrot.lane.b32.xlu0 %v3914_v47, %s4890_s17 }
 0x4e4   : > { %1744 = vrot.lane.b32.xlu1 %v3910_v9, %s4890_s17 }
 0x4e6   : > { %1778 = vrot.lane.b32.xlu0 %v3870_v48, %s4891_s22 }
 0x4e8   : > { %1752 = vrot.lane.b32.xlu1 %v3930_v25, %s4890_s17 }
 0x4ea   : > { %1718 = vrot.lane.b32.xlu0 %v3934_v46, %s4889_s20 }
 0x4ec   : > { %1776 = vrot.lane.b32.xlu1 %v3868_v40, %s4891_s22 }
 0x4ee   : > { %1786 = vrot.lane.b32.xlu0 %v3894_v42, %s4891_s22 }
 0x4f0   : > { %1784 = vrot.lane.b32.xlu1 %v3890_v20, %s4891_s22 }
 0x4f2   : > { %1754 = vrot.lane.b32.xlu0 %v3934_v46, %s4890_s17 }
 0x4f4   : > { %1780 = vrot.lane.b32.xlu1 %v3910_v9, %s4891_s22 }
 0x4f6   : > { %1782 = vrot.lane.b32.xlu0 %v3914_v47, %s4891_s22 }
 0x4f8   : > { %1788 = vrot.lane.b32.xlu1 %v3930_v25, %s4891_s22 }
 0x4fa   : > { %1790 = vrot.lane.b32.xlu0 %v3934_v46, %s4891_s22 }
 0x4fc   : > { %1812 = vrot.lane.b32.xlu1 %v3868_v40, %s2846_s23 }
 0x4fe   : > { %1814 = vrot.lane.b32.xlu0 %v3870_v48, %s2846_s23  ;;  %v1557_v52 = vpop.permute.xlu1 %1556 }
 0x500   : > { %v1559_v12 = vpop.permute.xlu0 %1558  ;;  %1820 = vrot.lane.b32.xlu1 %v3890_v20, %s2846_s23 }
 0x502   : > { %1822 = vrot.lane.b32.xlu0 %v3894_v42, %s2846_s23  ;;  %v4007_v5 = vpop.permute.xlu1 %1592 }
 0x504   : > { %v1595_v4 = vpop.permute.xlu0 %1594  ;;  %1816 = vrot.lane.b32.xlu1 %v3910_v9, %s2846_s23 }
 0x506   : > { %1818 = vrot.lane.b32.xlu0 %v3914_v47, %s2846_s23  ;;  %v4013_v8 = vpop.permute.xlu1 %1628 }
 0x508   : > { %v4015_v34 = vpop.permute.xlu0 %1630  ;;  %1824 = vrot.lane.b32.xlu1 %v3930_v25, %s2846_s23 }
 0x50a   : > { %1826 = vrot.lane.b32.xlu0 %v3934_v46, %s2846_s23  ;;  %v4024_v57 = vpop.permute.xlu1 %1664 }
 0x50c   : > { %v4029_v59 = vpop.permute.xlu0 %1666  ;;  %1862 = vperm.xlu1 %2778, %v1856_v38  }
 0x50e   : > { %1867 = vperm.xlu0 %2777, %v1857_v41   ;;  %v4034_v17 = vpop.permute.xlu1 %1704 }
 0x510   : > { %v4039_v31 = vpop.permute.xlu0 %1706  ;;  %1872 = vperm.xlu1 %2778, %v1858_v39  }
 0x512   : > { %1877 = vperm.xlu0 %2777, %v1859_v28   ;;  %v1565_v2 = vpop.permute.xlu1 %1564 }
 0x513   : > { %v1576_v32 = vsel %vm737_vm7, %v1565_v2, %v1557_v52  ;;  %v1572_v30 = vsel %vm737_vm7, %v1557_v52, %v1565_v2 }
 0x514   : > { %v1567_v10 = vpop.permute.xlu0 %1566  ;;  %v1581_v27 = vmul.f32 %v1572_v30, %v3311_v37  ;;  %v1580_v50 = vmul.f32 %v1576_v32, %v3308_v36 }
 0x515   : > { %v1577_v11 = vsel %vm737_vm7, %v1567_v10, %v1559_v12  ;;  %v1573_v54 = vsel %vm737_vm7, %v1559_v12, %v1567_v10 }
 0x516   : > { %v1601_v26 = vpop.permute.xlu1 %1600  ;;  %v1583_v33 = vmul.f32 %v1573_v54, %v3311_v37  ;;  %v1582_v44 = vmul.f32 %v1577_v11, %v3308_v36 }
 0x517   : > { %v1608_v10 = vsel %vm759_vm6, %v4007_v5, %v1601_v26 }
 0x518   : > { %v1603_v1 = vpop.permute.xlu0 %1602  ;;  %v1589_v6 = vpack.c.bf16 %v1583_v33, %v1581_v27  ;;  %v1588_v45 = vpack.c.bf16 %v1582_v44, %v1580_v50 }
 0x519   : > { %v1609_v28 = vsel %vm759_vm6, %v1595_v4, %v1603_v1  ;;  %v1613_v54 = vsel %vm759_vm6, %v1603_v1, %v1595_v4  ;;  %v1612_v4 = vsel %vm759_vm6, %v1601_v26, %v4007_v5  ;;  %v1617_v1 = vmul.f32 %v1608_v10, %v3285_v22 }
 0x51a   : > { %1916 = vmatprep.subr.bf16.mxu0 %v1589_v6  ;;  %v1637_v3 = vpop.permute.xlu1 %1636  ;;  %v1619_v27 = vmul.f32 %v1609_v28, %v3285_v22  ;;  %v1618_v28 = vmul.f32 %v1613_v54, %v3282_v21 }
 0x51b   : > { %1917 = vmatpush1.bf16.msra.mxu0 %v1588_v45  ;;  %v1644_v10 = vsel %vm781_vm5, %v4013_v8, %v1637_v3 }
 0x51c   : > { %v1639_v43 = vpop.permute.xlu0 %1638 }
 0x51e   : > { %v4053_v49 = vpop.permute.xlu1 %1672 }
 0x520   : > { %v4055_v29 = vpop.permute.xlu0 %1674 }
 0x522   : > { %v1561_v15 = vpop.permute.xlu1 %1560 }
 0x524   : > { %v1563_v7 = vpop.permute.xlu0 %1562 }
 0x526   : > { %v1597_v58 = vpop.permute.xlu1 %1596 }
 0x528   : > { %v1599_v52 = vpop.permute.xlu0 %1598 }
 0x52a   : > { %v1633_v12 = vpop.permute.xlu1 %1632 }
 0x52c   : > { %v4057_v38 = vpop.permute.xlu0 %1634 }
 0x52e   : > { %v4059_v41 = vpop.permute.xlu1 %1668 }
 0x530   : > { %v4061_v39 = vpop.permute.xlu0 %1670 }
 0x532   : > { %v1569_v2 = vpop.permute.xlu1 %1568 }
 0x533   : > { %v1574_v32 = vsel %vm737_vm7, %v1561_v15, %v1569_v2  ;;  %v1578_v30 = vsel %vm737_vm7, %v1569_v2, %v1561_v15 }
 0x534   : > { %v1571_v11 = vpop.permute.xlu0 %1570  ;;  %v1584_v44 = vmul.f32 %v1578_v30, %v3308_v36  ;;  %v1585_v6 = vmul.f32 %v1574_v32, %v3311_v37  ;;  %v1616_v32 = vmul.f32 %v1612_v4, %v3282_v21 }
 0x535   : > { %v1575_v33 = vsel %vm737_vm7, %v1563_v7, %v1571_v11  ;;  %v1579_v50 = vsel %vm737_vm7, %v1571_v11, %v1563_v7  ;;  %v1645_v11 = vsel %vm781_vm5, %v4015_v34, %v1639_v43 }
 0x536   : > { %v1586_v45 = vmul.f32 %v1579_v50, %v3308_v36  ;;  %v1587_v15 = vmul.f32 %v1575_v33, %v3311_v37  ;;  %v4083_v2 = vpop.permute.xlu1 %1712  ;;  %v1625_v50 = vpack.c.bf16 %v1619_v27, %v1617_v1  ;;  %v1655_v27 = vmul.f32 %v1645_v11, %v3291_v24 }
 0x538   : > { %v4090_v51 = vpop.permute.xlu0 %1714  ;;  %v1591_v7 = vpack.c.bf16 %v1587_v15, %v1585_v6  ;;  %v1590_v30 = vpack.c.bf16 %v1586_v45, %v1584_v44  ;;  %v1624_v44 = vpack.c.bf16 %v1618_v28, %v1616_v32  ;;  %v1649_v6 = vsel %vm781_vm5, %v1639_v43, %v4015_v34 }
 0x539   : > { %v1648_v34 = vsel %vm781_vm5, %v1637_v3, %v4013_v8  ;;  %v1653_v43 = vmul.f32 %v1644_v10, %v3291_v24  ;;  %v1680_v10 = vsel %vm803_vm8, %v4024_v57, %v4053_v49 }
 0x53a   : > { %1918 = vmatprep.subr.bf16.mxu0 %v1591_v7  ;;  %v1605_v33 = vpop.permute.xlu1 %1604 }
 0x53b   : > { %v1610_v5 = vsel %vm759_vm6, %v1597_v58, %v1605_v33  ;;  %v1614_v26 = vsel %vm759_vm6, %v1605_v33, %v1597_v58  ;;  %1919 = vmatpush1.bf16.msra.mxu0 %v1590_v30  ;;  %v1654_v30 = vmul.f32 %v1649_v6, %v3288_v23  ;;  %v1652_v33 = vmul.f32 %v1648_v34, %v3288_v23 }
 0x53c   : > { %v1607_v54 = vpop.permute.xlu0 %1606  ;;  %1920 = vmatprep.subr.bf16.mxu0 %v1625_v50  ;;  %v1620_v15 = vmul.f32 %v1614_v26, %v3282_v21  ;;  %v1621_v4 = vmul.f32 %v1610_v5, %v3285_v22  ;;  %v1681_v50 = vsel %vm803_vm8, %v4029_v59, %v4055_v29  ;;  %v1661_v26 = vpack.c.bf16 %v1655_v27, %v1653_v43 }
 0x53d   : > { %v1611_v45 = vsel %vm759_vm6, %v1599_v52, %v1607_v54  ;;  %v1615_v58 = vsel %vm759_vm6, %v1607_v54, %v1599_v52  ;;  %v1685_v6 = vsel %vm803_vm8, %v4055_v29, %v4029_v59  ;;  %v1691_v27 = vmul.f32 %v1681_v50, %v3330_v56 }
 0x53e   : > { %v1622_v1 = vmul.f32 %v1615_v58, %v3282_v21  ;;  %v1623_v28 = vmul.f32 %v1611_v45, %v3285_v22  ;;  %v1641_v7 = vpop.permute.xlu1 %1640  ;;  %v1684_v59 = vsel %vm803_vm8, %v4053_v49, %v4024_v57  ;;  %v1689_v29 = vmul.f32 %v1680_v10, %v3330_v56 }
 0x53f   : > { %1921 = vmatpush1.bf16.msra.mxu0 %v1624_v44  ;;  %v1646_v8 = vsel %vm781_vm5, %v1633_v12, %v1641_v7  ;;  %v1650_v3 = vsel %vm781_vm5, %v1641_v7, %v1633_v12  ;;  %v1660_v44 = vpack.c.bf16 %v1654_v30, %v1652_v33  ;;  %v1690_v43 = vmul.f32 %v1685_v6, %v3327_v55 }
 0x540   : > { %v4120_v32 = vpop.permute.xlu0 %1710  ;;  %v1627_v52 = vpack.c.bf16 %v1623_v28, %v1621_v4  ;;  %v1626_v11 = vpack.c.bf16 %v1622_v1, %v1620_v15  ;;  %v1656_v58 = vmul.f32 %v1650_v3, %v3288_v23  ;;  %v1657_v15 = vmul.f32 %v1646_v8, %v3291_v24 }
 0x542   : > { %1922 = vmatprep.subr.bf16.mxu0 %v1627_v52  ;;  %v1677_v5 = vpop.permute.xlu1 %1676  ;;  %v1697_v52 = vpack.c.bf16 %v1691_v27, %v1689_v29  ;;  %v1720_v29 = vsel %vm827_vm9, %v4034_v17, %v4083_v2 }
 0x543   : > { %1923 = vmatpush1.bf16.msra.mxu0 %v1626_v11  ;;  %v1688_v11 = vmul.f32 %v1684_v59, %v3327_v55  ;;  %v1682_v33 = vsel %vm803_vm8, %v4059_v41, %v1677_v5  ;;  %v1686_v57 = vsel %vm803_vm8, %v1677_v5, %v4059_v41  ;;  %v1703_v59 = vpack.c.bf16 %v3934_v46, %v3930_v25 }
 0x544   : > { %v1643_v54 = vpop.permute.xlu0 %1642  ;;  %1924 = vmatprep.subr.bf16.mxu0 %v1661_v26  ;;  %v1692_v3 = vmul.f32 %v1686_v57, %v3327_v55  ;;  %v1693_v10 = vmul.f32 %v1682_v33, %v3330_v56  ;;  %v1728_v25 = vmul.f32 %v1720_v29, %v3336_v63 }
 0x545   : > { %v1647_v12 = vsel %vm781_vm5, %v4057_v38, %v1643_v54  ;;  %v1651_v45 = vsel %vm781_vm5, %v1643_v54, %v4057_v38  ;;  %v1696_v8 = vpack.c.bf16 %v1690_v43, %v1688_v11 }
 0x546   : > { %v1658_v4 = vmul.f32 %v1651_v45, %v3288_v23  ;;  %v1659_v1 = vmul.f32 %v1647_v12, %v3291_v24  ;;  %v1709_v28 = vpop.permute.xlu1 %1708  ;;  %v1701_v45 = vpack.c.bf16 %v3894_v42, %v3890_v20  ;;  %v1700_v20 = vpack.c.bf16 %v3870_v48, %v3868_v40 }
 0x547   : > { %1925 = vmatpush1.bf16.msra.mxu0 %v1660_v44  ;;  %v1702_v48 = vpack.c.bf16 %v3914_v47, %v3910_v9 }
 0x548   : > { %v4155_v7 = vpop.permute.xlu0 %1742  ;;  %v1663_v38 = vpack.c.bf16 %v1659_v1, %v1657_v15  ;;  %v1662_v34 = vpack.c.bf16 %v1658_v4, %v1656_v58  ;;  %v1724_v15 = vsel %vm827_vm9, %v4083_v2, %v4034_v17  ;;  %v1721_v4 = vsel %vm827_vm9, %v4039_v31, %v4090_v51 }
 0x54a   : > { %1926 = vmatprep.subr.bf16.mxu0 %v1663_v38  ;;  %v1717_v30 = vpop.permute.xlu1 %1716  ;;  %v1729_v38 = vmul.f32 %v1724_v15, %v3339_v0 }
 0x54b   : > { %1927 = vmatpush1.bf16.msra.mxu0 %v1662_v34  ;;  %v1730_v34 = vmul.f32 %v1721_v4, %v3336_v63  ;;  %v1722_v40 = vsel %vm827_vm9, %v1709_v28, %v1717_v30  ;;  %v1726_v17 = vsel %vm827_vm9, %v1717_v30, %v1709_v28 }
 0x54c   : > { %v1679_v49 = vpop.permute.xlu0 %1678  ;;  %1928 = vmatprep.subr.bf16.mxu0 %v1697_v52  ;;  %v1732_v43 = vmul.f32 %v1722_v40, %v3336_v63  ;;  %v1733_v33 = vmul.f32 %v1726_v17, %v3339_v0 }
 0x54d   : > { %v1683_v50 = vsel %vm803_vm8, %v4061_v39, %v1679_v49  ;;  %v1687_v26 = vsel %vm803_vm8, %v1679_v49, %v4061_v39  ;;  %v1725_v39 = vsel %vm827_vm9, %v4090_v51, %v4039_v31  ;;  %v1736_v11 = vpack.c.bf16 %v1730_v34, %v1728_v25 }
 0x54e   : > { %v1694_v54 = vmul.f32 %v1687_v26, %v3327_v55  ;;  %v1695_v41 = vmul.f32 %v1683_v50, %v3330_v56  ;;  %v1741_v5 = vpop.permute.xlu1 %1740  ;;  %v1731_v42 = vmul.f32 %v1725_v39, %v3339_v0 }
 0x54f   : > { %1929 = vmatpush1.bf16.msra.mxu0 %v1696_v8 }
 0x550   : > { %v1751_v44 = vpop.permute.xlu0 %1750  ;;  %v1699_v6 = vpack.c.bf16 %v1695_v41, %v1693_v10  ;;  %v1698_v27 = vpack.c.bf16 %v1694_v54, %v1692_v3  ;;  %v1737_v31 = vpack.c.bf16 %v1731_v42, %v1729_v38 }
 0x551   : > { %v1761_v9 = vsel %vm849_vm11, %v1751_v44, %v4155_v7  ;;  %v1757_v8 = vsel %vm849_vm11, %v4155_v7, %v1751_v44 }
 0x552   : > { %1930 = vmatprep.subr.bf16.mxu0 %v1699_v6  ;;  %v1749_v12 = vpop.permute.xlu1 %1748  ;;  %v1767_v3 = vmul.f32 %v1761_v9, %v3355_v14  ;;  %v1766_v6 = vmul.f32 %v1757_v8, %v3352_v13 }
 0x553   : > { %1931 = vmatpush1.bf16.msra.mxu0 %v1698_v27  ;;  %v1760_v2 = vsel %vm849_vm11, %v1749_v12, %v1741_v5  ;;  %v1756_v47 = vsel %vm849_vm11, %v1741_v5, %v1749_v12 }
 0x554   : > { %v1747_v58 = vpop.permute.xlu0 %1746  ;;  %1932 = vmatprep.subr.bf16.mxu0 %v1701_v45  ;;  %v1765_v57 = vmul.f32 %v1760_v2, %v3355_v14  ;;  %v1764_v10 = vmul.f32 %v1756_v47, %v3352_v13 }
 0x556   : > { %v1745_v1 = vpop.permute.xlu1 %1744  ;;  %v1773_v45 = vpack.c.bf16 %v1767_v3, %v1765_v57  ;;  %v1772_v15 = vpack.c.bf16 %v1766_v6, %v1764_v10  ;;  %v2792_v6 = vld [vmem:[%s4846_s6 + $0x1c] ss:$12 sps:$4 sm:$0xff]  }
 0x557   : > { %1933 = vmatpush1.bf16.msra.mxu0 %v1700_v20 }
 0x558   : > { %v1779_v51 = vpop.permute.xlu0 %1778  ;;  %1934 = vmatprep.subr.bf16.mxu0 %v1703_v59 }
 0x55a   : > { %v1753_v46 = vpop.permute.xlu1 %1752 }
 0x55b   : > { %1935 = vmatpush1.bf16.msra.mxu0 %v1702_v48  ;;  %v1758_v5 = vsel %vm849_vm11, %v1745_v1, %v1753_v46  ;;  %v1762_v27 = vsel %vm849_vm11, %v1753_v46, %v1745_v1 }
 0x55c   : > { %v1719_v52 = vpop.permute.xlu0 %1718  ;;  %1936 = vmatprep.subr.bf16.mxu0 %v1737_v31  ;;  %v1768_v44 = vmul.f32 %v1758_v5, %v3352_v13  ;;  %v1769_v4 = vmul.f32 %v1762_v27, %v3355_v14 }
 0x55d   : > { %v1723_v28 = vsel %vm827_vm9, %v4120_v32, %v1719_v52  ;;  %v1727_v30 = vsel %vm827_vm9, %v1719_v52, %v4120_v32 }
 0x55e   : > { %v1734_v49 = vmul.f32 %v1723_v28, %v3336_v63  ;;  %v1735_v50 = vmul.f32 %v1727_v30, %v3339_v0  ;;  %v1777_v26 = vpop.permute.xlu1 %1776 }
 0x55f   : > { %1937 = vmatpush1.bf16.msra.mxu0 %v1736_v11 }
 0x560   : > { %v1787_v54 = vpop.permute.xlu0 %1786  ;;  %v1739_v32 = vpack.c.bf16 %v1735_v50, %v1733_v33  ;;  %v1738_v41 = vpack.c.bf16 %v1734_v49, %v1732_v43 }
 0x561   : > { %v1797_v20 = vsel %vm871_vm13, %v1787_v54, %v1779_v51  ;;  %v1793_v48 = vsel %vm871_vm13, %v1779_v51, %v1787_v54 }
 0x562   : > { %v1785_v12 = vpop.permute.xlu1 %1784  ;;  %1938 = vmatprep.subr.bf16.mxu0 %v1739_v32  ;;  %v1803_v25 = vmul.f32 %v1797_v20, %v3383_v61  ;;  %v1802_v52 = vmul.f32 %v1793_v48, %v3380_v60  ;;  %v2789_v32 = vld [vmem:[%s4846_s6] ss:$12 sps:$4 sm:$0xff]  }
 0x563   : > { %v1796_v7 = vsel %vm871_vm13, %v1785_v12, %v1777_v26  ;;  %1939 = vmatpush1.bf16.msra.mxu0 %v1738_v41  ;;  %v1792_v59 = vsel %vm871_vm13, %v1777_v26, %v1785_v12 }
 0x564   : > { %v1755_v39 = vpop.permute.xlu0 %1754  ;;  %1940 = vmatprep.subr.bf16.mxu0 %v1773_v45  ;;  %v1801_v29 = vmul.f32 %v1796_v7, %v3383_v61 }
 0x565   : > { %v1759_v42 = vsel %vm849_vm11, %v1747_v58, %v1755_v39  ;;  %v1763_v1 = vsel %vm849_vm11, %v1755_v39, %v1747_v58  ;;  %v1800_v58 = vmul.f32 %v1792_v59, %v3380_v60 }
 0x566   : > { %v1770_v38 = vmul.f32 %v1759_v42, %v3352_v13  ;;  %v1771_v34 = vmul.f32 %v1763_v1, %v3355_v14  ;;  %v1781_v40 = vpop.permute.xlu1 %1780  ;;  %v1809_v43 = vpack.c.bf16 %v1803_v25, %v1801_v29  ;;  %v2794_v29 = vld [vmem:[%s4846_s6 + $0x18] ss:$12 sps:$4 sm:$0xff]  }
 0x567   : > { %1941 = vmatpush1.bf16.msra.mxu0 %v1772_v15  ;;  %v1808_v30 = vpack.c.bf16 %v1802_v52, %v1800_v58  ;;  %v2795_v52 = vld [vmem:[%s4846_s6 + $0x8] ss:$12 sps:$4 sm:$0xff]  }
 0x568   : > { %v1783_v46 = vpop.permute.xlu0 %1782  ;;  %v1775_v31 = vpack.c.bf16 %v1771_v34, %v1769_v4  ;;  %v1774_v17 = vpack.c.bf16 %v1770_v38, %v1768_v44 }
 0x56a   : > { %v1789_v2 = vpop.permute.xlu1 %1788  ;;  %1942 = vmatprep.subr.bf16.mxu0 %v1775_v31 }
 0x56b   : > { %v1794_v11 = vsel %vm871_vm13, %v1781_v40, %v1789_v2  ;;  %v1798_v9 = vsel %vm871_vm13, %v1789_v2, %v1781_v40  ;;  %1943 = vmatpush1.bf16.msra.mxu0 %v1774_v17 }
 0x56c   : > { %v1791_v51 = vpop.permute.xlu0 %1790  ;;  %1944 = vmatprep.subr.bf16.mxu0 %v1809_v43  ;;  %v1804_v33 = vmul.f32 %v1794_v11, %v3380_v60  ;;  %v1805_v57 = vmul.f32 %v1798_v9, %v3383_v61  ;;  %v2796_v11 = vld [vmem:[%s4846_s6 + $0x20] ss:$12 sps:$4 sm:$0xff]  }
 0x56d   : > { %v1795_v47 = vsel %vm871_vm13, %v1783_v46, %v1791_v51  ;;  %v1799_v28 = vsel %vm871_vm13, %v1791_v51, %v1783_v46 }
 0x56e   : > { %v1806_v49 = vmul.f32 %v1795_v47, %v3380_v60  ;;  %v1807_v50 = vmul.f32 %v1799_v28, %v3383_v61  ;;  %v1813_v26 = vpop.permute.xlu1 %1812 }
 0x56f   : > { %1945 = vmatpush1.bf16.msra.mxu0 %v1808_v30 }
 0x570   : > { %v1815_v8 = vpop.permute.xlu0 %1814  ;;  %v1811_v3 = vpack.c.bf16 %v1807_v50, %v1805_v57  ;;  %v1810_v10 = vpack.c.bf16 %v1806_v49, %v1804_v33 }
 0x572   : > { %v1821_v54 = vpop.permute.xlu1 %1820  ;;  %1946 = vmatprep.subr.bf16.mxu0 %v1811_v3 }
 0x573   : > { %v1828_v41 = vsel %vm893_vm14, %v1813_v26, %v1821_v54  ;;  %v1832_v5 = vsel %vm893_vm14, %v1821_v54, %v1813_v26  ;;  %1947 = vmatpush1.bf16.msra.mxu0 %v1810_v10 }
 0x574   : > { %v1823_v27 = vpop.permute.xlu0 %1822  ;;  %v1836_v7 = vmul.f32 %v1828_v41, %v3403_v19  ;;  %v1837_v44 = vmul.f32 %v1832_v5, %v3400_v18 }
 0x575   : > { %v1829_v12 = vsel %vm893_vm14, %v1815_v8, %v1823_v27  ;;  %v1833_v45 = vsel %vm893_vm14, %v1823_v27, %v1815_v8 }
 0x576   : > { %v1838_v39 = vmul.f32 %v1829_v12, %v3403_v19  ;;  %v1839_v15 = vmul.f32 %v1833_v45, %v3400_v18  ;;  %v1817_v4 = vpop.permute.xlu1 %1816  ;;  %1949 = vmatmul.mubr.bf16.vlgmr.msra.gmra.mrb[4].mxu0 %v2789_v32 }
 0x577   : > { %1958 = vmatprep.mubr.bf16.mxu0 %v2792_v6 }
 0x578   : > { %v1844_v20 = vpack.c.bf16 %v1838_v39, %v1836_v7  ;;  %v1819_v42 = vpop.permute.xlu0 %1818  ;;  %v1845_v1 = vpack.c.bf16 %v1839_v15, %v1837_v44 }
 0x57a   : > { %v1825_v59 = vpop.permute.xlu1 %1824  ;;  %1969 = vmatprep.subr.bf16.mxu0 %v1845_v1 }
 0x57b   : > { %v1830_v38 = vsel %vm893_vm14, %v1817_v4, %v1825_v59  ;;  %v1834_v34 = vsel %vm893_vm14, %v1825_v59, %v1817_v4  ;;  %1970 = vmatpush1.bf16.msra.mxu0 %v1844_v20 }
 0x57c   : > { %v1827_v40 = vpop.permute.xlu0 %1826  ;;  %v1840_v46 = vmul.f32 %v1830_v38, %v3403_v19  ;;  %v1841_v31 = vmul.f32 %v1834_v34, %v3400_v18 }
 0x57d   : > { %v1831_v48 = vsel %vm893_vm14, %v1819_v42, %v1827_v40  ;;  %v1835_v25 = vsel %vm893_vm14, %v1827_v40, %v1819_v42  ;;  %v2847_v42 = vmov 1966171168  }
 0x57e   : > { %v1842_v17 = vmul.f32 %v1831_v48, %v3403_v19  ;;  %v1843_v58 = vmul.f32 %v1835_v25, %v3400_v18  ;;  %1959 = vmatmul.mubr.bf16.gmra.mrb[8].mxu0 %v2794_v29  ;;  %v2343_v1 = vunpack.c.l.s4 %v2847_v42  ;;  %v4444_v29 = vld.sshfl [vmem:[%s4847_s7] sm:$0x13 pattern:$0x75316420] }
 0x57f   : > { %2001 = vmatprep.mubr.bf16.mxu0 %v4892_v62  ;;  %4895 = vst [vmem:[#allocation14_spill] sm:$0xff] %v4444_v29  ;;  %v2341_v34 = vcombine.high %v4444_v29, %v4444_v29 }
 0x580   : > { %v1846_v2 = vpack.c.bf16 %v1842_v17, %v1840_v46  ;;  %v1847_v43 = vpack.c.bf16 %v1843_v58, %v1841_v31  ;;  %v2344_v59 = vunpack.c.0.s8 %v2343_v1  ;;  %v2323_v58 = vld [vmem:[#allocation5] sm:$0x1] }
 0x582   : > { %1971 = vmatprep.subr.bf16.mxu0 %v1847_v43  ;;  %v4451_v40 = vsub.s32 %v2344_v59, %v3045_v35 }
 0x583   : > { %1972 = vmatpush1.bf16.msra.mxu0 %v1846_v2 }
 0x584   : > { %4896 = vst [vmem:[#allocation15_spill] sm:$0xff] %v4451_v40  ;;  %v2355_v25 = vrot.slane %v2341_v34, %v4451_v40 }
 0x586   : > { %2624 = vmatmul.mubr.msk.bf16.vlgmr.msra.gmra.mrb[4].mxu0 %vm1435_vm0, %v2795_v52  ;;  %2394 = vmatprep.mubr.bf16.mxu1 %v2355_v25 }
 0x587   : > { %2011 = vmatprep.mubr.bf16.mxu0 %v4892_v62 }
 0x58b   : > { %v1863_v9 = vpop.permute.xlu1 %1862 }
 0x58d   : > { %v1868_v30 = vpop.permute.xlu0 %1867 }
 0x58e   : > { %2625 = vmatmul.mubr.msk.bf16.gmra.mrb[8].mxu0 %vm1435_vm0, %v2796_v11 }
 0x58f   : > { %2435 = vmatprep.mubr.bf16.mxu0 %v4892_v62  ;;  %v1873_v6 = vpop.permute.xlu1 %1872 }
 0x591   : > { %v1878_v12 = vpop.permute.xlu0 %1877 }
 0x659   : > { %v2003_v51 = vpop.f32.mrb[4].mxu0 }
 0x65a   : > { %v2702_v47 = vadd.f32 %v2003_v51, %v1863_v9  ;;  %v2005_v28 = vpop.f32.mrb[5].mxu0 }
 0x65b   : > { %v2007_v33 = vpop.f32.mrb[6].mxu0  ;;  %v2703_v54 = vadd.f32 %v2005_v28, %v1863_v9 }
 0x65c   : > { %v4311_v57 = vmax.f32 %v2702_v47, 0.0  ;;  %v2704_v49 = vadd.f32 %v2007_v33, %v1868_v30  ;;  %v2009_v50 = vpop.f32.mrb[7].mxu0 }
 0x65d   : > { %v2705_v32 = vadd.f32 %v2009_v50, %v1868_v30  ;;  %v4337_v41 = vmax.f32 %v2703_v54, 0.0 }
 0x65e   : > { %v4313_v26 = vmax.f32 %v2704_v49, 0.0  ;;  %2030 = vrot.lane.b32.xlu1 %v4311_v57, %s2840_s21 }
 0x65f   : > { %v4341_v5 = vmax.f32 %v2705_v32, 0.0 }
 0x660   : > { %2032 = vrot.lane.b32.xlu0 %v4313_v26, %s2840_s21 }
 0x661   : > { %v2013_v8 = vpop.f32.mrb[8].mxu0 }
 0x662   : > { %v2015_v62 = vpop.f32.mrb[9].mxu0  ;;  %2066 = vrot.lane.b32.xlu1 %v4311_v57, %s2839_s18  ;;  %v2706_v27 = vadd.f32 %v2013_v8, %v1873_v6 }
 0x663   : > { %v2017_v3 = vpop.f32.mrb[10].mxu0  ;;  %v2707_v39 = vadd.f32 %v2015_v62, %v1873_v6 }
 0x664   : > { %v2019_v10 = vpop.f32.mrb[11].mxu0  ;;  %2068 = vrot.lane.b32.xlu0 %v4313_v26, %s2839_s18  ;;  %v2708_v45 = vadd.f32 %v2017_v3, %v1878_v12  ;;  %v4361_v7 = vmax.f32 %v2706_v27, 0.0 }
 0x665   : > { %v2709_v15 = vadd.f32 %v2019_v10, %v1878_v12  ;;  %v4385_v4 = vmax.f32 %v2707_v39, 0.0 }
 0x666   : > { %2102 = vrot.lane.b32.xlu1 %v4311_v57, %s4894_s28  ;;  %v4365_v44 = vmax.f32 %v2708_v45, 0.0 }
 0x667   : > { %v4389_v20 = vmax.f32 %v2709_v15, 0.0 }
 0x668   : > { %2104 = vrot.lane.b32.xlu0 %v4313_v26, %s4894_s28 }
 0x66a   : > { %2138 = vrot.lane.b32.xlu1 %v4311_v57, %s4893_s27 }
 0x66c   : > { %2140 = vrot.lane.b32.xlu0 %v4313_v26, %s4893_s27 }
 0x66e   : > { %2178 = vrot.lane.b32.xlu1 %v4311_v57, %s4889_s20 }
 0x670   : > { %2180 = vrot.lane.b32.xlu0 %v4313_v26, %s4889_s20 }
 0x672   : > { %2214 = vrot.lane.b32.xlu1 %v4311_v57, %s4890_s17 }
 0x674   : > { %2216 = vrot.lane.b32.xlu0 %v4313_v26, %s4890_s17 }
 0x676   : > { %2038 = vrot.lane.b32.xlu1 %v4337_v41, %s2840_s21 }
 0x678   : > { %2040 = vrot.lane.b32.xlu0 %v4341_v5, %s2840_s21 }
 0x67a   : > { %2074 = vrot.lane.b32.xlu1 %v4337_v41, %s2839_s18 }
 0x67c   : > { %2076 = vrot.lane.b32.xlu0 %v4341_v5, %s2839_s18 }
 0x67e   : > { %2110 = vrot.lane.b32.xlu1 %v4337_v41, %s4894_s28 }
 0x680   : > { %2112 = vrot.lane.b32.xlu0 %v4341_v5, %s4894_s28 }
 0x682   : > { %2146 = vrot.lane.b32.xlu1 %v4337_v41, %s4893_s27 }
 0x684   : > { %2148 = vrot.lane.b32.xlu0 %v4341_v5, %s4893_s27 }
 0x686   : > { %2186 = vrot.lane.b32.xlu1 %v4337_v41, %s4889_s20 }
 0x688   : > { %2188 = vrot.lane.b32.xlu0 %v4341_v5, %s4889_s20 }
 0x68a   : > { %2034 = vrot.lane.b32.xlu1 %v4361_v7, %s2840_s21 }
 0x68c   : > { %2036 = vrot.lane.b32.xlu0 %v4365_v44, %s2840_s21 }
 0x68e   : > { %2070 = vrot.lane.b32.xlu1 %v4361_v7, %s2839_s18 }
 0x690   : > { %2072 = vrot.lane.b32.xlu0 %v4365_v44, %s2839_s18 }
 0x692   : > { %2106 = vrot.lane.b32.xlu1 %v4361_v7, %s4894_s28 }
 0x694   : > { %2108 = vrot.lane.b32.xlu0 %v4365_v44, %s4894_s28 }
 0x696   : > { %2142 = vrot.lane.b32.xlu1 %v4361_v7, %s4893_s27 }
 0x698   : > { %2144 = vrot.lane.b32.xlu0 %v4365_v44, %s4893_s27 }
 0x69a   : > { %2182 = vrot.lane.b32.xlu1 %v4361_v7, %s4889_s20 }
 0x69c   : > { %2184 = vrot.lane.b32.xlu0 %v4365_v44, %s4889_s20 }
 0x69e   : > { %2042 = vrot.lane.b32.xlu1 %v4385_v4, %s2840_s21 }
 0x6a0   : > { %2044 = vrot.lane.b32.xlu0 %v4389_v20, %s2840_s21 }
 0x6a2   : > { %2222 = vrot.lane.b32.xlu1 %v4337_v41, %s4890_s17 }
 0x6a4   : > { %2224 = vrot.lane.b32.xlu0 %v4341_v5, %s4890_s17 }
 0x6a6   : > { %2078 = vrot.lane.b32.xlu1 %v4385_v4, %s2839_s18 }
 0x6a8   : > { %2080 = vrot.lane.b32.xlu0 %v4389_v20, %s2839_s18 }
 0x6aa   : > { %2114 = vrot.lane.b32.xlu1 %v4385_v4, %s4894_s28 }
 0x6ac   : > { %2220 = vrot.lane.b32.xlu0 %v4365_v44, %s4890_s17 }
 0x6ae   : > { %2150 = vrot.lane.b32.xlu1 %v4385_v4, %s4893_s27 }
 0x6b0   : > { %2116 = vrot.lane.b32.xlu0 %v4389_v20, %s4894_s28 }
 0x6b2   : > { %2190 = vrot.lane.b32.xlu1 %v4385_v4, %s4889_s20 }
 0x6b4   : > { %2252 = vrot.lane.b32.xlu0 %v4313_v26, %s4891_s22 }
 0x6b6   : > { %2218 = vrot.lane.b32.xlu1 %v4361_v7, %s4890_s17 }
 0x6b8   : > { %2152 = vrot.lane.b32.xlu0 %v4389_v20, %s4893_s27 }
 0x6ba   : > { %2226 = vrot.lane.b32.xlu1 %v4385_v4, %s4890_s17 }
 0x6bc   : > { %2260 = vrot.lane.b32.xlu0 %v4341_v5, %s4891_s22 }
 0x6be   : > { %2250 = vrot.lane.b32.xlu1 %v4311_v57, %s4891_s22 }
 0x6c0   : > { %2288 = vrot.lane.b32.xlu0 %v4313_v26, %s2846_s23 }
 0x6c2   : > { %2258 = vrot.lane.b32.xlu1 %v4337_v41, %s4891_s22 }
 0x6c4   : > { %2296 = vrot.lane.b32.xlu0 %v4341_v5, %s2846_s23 }
 0x6c6   : > { %2286 = vrot.lane.b32.xlu1 %v4311_v57, %s2846_s23 }
 0x6c8   : > { %2192 = vrot.lane.b32.xlu0 %v4389_v20, %s4889_s20 }
 0x6ca   : > { %2294 = vrot.lane.b32.xlu1 %v4337_v41, %s2846_s23 }
 0x6cc   : > { %2256 = vrot.lane.b32.xlu0 %v4365_v44, %s4891_s22 }
 0x6ce   : > { %2254 = vrot.lane.b32.xlu1 %v4361_v7, %s4891_s22 }
 0x6d0   : > { %2228 = vrot.lane.b32.xlu0 %v4389_v20, %s4890_s17  ;;  %v2031_v38 = vpop.permute.xlu1 %2030 }
 0x6d2   : > { %v2033_v48 = vpop.permute.xlu0 %2032  ;;  %2262 = vrot.lane.b32.xlu1 %v4385_v4, %s4891_s22 }
 0x6d4   : > { %2292 = vrot.lane.b32.xlu0 %v4365_v44, %s2846_s23  ;;  %v4458_v46 = vpop.permute.xlu1 %2066 }
 0x6d6   : > { %v4460_v31 = vpop.permute.xlu0 %2068  ;;  %2290 = vrot.lane.b32.xlu1 %v4361_v7, %s2846_s23 }
 0x6d8   : > { %2264 = vrot.lane.b32.xlu0 %v4389_v20, %s4891_s22  ;;  %v2103_v35 = vpop.permute.xlu1 %2102  ;;  %s4916_s22 = scalar_lea.vmem %s4853_s13, %s2969_s26 }
 0x6da   : > { %v2105_v17 = vpop.permute.xlu0 %2104  ;;  %2298 = vrot.lane.b32.xlu1 %v4385_v4, %s2846_s23 }
 0x6dc   : > { %2300 = vrot.lane.b32.xlu0 %v4389_v20, %s2846_s23  ;;  %v2139_v2 = vpop.permute.xlu1 %2138  ;;  %s2444_s23 = sld [smem:[#allocation6]] }
 0x6de   : > { %v2141_v43 = vpop.permute.xlu0 %2140  ;;  %2326 = vperm.xlu1 %2778, %v2323_v58  }
 0x6e0   : > { %v2179_v52 = vpop.permute.xlu1 %2178 }
 0x6e2   : > { %v2181_v11 = vpop.permute.xlu0 %2180 }
 0x6e4   : > { %v4470_v9 = vpop.permute.xlu1 %2214 }
 0x6e6   : > { %v4472_v51 = vpop.permute.xlu0 %2216 }
 0x6e8   : > { %v2039_v47 = vpop.permute.xlu1 %2038 }
 0x6e9   : > { %v2046_v28 = vsel %vm737_vm7, %v2031_v38, %v2039_v47  ;;  %v2050_v30 = vsel %vm737_vm7, %v2039_v47, %v2031_v38 }
 0x6ea   : > { %v2041_v33 = vpop.permute.xlu0 %2040  ;;  %v2054_v8 = vmul.f32 %v2050_v30, %v3308_v36  ;;  %v2055_v62 = vmul.f32 %v2046_v28, %v3311_v37 }
 0x6eb   : > { %v2047_v49 = vsel %vm737_vm7, %v2033_v48, %v2041_v33  ;;  %v2051_v50 = vsel %vm737_vm7, %v2041_v33, %v2033_v48 }
 0x6ec   : > { %v2056_v3 = vmul.f32 %v2051_v50, %v3308_v36  ;;  %v2057_v10 = vmul.f32 %v2047_v49, %v3311_v37  ;;  %v2075_v54 = vpop.permute.xlu1 %2074 }
 0x6ed   : > { %v2086_v32 = vsel %vm759_vm6, %v2075_v54, %v4458_v46 }
 0x6ee   : > { %v2062_v6 = vpack.c.bf16 %v2056_v3, %v2054_v8  ;;  %v2077_v27 = vpop.permute.xlu0 %2076  ;;  %v2063_v12 = vpack.c.bf16 %v2057_v10, %v2055_v62  ;;  %v4493_v39 = vmul.f32 %v2086_v32, %v3282_v21  ;;  %v2082_v8 = vsel %vm759_vm6, %v4458_v46, %v2075_v54 }
 0x6ef   : > { %v2087_v45 = vsel %vm759_vm6, %v2077_v27, %v4460_v31  ;;  %v2091_v46 = vmul.f32 %v2082_v8, %v3285_v22 }
 0x6f0   : > { %v4496_v15 = vmul.f32 %v2087_v45, %v3282_v21  ;;  %2362 = vmatprep.subr.bf16.mxu1 %v2063_v12  ;;  %v2111_v42 = vpop.permute.xlu1 %2110 }
 0x6f1   : > { %v2118_v1 = vsel %vm781_vm5, %v2103_v35, %v2111_v42  ;;  %v2122_v59 = vsel %vm781_vm5, %v2111_v42, %v2103_v35  ;;  %2363 = vmatpush1.bf16.msra.mxu1 %v2062_v6 }
 0x6f2   : > { %v2113_v34 = vpop.permute.xlu0 %2112  ;;  %v4509_v58 = vmul.f32 %v2122_v59, %v3288_v23  ;;  %v4512_v47 = vmul.f32 %v2118_v1, %v3291_v24 }
 0x6f3   : > { %v2119_v48 = vsel %vm781_vm5, %v2105_v17, %v2113_v34  ;;  %v2123_v25 = vsel %vm781_vm5, %v2113_v34, %v2105_v17 }
 0x6f4   : > { %v4515_v28 = vmul.f32 %v2123_v25, %v3288_v23  ;;  %v4518_v35 = vmul.f32 %v2119_v48, %v3291_v24  ;;  %v2147_v30 = vpop.permute.xlu1 %2146 }
 0x6f5   : > { %v2154_v33 = vsel %vm803_vm8, %v2139_v2, %v2147_v30  ;;  %v2158_v49 = vsel %vm803_vm8, %v2147_v30, %v2139_v2 }
 0x6f6   : > { %v2149_v50 = vpop.permute.xlu0 %2148  ;;  %v4533_v10 = vmul.f32 %v2158_v49, %v3327_v55  ;;  %v4536_v32 = vmul.f32 %v2154_v33, %v3330_v56 }
 0x6f7   : > { %v2155_v62 = vsel %vm803_vm8, %v2141_v43, %v2149_v50  ;;  %v2159_v3 = vsel %vm803_vm8, %v2149_v50, %v2141_v43  ;;  %v2083_v50 = vsel %vm759_vm6, %v4460_v31, %v2077_v27 }
 0x6f8   : > { %v4539_v2 = vmul.f32 %v2159_v3, %v3327_v55  ;;  %v4542_v6 = vmul.f32 %v2155_v62, %v3330_v56  ;;  %v2187_v12 = vpop.permute.xlu1 %2186  ;;  %v2093_v53 = vmul.f32 %v2083_v50, %v3285_v22 }
 0x6f9   : > { %v2194_v45 = vsel %vm827_vm9, %v2179_v52, %v2187_v12  ;;  %v2198_v42 = vsel %vm827_vm9, %v2187_v12, %v2179_v52 }
 0x6fa   : > { %v2189_v1 = vpop.permute.xlu0 %2188  ;;  %v4557_v25 = vmul.f32 %v2194_v45, %v3336_v63  ;;  %v4560_v30 = vmul.f32 %v2198_v42, %v3339_v0 }
 0x6fb   : > { %v2195_v34 = vsel %vm827_vm9, %v2181_v11, %v2189_v1  ;;  %v2199_v48 = vsel %vm827_vm9, %v2189_v1, %v2181_v11 }
 0x6fc   : > { %v4563_v52 = vmul.f32 %v2195_v34, %v3336_v63  ;;  %v4566_v33 = vmul.f32 %v2199_v48, %v3339_v0  ;;  %v2035_v49 = vpop.permute.xlu1 %2034 }
 0x6fe   : > { %v2037_v62 = vpop.permute.xlu0 %2036 }
 0x700   : > { %v2071_v3 = vpop.permute.xlu1 %2070 }
 0x702   : > { %v2073_v12 = vpop.permute.xlu0 %2072 }
 0x704   : > { %v2107_v45 = vpop.permute.xlu1 %2106 }
 0x706   : > { %v2109_v1 = vpop.permute.xlu0 %2108 }
 0x708   : > { %v4572_v42 = vpop.permute.xlu1 %2142 }
 0x70a   : > { %v4574_v43 = vpop.permute.xlu0 %2144 }
 0x70c   : > { %v4576_v34 = vpop.permute.xlu1 %2182 }
 0x70e   : > { %v4578_v48 = vpop.permute.xlu0 %2184 }
 0x710   : > { %v2043_v59 = vpop.permute.xlu1 %2042 }
 0x711   : > { %v2048_v11 = vsel %vm737_vm7, %v2035_v49, %v2043_v59  ;;  %v2052_v17 = vsel %vm737_vm7, %v2043_v59, %v2035_v49 }
 0x712   : > { %v2045_v38 = vpop.permute.xlu0 %2044  ;;  %v2058_v27 = vmul.f32 %v2052_v17, %v3308_v36  ;;  %v2059_v40 = vmul.f32 %v2048_v11, %v3311_v37 }
 0x713   : > { %v2049_v29 = vsel %vm737_vm7, %v2037_v62, %v2045_v38  ;;  %v2053_v31 = vsel %vm737_vm7, %v2045_v38, %v2037_v62 }
 0x714   : > { %v2060_v60 = vmul.f32 %v2053_v31, %v3308_v36  ;;  %v2061_v59 = vmul.f32 %v2049_v29, %v3311_v37  ;;  %v2223_v49 = vpop.permute.xlu1 %2222  ;;  %v2099_v29 = vpack.c.bf16 %v2093_v53, %v2091_v46 }
 0x715   : > { %v2230_v54 = vsel %vm849_vm11, %v4470_v9, %v2223_v49  ;;  %v2234_v50 = vsel %vm849_vm11, %v2223_v49, %v4470_v9 }
 0x716   : > { %v2064_v38 = vpack.c.bf16 %v2060_v60, %v2058_v27  ;;  %v2225_v62 = vpop.permute.xlu0 %2224  ;;  %v2065_v17 = vpack.c.bf16 %v2061_v59, %v2059_v40  ;;  %v4613_v8 = vmul.f32 %v2230_v54, %v3352_v13  ;;  %v4616_v11 = vmul.f32 %v2234_v50, %v3355_v14 }
 0x717   : > { %v2231_v36 = vsel %vm849_vm11, %v4472_v51, %v2225_v62  ;;  %v2235_v37 = vsel %vm849_vm11, %v2225_v62, %v4472_v51 }
 0x718   : > { %v4619_v9 = vmul.f32 %v2231_v36, %v3352_v13  ;;  %v4622_v60 = vmul.f32 %v2235_v37, %v3355_v14  ;;  %2364 = vmatprep.subr.bf16.mxu1 %v2065_v17  ;;  %v2079_v40 = vpop.permute.xlu1 %2078  ;;  %v4897_v17 = vpack.c.bf16 %v4496_v15, %v4493_v39 }
 0x719   : > { %v2084_v31 = vsel %vm759_vm6, %v2071_v3, %v2079_v40  ;;  %v2088_v53 = vsel %vm759_vm6, %v2079_v40, %v2071_v3  ;;  %2365 = vmatpush1.bf16.msra.mxu1 %v2064_v38 }
 0x71a   : > { %v2246_v51 = vpack.c.bf16 %v4619_v9, %v4613_v8  ;;  %v2081_v27 = vpop.permute.xlu0 %2080  ;;  %2366 = vmatprep.subr.bf16.mxu1 %v2099_v29  ;;  %v2247_v59 = vpack.c.bf16 %v4622_v60, %v4616_v11  ;;  %v2094_v54 = vmul.f32 %v2088_v53, %v3282_v21  ;;  %v2095_v50 = vmul.f32 %v2084_v31, %v3285_v22 }
 0x71b   : > { %v2085_v49 = vsel %vm759_vm6, %v2073_v12, %v2081_v27  ;;  %v2089_v46 = vsel %vm759_vm6, %v2081_v27, %v2073_v12 }
 0x71c   : > { %v2096_v3 = vmul.f32 %v2089_v46, %v3282_v21  ;;  %v2097_v38 = vmul.f32 %v2085_v49, %v3285_v22  ;;  %v2115_v62 = vpop.permute.xlu1 %2114  ;;  %v4898_v22 = vpack.c.bf16 %v4518_v35, %v4512_v47 }
 0x71d   : > { %2367 = vmatpush1.bf16.msra.mxu1 %v4897_v17  ;;  %v2120_v12 = vsel %vm781_vm5, %v2107_v45, %v2115_v62  ;;  %v2124_v31 = vsel %vm781_vm5, %v2115_v62, %v2107_v45 }
 0x71e   : > { %v2100_v36 = vpack.c.bf16 %v2096_v3, %v2094_v54  ;;  %v4643_v37 = vpop.permute.xlu0 %2220  ;;  %v2101_v29 = vpack.c.bf16 %v2097_v38, %v2095_v50  ;;  %v2130_v53 = vmul.f32 %v2124_v31, %v3288_v23  ;;  %v2131_v27 = vmul.f32 %v2120_v12, %v3291_v24 }
 0x71f   : > { %v4899_v54 = vpack.c.bf16 %v4515_v28, %v4509_v58  ;;  %v4900_v58 = vpack.c.bf16 %v4542_v6, %v4536_v32  ;;  %v4901_v32 = vpack.c.bf16 %v4539_v2, %v4533_v10  ;;  %v2177_v10 = vpack.c.bf16 %v4389_v20, %v4385_v4 }
 0x720   : > { %2368 = vmatprep.subr.bf16.mxu1 %v2101_v29  ;;  %v2151_v40 = vpop.permute.xlu1 %2150 }
 0x721   : > { %2369 = vmatpush1.bf16.msra.mxu1 %v2100_v36 }
 0x722   : > { %v2117_v21 = vpop.permute.xlu0 %2116  ;;  %2370 = vmatprep.subr.bf16.mxu1 %v4898_v22  ;;  %v2176_v22 = vpack.c.bf16 %v4365_v44, %v4361_v7  ;;  %v4902_v7 = vpack.c.bf16 %v4566_v33, %v4560_v30 }
 0x723   : > { %v2121_v39 = vsel %vm781_vm5, %v2109_v1, %v2117_v21  ;;  %v2125_v15 = vsel %vm781_vm5, %v2117_v21, %v2109_v1  ;;  %v2156_v1 = vsel %vm803_vm8, %v4572_v42, %v2151_v40 }
 0x724   : > { %v2132_v49 = vmul.f32 %v2125_v15, %v3288_v23  ;;  %v2133_v45 = vmul.f32 %v2121_v39, %v3291_v24  ;;  %v2191_v46 = vpop.permute.xlu1 %2190  ;;  %v2160_v23 = vsel %vm803_vm8, %v2151_v40, %v4572_v42  ;;  %v2167_v17 = vmul.f32 %v2156_v1, %v3330_v56 }
 0x725   : > { %2371 = vmatpush1.bf16.msra.mxu1 %v4899_v54  ;;  %v2166_v62 = vmul.f32 %v2160_v23, %v3327_v55 }
 0x726   : > { %v2136_v47 = vpack.c.bf16 %v2132_v49, %v2130_v53  ;;  %v4663_v35 = vpop.permute.xlu0 %2252  ;;  %v2137_v50 = vpack.c.bf16 %v2133_v45, %v2131_v27 }
 0x728   : > { %2372 = vmatprep.subr.bf16.mxu1 %v2137_v50  ;;  %v2219_v3 = vpop.permute.xlu1 %2218 }
 0x729   : > { %2373 = vmatpush1.bf16.msra.mxu1 %v2136_v47 }
 0x72a   : > { %v2153_v24 = vpop.permute.xlu0 %2152  ;;  %2374 = vmatprep.subr.bf16.mxu1 %v4900_v58 }
 0x72b   : > { %v2157_v28 = vsel %vm803_vm8, %v4574_v43, %v2153_v24  ;;  %v2161_v38 = vsel %vm803_vm8, %v2153_v24, %v4574_v43  ;;  %v2175_v43 = vpack.c.bf16 %v4341_v5, %v4337_v41  ;;  %v2196_v41 = vsel %vm827_vm9, %v4576_v34, %v2191_v46 }
 0x72c   : > { %v2168_v42 = vmul.f32 %v2161_v38, %v3327_v55  ;;  %v2169_v36 = vmul.f32 %v2157_v28, %v3330_v56  ;;  %v2227_v29 = vpop.permute.xlu1 %2226  ;;  %v2174_v55 = vpack.c.bf16 %v4313_v26, %v4311_v57  ;;  %v2200_v5 = vsel %vm827_vm9, %v2191_v46, %v4576_v34 }
 0x72d   : > { %2375 = vmatpush1.bf16.msra.mxu1 %v4901_v32  ;;  %v2206_v34 = vmul.f32 %v2196_v41, %v3336_v63  ;;  %v2207_v15 = vmul.f32 %v2200_v5, %v3339_v0  ;;  %v2232_v1 = vsel %vm849_vm11, %v2219_v3, %v2227_v29  ;;  %v2236_v23 = vsel %vm849_vm11, %v2227_v29, %v2219_v3 }
 0x72e   : > { %v2172_v6 = vpack.c.bf16 %v2168_v42, %v2166_v62  ;;  %v4687_v40 = vpop.permute.xlu0 %2260  ;;  %v2173_v12 = vpack.c.bf16 %v2169_v36, %v2167_v17  ;;  %v2243_v62 = vmul.f32 %v2236_v23, %v3355_v14  ;;  %v4913_v23 = vld [vmem:[#allocation9_spill] sm:$0xff] }
 0x72f   : > { %v2271_v3 = vsel %vm871_vm13, %v4687_v40, %v4663_v35 }
 0x730   : > { %2376 = vmatprep.subr.bf16.mxu1 %v2173_v12  ;;  %v2251_v31 = vpop.permute.xlu1 %2250  ;;  %v2277_v32 = vmul.f32 %v2271_v3, %v3383_v61 }
 0x731   : > { %2377 = vmatpush1.bf16.msra.mxu1 %v2172_v6 }
 0x732   : > { %v2289_v21 = vpop.permute.xlu0 %2288  ;;  %2378 = vmatprep.subr.bf16.mxu1 %v2175_v43  ;;  %v4904_v43 = vld [vmem:[#allocation13_spill] sm:$0xff] }
 0x734   : > { %v2259_v56 = vpop.permute.xlu1 %2258 }
 0x735   : > { %2379 = vmatpush1.bf16.msra.mxu1 %v2174_v55  ;;  %v2266_v11 = vsel %vm871_vm13, %v2251_v31, %v2259_v56 }
 0x736   : > { %v2297_v2 = vpop.permute.xlu0 %2296  ;;  %2380 = vmatprep.subr.bf16.mxu1 %v2177_v10 }
 0x737   : > { %v2303_v57 = vsel %vm893_vm14, %v2289_v21, %v2297_v2  ;;  %v2307_v26 = vsel %vm893_vm14, %v2297_v2, %v2289_v21  ;;  %v2274_v21 = vmul.f32 %v2266_v11, %v4904_v43 }
 0x738   : > { %v2287_v39 = vpop.permute.xlu1 %2286  ;;  %v2312_v30 = vmul.f32 %v2303_v57, %v3403_v19  ;;  %v2313_v33 = vmul.f32 %v2307_v26, %v3400_v18 }
 0x739   : > { %2381 = vmatpush1.bf16.msra.mxu1 %v2176_v22 }
 0x73a   : > { %v2193_v4 = vpop.permute.xlu0 %2192  ;;  %2382 = vmatprep.subr.bf16.mxu1 %v4902_v7 }
 0x73b   : > { %v2197_v44 = vsel %vm827_vm9, %v4578_v48, %v2193_v4  ;;  %v2201_v20 = vsel %vm827_vm9, %v2193_v4, %v4578_v48  ;;  %v4903_v48 = vpack.c.bf16 %v4563_v52, %v4557_v25  ;;  %v2270_v25 = vsel %vm871_vm13, %v2259_v56, %v2251_v31 }
 0x73c   : > { %v2208_v53 = vmul.f32 %v2197_v44, %v3336_v63  ;;  %v2209_v27 = vmul.f32 %v2201_v20, %v3339_v0  ;;  %v2295_v49 = vpop.permute.xlu1 %2294  ;;  %v2242_v52 = vmul.f32 %v2232_v1, %v3352_v13  ;;  %v2275_v60 = vmul.f32 %v2270_v25, %v3383_v61 }
 0x73d   : > { %v2302_v45 = vsel %vm893_vm14, %v2287_v39, %v2295_v49  ;;  %v2306_v46 = vsel %vm893_vm14, %v2295_v49, %v2287_v39  ;;  %2383 = vmatpush1.bf16.msra.mxu1 %v4903_v48  ;;  %v4908_v48 = vld [vmem:[#allocation11_spill] sm:$0xff] }
 0x73e   : > { %v2212_v54 = vpack.c.bf16 %v2208_v53, %v2206_v34  ;;  %v2310_v63 = vmul.f32 %v2302_v45, %v3403_v19  ;;  %v2311_v0 = vmul.f32 %v2306_v46, %v3400_v18  ;;  %v2257_v47 = vpop.permute.xlu0 %2256  ;;  %v2213_v50 = vpack.c.bf16 %v2209_v27, %v2207_v15  ;;  %v4905_v34 = vld [vmem:[#allocation15_spill] sm:$0xff]  ;;  %v4906_v15 = vld [vmem:[#allocation14_spill] sm:$0xff] }
 0x740   : > { %v2318_v24 = vpack.c.bf16 %v2312_v30, %v2310_v63  ;;  %v2255_v58 = vpop.permute.xlu1 %2254  ;;  %2384 = vmatprep.subr.bf16.mxu1 %v2213_v50  ;;  %v2319_v28 = vpack.c.bf16 %v2313_v33, %v2311_v0  ;;  %v4909_v0 = vlaneseq }
 0x741   : > { %2385 = vmatpush1.bf16.msra.mxu1 %v2212_v54  ;;  %v2476_v54 = vcombine.low %v4908_v48, %v4907_v16 }
 0x742   : > { %v2229_v38 = vpop.permute.xlu0 %2228  ;;  %2386 = vmatprep.subr.bf16.mxu1 %v2247_v59  ;;  %2403 = vmatprep.subr.bf16.mxu0 %v2319_v28  ;;  %vm4798_vm1 = vcmp.lt.s32.totalorder %v4909_v0, 256 }
 0x743   : > { %v2233_v17 = vsel %vm849_vm11, %v4643_v37, %v2229_v38  ;;  %v2237_v42 = vsel %vm849_vm11, %v2229_v38, %v4643_v37  ;;  %2404 = vmatpush1.bf16.msra.mxu0 %v2318_v24  ;;  %v2267_v37 = vsel %vm871_vm13, %v4663_v35, %v4687_v40  ;;  %v2483_v63 = vrot.slane %v2476_v54, %v4905_v34 }
 0x744   : > { %v2244_v59 = vmul.f32 %v2233_v17, %v3352_v13  ;;  %v2245_v36 = vmul.f32 %v2237_v42, %v3355_v14  ;;  %v2263_v29 = vpop.permute.xlu1 %2262  ;;  %v2283_v14 = vpack.c.bf16 %v2277_v32, %v2275_v60  ;;  %v2276_v55 = vmul.f32 %v2267_v37, %v4904_v43  ;;  %v4915_v42 = vld [vmem:[#allocation8_spill] sm:$0xff] }
 0x745   : > { %2387 = vmatpush1.bf16.msra.mxu1 %v2246_v51  ;;  %v2268_v8 = vsel %vm871_vm13, %v2255_v58, %v2263_v29  ;;  %v2272_v9 = vsel %vm871_vm13, %v2263_v29, %v2255_v58  ;;  %v2446_v11 = vadd.f32 %v4907_v16, %v4915_v42 }
 0x746   : > { %v2248_v6 = vpack.c.bf16 %v2244_v59, %v2242_v52  ;;  %v2293_v12 = vpop.permute.xlu0 %2292  ;;  %v2249_v31 = vpack.c.bf16 %v2245_v36, %v2243_v62  ;;  %v2282_v35 = vpack.c.bf16 %v2276_v55, %v2274_v21  ;;  %v2278_v10 = vmul.f32 %v2268_v8, %v4904_v43  ;;  %v4914_v52 = vld [vmem:[#allocation10_spill] sm:$0xff] }
 0x747   : > { %v2279_v2 = vmul.f32 %v2272_v9, %v3383_v61  ;;  %v2445_v38 = vadd.f32 %v4908_v48, %v4914_v52  ;;  %v2449_v36 = vstv %s2444_s23 }
 0x748   : > { %v2291_v13 = vpop.permute.xlu1 %2290  ;;  %2388 = vmatprep.subr.bf16.mxu1 %v2249_v31 }
 0x749   : > { %2389 = vmatpush1.bf16.msra.mxu1 %v2248_v6 }
 0x74a   : > { %v2265_v51 = vpop.permute.xlu0 %2264  ;;  %2390 = vmatprep.subr.bf16.mxu1 %v2283_v14 }
 0x74b   : > { %v2269_v40 = vsel %vm871_vm13, %v2257_v47, %v2265_v51  ;;  %v2273_v56 = vsel %vm871_vm13, %v2265_v51, %v2257_v47  ;;  %v4912_v47 = vld [vmem:[#allocation7_spill] sm:$0xff] }
 0x74c   : > { %v2280_v22 = vmul.f32 %v2269_v40, %v4904_v43  ;;  %v2281_v39 = vmul.f32 %v2273_v56, %v3383_v61  ;;  %v2299_v41 = vpop.permute.xlu1 %2298  ;;  %v2348_v61 = vrot.slane %v4906_v15, %v4905_v34  ;;  %2493 = vst.msk [vmem:[#allocation4] sm:$0x3] %vm4798_vm1, %v4912_v47 }
 0x74d   : > { %v2304_v5 = vsel %vm893_vm14, %v2291_v13, %v2299_v41  ;;  %v2308_v57 = vsel %vm893_vm14, %v2299_v41, %v2291_v13  ;;  %2391 = vmatpush1.bf16.msra.mxu1 %v2282_v35 }
 0x74e   : > { %v2284_v26 = vpack.c.bf16 %v2280_v22, %v2278_v10  ;;  %v2301_v4 = vpop.permute.xlu0 %2300  ;;  %v2285_v7 = vpack.c.bf16 %v2281_v39, %v2279_v2  ;;  %v2314_v53 = vmul.f32 %v2304_v5, %v3403_v19  ;;  %v2315_v27 = vmul.f32 %v2308_v57, %v3400_v18 }
 0x74f   : > { %v2305_v44 = vsel %vm893_vm14, %v2293_v12, %v2301_v4  ;;  %v2309_v20 = vsel %vm893_vm14, %v2301_v4, %v2293_v12  ;;  %v2356_v46 = vcombine.high %v2348_v61, %v2348_v61 }
 0x750   : > { %v2316_v49 = vmul.f32 %v2305_v44, %v3403_v19  ;;  %v2317_v30 = vmul.f32 %v2309_v20, %v3400_v18  ;;  %2392 = vmatprep.subr.bf16.mxu1 %v2285_v7  ;;  %v2490_v18 = vrot.slane %v2483_v63, %v4905_v34 }
 0x751   : > { %2393 = vmatpush1.bf16.msra.mxu1 %v2284_v26 }
 0x752   : > { %v2320_v33 = vpack.c.bf16 %v2316_v49, %v2314_v53  ;;  %v2321_v45 = vpack.c.bf16 %v2317_v30, %v2315_v27  ;;  %2492 = vst.msk [vmem:[#allocation3] sm:$0x3] %vm4798_vm1, %v2490_v18 }
 0x754   : > { %2395 = vmatmul.mubr.bf16.vlgmr.msra.gmra.mrb[16].mxu1 %v2348_v61  ;;  %2405 = vmatprep.subr.bf16.mxu0 %v2321_v45 }
 0x755   : > { %2406 = vmatpush1.bf16.msra.mxu0 %v2320_v33 }
 0x758   : > { %2627 = vmatmul.mubr.msk.bf16.vlgmr.msra.gmra.mrb[12].mxu0 %vm1435_vm0, %v2356_v46 }
 0x75d   : > { %v2327_v50 = vpop.permute.xlu1 %2326 }
 0x75e   : > { %v2332_v24 = vrot.slane %v2327_v50, %v4913_v23 }
 0x827   : > { %v2396_v1 = vpop.f32.mrb[16].mxu1 }
 0x828   : > { %v2398_v58 = vpop.f32.mrb[17].mxu1  ;;  %v2397_v25 = vadd.f32 %v2396_v1, %v2332_v24 }
 0x829   : > { %v2400_v28 = vpop.f32.mrb[18].mxu1  ;;  %v2399_v3 = vadd.f32 %v2398_v58, %v2332_v24 }
 0x82a   : > { %v2401_v62 = vpop.f32.mrb[19].mxu1 }
 0x82b   : > { %v2437_v17 = vpop.f32.mrb[12].mxu0 }
 0x82c   : > { %v2438_v60 = vadd.f32 %v2437_v17, %v2397_v25  ;;  %v2439_v59 = vpop.f32.mrb[13].mxu0 }
 0x82d   : > { %v2440_v29 = vadd.f32 %v2439_v59, %v2399_v3  ;;  %v2441_v37 = vpop.f32.mrb[14].mxu0 }
 0x82e   : > { %v2447_v32 = vadd.f32 %v2445_v38, %v2438_v60  ;;  %v2442_v6 = vpop.f32.mrb[15].mxu0 }
 0x82f   : > { %v2448_v12 = vadd.f32 %v2446_v11, %v2440_v29 }
 0x830   : > { %v2450_v31 = vmul.f32 %v2449_v36, %v2447_v32 }
 0x831   : > { %v2451_v43 = vmul.f32 %v2449_v36, %v2448_v12 }
 0x833   : > { %v2454_v21 = vcombine.low %v2450_v31, %v2451_v43 }
 0x835   : > { %v2461_v13 = vrot.slane %v2454_v21, %v4905_v34 }
 0x837   : > { %v2468_v14 = vrot.slane %v2461_v13, %v4905_v34 }
 0x839   : > { %v2470_v55 = vsub.f32 %v4912_v47, %v2468_v14 }
 0x83b   : > { %2475 = vst.msk [vmem:[#allocation2] sm:$0x3] %vm4798_vm1, %v2470_v55  ;;  %2494 = vst.msk [vmem:[%s4916_s22] sm:$0x3] %vm4798_vm1, %v2470_v55 }
 0x83c PF: > { %s26_s16 = sadd.s32 1, %s2835_s16   ;;  %s4917_s29 = smov %s2827_s14 }
 0x83d   : > { %p23_p8 = scmp.ge.s32.totalorder %s26_s16, 8   ;;  %s4918_s30 = smov %s2831_s15 }
 0x83e   : > { %s4919_s14 = smov %s4922_s11  ;;  %s4920_s15 = smov %s4926_s12 }
 0x83f   :  { %25 = sbr.rel (!%p23_p8) target bundleno = 3 (0x3), region = 120 }

</bundles_post_ra>
